<compile_context>
chip_gen: v7x
topology: tpu7x:2x2x1
jax: 0.10.0
libtpu: 0.0.40
codegen_flags: <defaults>
</compile_context>

<pallas_src>
import functools
import math

import jax
import jax.numpy as jnp
from jax import lax
from jax.experimental import pallas as pl
from jax.experimental.pallas import tpu as pltpu


def _mhsa_kernel(x_ref, wq_ref, wk_ref, wv_ref, bq_ref, bk_ref, bv_ref,
                 wo_ref, bo_ref, o_ref, acc_ref, *, scale):
    """One (batch, head) pair per grid step.

    x_ref:  (1, S, C)   input sequence for this batch element (f32)
    wq/wk/wv_ref: (1, C, d)  per-head projection weights (already transposed)
    bq/bk/bv_ref: (1, 1, d)  per-head projection biases
    wo_ref: (1, d, C)   per-head slice of the output projection
    bo_ref: (1, C)      output projection bias
    o_ref:  (1, S, C)   output block (written on the last head)
    acc_ref:(S, C) f32  VMEM accumulator over heads
    """
    h = pl.program_id(1)

    @pl.when(h == 0)
    def _init():
        acc_ref[...] = jnp.zeros_like(acc_ref)

    x = x_ref[0]                               # (S, C) f32
    xb = x.astype(jnp.bfloat16)

    q = jnp.dot(xb, wq_ref[0].astype(jnp.bfloat16),
                preferred_element_type=jnp.float32) + bq_ref[0]      # (S, d)
    k = jnp.dot(xb, wk_ref[0].astype(jnp.bfloat16),
                preferred_element_type=jnp.float32) + bk_ref[0]      # (S, d)
    v = jnp.dot(xb, wv_ref[0].astype(jnp.bfloat16),
                preferred_element_type=jnp.float32) + bv_ref[0]      # (S, d)

    # logits = q @ k^T * scale   (contract the head dim of both -> (S, S))
    logits = lax.dot_general(
        q.astype(jnp.bfloat16), k.astype(jnp.bfloat16),
        dimension_numbers=(((1,), (1,)), ((), ())),
        preferred_element_type=jnp.float32) * scale

    # numerically stable softmax over keys, in f32
    m = jnp.max(logits, axis=-1, keepdims=True)
    p = jnp.exp(logits - m)
    attn = p / jnp.sum(p, axis=-1, keepdims=True)

    ctx = jnp.dot(attn.astype(jnp.bfloat16), v.astype(jnp.bfloat16),
                  preferred_element_type=jnp.float32)                 # (S, d)

    # this head's contribution to the output projection
    acc_ref[...] += jnp.dot(ctx.astype(jnp.bfloat16),
                            wo_ref[0].astype(jnp.bfloat16),
                            preferred_element_type=jnp.float32)       # (S, C)

    @pl.when(h == pl.num_programs(1) - 1)
    def _finish():
        # out_proj bias + residual connection, then store once per batch block.
        o_ref[0] = (acc_ref[...] + bo_ref[...] + x).astype(o_ref.dtype)


def mhsa_forward(params, x_nchw, num_heads=8):
    """Forward pass matching ImageMultiheadSelfAttention.forward."""
    in_w, in_b = params["in_w"], params["in_b"]      # (3C, C), (3C,)
    out_w, out_b = params["out_w"], params["out_b"]  # (C, C),  (C,)

    N, C, H, W = x_nchw.shape
    assert C % num_heads == 0, "planes must be divisible by num_heads"
    S = H * W
    d = C // num_heads
    scale = 1.0 / math.sqrt(d)

    # 'n c h w -> n (h w) c'  (seq index = h*W + w, same as einops '(h w)')
    x_seq = jnp.transpose(x_nchw, (0, 2, 3, 1)).reshape(N, S, C)
    x_seq = x_seq.astype(jnp.float32)

    # Pre-transpose / pre-split weights per head (glue, plain JAX).
    #   q = x @ Wq^T  ->  per-head wq_h = Wq^T[:, h*d:(h+1)*d]  (C, d)
    def per_head_in(w_block):                      # w_block: (C, C)
        return w_block.T.reshape(C, num_heads, d).transpose(1, 0, 2)  # (Hh,C,d)

    wq_h = per_head_in(in_w[:C]).astype(jnp.float32)
    wk_h = per_head_in(in_w[C:2 * C]).astype(jnp.float32)
    wv_h = per_head_in(in_w[2 * C:]).astype(jnp.float32)
    bq_h = in_b[:C].reshape(num_heads, 1, d).astype(jnp.float32)
    bk_h = in_b[C:2 * C].reshape(num_heads, 1, d).astype(jnp.float32)
    bv_h = in_b[2 * C:].reshape(num_heads, 1, d).astype(jnp.float32)
    # out = concat_heads @ Wo^T  ->  per-head wo_h = Wo^T[h*d:(h+1)*d, :] (d, C)
    wo_h = out_w.T.reshape(num_heads, d, C).astype(jnp.float32)
    bo = out_b.reshape(1, C).astype(jnp.float32)

    kernel = functools.partial(_mhsa_kernel, scale=scale)

    flops = 2 * N * num_heads * S * (3 * C * d + 2 * S * d + d * C)
    bytes_accessed = 4 * (2 * N * S * C + 4 * C * C + 4 * C)

    out_seq = pl.pallas_call(
        kernel,
        out_shape=jax.ShapeDtypeStruct((N, S, C), jnp.float32),
        grid_spec=pltpu.PrefetchScalarGridSpec(
            num_scalar_prefetch=0,
            grid=(N, num_heads),
            in_specs=[
                pl.BlockSpec((1, S, C), lambda n, h: (n, 0, 0)),   # x
                pl.BlockSpec((1, C, d), lambda n, h: (h, 0, 0)),   # wq_h
                pl.BlockSpec((1, C, d), lambda n, h: (h, 0, 0)),   # wk_h
                pl.BlockSpec((1, C, d), lambda n, h: (h, 0, 0)),   # wv_h
                pl.BlockSpec((1, 1, d), lambda n, h: (h, 0, 0)),   # bq_h
                pl.BlockSpec((1, 1, d), lambda n, h: (h, 0, 0)),   # bk_h
                pl.BlockSpec((1, 1, d), lambda n, h: (h, 0, 0)),   # bv_h
                pl.BlockSpec((1, d, C), lambda n, h: (h, 0, 0)),   # wo_h
                pl.BlockSpec((1, C), lambda n, h: (0, 0)),         # bo
            ],
            out_specs=pl.BlockSpec((1, S, C), lambda n, h: (n, 0, 0)),
            scratch_shapes=[pltpu.VMEM((S, C), jnp.float32)],
        ),
        compiler_params=pltpu.CompilerParams(
            dimension_semantics=("parallel", "arbitrary"),
        ),
        cost_estimate=pl.CostEstimate(
            flops=flops,
            transcendentals=N * num_heads * S * S,
            bytes_accessed=bytes_accessed,
        ),
    )(x_seq, wq_h, wk_h, wv_h, bq_h, bk_h, bv_h, wo_h, bo)

    # 'n (h w) c -> n c h w'  + (residual already added inside the kernel)
    return jnp.transpose(out_seq.reshape(N, H, W, C), (0, 3, 1, 2))


def init_mhsa_params(key, planes):
    """Deterministic synthetic parameters (shapes match nn.MultiheadAttention)."""
    k1, k2, k3, k4 = jax.random.split(key, 4)
    in_w = 0.1 * jax.random.normal(k1, (3 * planes, planes), jnp.float32)
    in_b = 0.02 * jax.random.normal(k2, (3 * planes,), jnp.float32)
    out_w = 0.1 * jax.random.normal(k3, (planes, planes), jnp.float32)
    out_b = 0.02 * jax.random.normal(k4, (planes,), jnp.float32)
    return dict(in_w=in_w, in_b=in_b, out_w=out_w, out_b=out_b)


def _reference_forward(params, x_nchw, num_heads=8):
    """Pure-JAX (f32) reference for a correctness sanity check."""
    in_w, in_b = params["in_w"], params["in_b"]
    out_w, out_b = params["out_w"], params["out_b"]
    N, C, H, W = x_nchw.shape
    S = H * W
    d = C // num_heads

    x = jnp.transpose(x_nchw, (0, 2, 3, 1)).reshape(N, S, C).astype(jnp.float32)
    qkv = jnp.einsum("nsc,oc->nso", x, in_w) + in_b          # (N, S, 3C)
    q, k, v = jnp.split(qkv, 3, axis=-1)

    def split_heads(t):
        return t.reshape(N, S, num_heads, d).transpose(0, 2, 1, 3)  # (N,Hh,S,d)

    q, k, v = map(split_heads, (q, k, v))
    logits = jnp.einsum("nhsd,nhtd->nhst", q, k) * (1.0 / math.sqrt(d))
    attn = jax.nn.softmax(logits, axis=-1)
    ctx = jnp.einsum("nhst,nhtd->nhsd", attn, v)
    ctx = ctx.transpose(0, 2, 1, 3).reshape(N, S, C)
    out = jnp.einsum("nsc,oc->nso", ctx, out_w) + out_b
    y = x + out                                              # residual
    return jnp.transpose(y.reshape(N, H, W, C), (0, 3, 1, 2))


if __name__ == "__main__":
    key = jax.random.PRNGKey(0)
    k_x, k_p = jax.random.split(key)

    # Small shapes: batch=2, planes=32 (8 heads, head_dim=4), spatial 16x16.
    N, C, H, W = 2, 32, 16, 16
    x = jax.random.normal(k_x, (N, C, H, W), jnp.float32)
    params = init_mhsa_params(k_p, C)

    out = mhsa_forward(params, x)
    out = jax.block_until_ready(out)

    ref = _reference_forward(params, x)
    assert out.shape == (N, C, H, W), out.shape
    # bf16 MXU inputs (f32 accumulation) -> loosened tolerance vs f32 reference.
    max_err = float(jnp.max(jnp.abs(out - ref)))
    assert max_err < 2e-2, f"mismatch vs reference: max_err={max_err}"

    print("KERNEL_OK")
</pallas_src>

<mosaic_0001>
module attributes {stable_mosaic.version = 11 : i64} {
  func.func @_mhsa_kernel(%arg0: i32, %arg1: i32, %arg2: memref<1x256x32xf32, #tpu.memory_space<vmem>>, %arg3: memref<1x32x4xf32, #tpu.memory_space<vmem>>, %arg4: memref<1x32x4xf32, #tpu.memory_space<vmem>>, %arg5: memref<1x32x4xf32, #tpu.memory_space<vmem>>, %arg6: memref<1x1x4xf32, #tpu.memory_space<vmem>>, %arg7: memref<1x1x4xf32, #tpu.memory_space<vmem>>, %arg8: memref<1x1x4xf32, #tpu.memory_space<vmem>>, %arg9: memref<1x4x32xf32, #tpu.memory_space<vmem>>, %arg10: memref<1x32xf32, #tpu.memory_space<vmem>>, %arg11: memref<1x256x32xf32, #tpu.memory_space<vmem>>, %arg12: memref<256x32xf32, #tpu.memory_space<vmem>>) attributes {dimension_semantics = [#tpu.dimension_semantics<parallel>, #tpu.dimension_semantics<arbitrary>], iteration_bounds = array<i64: 2, 8>, scalar_prefetch = 0 : i64, scratch_operands = 1 : i64, tpu.core_type = #tpu.core_type<tc>, window_params = [{transform_indices = @transform_0, window_bounds = array<i64: 1, 256, 32>}, {transform_indices = @transform_1, window_bounds = array<i64: 1, 32, 4>}, {transform_indices = @transform_2, window_bounds = array<i64: 1, 32, 4>}, {transform_indices = @transform_3, window_bounds = array<i64: 1, 32, 4>}, {transform_indices = @transform_4, window_bounds = array<i64: 1, 1, 4>}, {transform_indices = @transform_5, window_bounds = array<i64: 1, 1, 4>}, {transform_indices = @transform_6, window_bounds = array<i64: 1, 1, 4>}, {transform_indices = @transform_7, window_bounds = array<i64: 1, 4, 32>}, {pipeline_mode = #tpu.pipeline_mode<synchronous>, transform_indices = @transform_8, window_bounds = array<i64: 1, 32>}, {transform_indices = @transform_9, window_bounds = array<i64: 1, 256, 32>}]} {
    %c0_i32 = arith.constant 0 : i32
    %0 = arith.cmpi eq, %arg1, %c0_i32 : i32
    %1 = arith.extui %0 : i1 to i32
    %c0_i32_0 = arith.constant 0 : i32
    %2 = arith.cmpi ne, %1, %c0_i32_0 : i32
    scf.if %2 {
      %cst_37 = arith.constant 0.000000e+00 : f32
      %58 = vector.broadcast %cst_37 : f32 to vector<256x32xf32>
      %c0_38 = arith.constant 0 : index
      %c0_39 = arith.constant 0 : index
      %59 = vector.load %arg12[%c0_38, %c0_39] : memref<256x32xf32, #tpu.memory_space<vmem>>, vector<256x32xf32>
      tpu.vector_store %arg12[%c0_38, %c0_39], %58 {strides = array<i32>} : memref<256x32xf32, #tpu.memory_space<vmem>>, vector<256x32xf32>,
    } else {
    }
    %c0 = arith.constant 0 : index
    %c0_1 = arith.constant 0 : index
    %c0_2 = arith.constant 0 : index
    %3 = vector.load %arg2[%c0, %c0_1, %c0_2] : memref<1x256x32xf32, #tpu.memory_space<vmem>>, vector<1x256x32xf32>
    %4 = vector.shape_cast %3 : vector<1x256x32xf32> to vector<256x32xf32>
    %5 = arith.truncf %4 : vector<256x32xf32> to vector<256x32xbf16>
    %c0_3 = arith.constant 0 : index
    %c0_4 = arith.constant 0 : index
    %c0_5 = arith.constant 0 : index
    %6 = vector.load %arg3[%c0_3, %c0_4, %c0_5] : memref<1x32x4xf32, #tpu.memory_space<vmem>>, vector<1x32x4xf32>
    %7 = vector.shape_cast %6 : vector<1x32x4xf32> to vector<32x4xf32>
    %8 = arith.truncf %7 : vector<32x4xf32> to vector<32x4xbf16>
    %cst = arith.constant dense<0.000000e+00> : vector<256x4xf32>
    %9 = tpu.matmul %5, %8, %cst {dimension_numbers = #tpu.dot_dimension_numbers<[1], [0], [0], [1], [0, 0, 1, 1], [], []>} : vector<256x32xbf16>, vector<32x4xbf16>, vector<256x4xf32> -> vector<256x4xf32>
    %c0_6 = arith.constant 0 : index
    %c0_7 = arith.constant 0 : index
    %c0_8 = arith.constant 0 : index
    %10 = vector.load %arg6[%c0_6, %c0_7, %c0_8] : memref<1x1x4xf32, #tpu.memory_space<vmem>>, vector<1x1x4xf32>
    %11 = vector.shape_cast %10 : vector<1x1x4xf32> to vector<1x4xf32>
    %12 = vector.broadcast %11 : vector<1x4xf32> to vector<256x4xf32>
    %13 = arith.addf %9, %12 : vector<256x4xf32>
    %c0_9 = arith.constant 0 : index
    %c0_10 = arith.constant 0 : index
    %c0_11 = arith.constant 0 : index
    %14 = vector.load %arg4[%c0_9, %c0_10, %c0_11] : memref<1x32x4xf32, #tpu.memory_space<vmem>>, vector<1x32x4xf32>
    %15 = vector.shape_cast %14 : vector<1x32x4xf32> to vector<32x4xf32>
    %16 = arith.truncf %15 : vector<32x4xf32> to vector<32x4xbf16>
    %cst_12 = arith.constant dense<0.000000e+00> : vector<256x4xf32>
    %17 = tpu.matmul %5, %16, %cst_12 {dimension_numbers = #tpu.dot_dimension_numbers<[1], [0], [0], [1], [0, 0, 1, 1], [], []>} : vector<256x32xbf16>, vector<32x4xbf16>, vector<256x4xf32> -> vector<256x4xf32>
    %c0_13 = arith.constant 0 : index
    %c0_14 = arith.constant 0 : index
    %c0_15 = arith.constant 0 : index
    %18 = vector.load %arg7[%c0_13, %c0_14, %c0_15] : memref<1x1x4xf32, #tpu.memory_space<vmem>>, vector<1x1x4xf32>
    %19 = vector.shape_cast %18 : vector<1x1x4xf32> to vector<1x4xf32>
    %20 = vector.broadcast %19 : vector<1x4xf32> to vector<256x4xf32>
    %21 = arith.addf %17, %20 : vector<256x4xf32>
    %c0_16 = arith.constant 0 : index
    %c0_17 = arith.constant 0 : index
    %c0_18 = arith.constant 0 : index
    %22 = vector.load %arg5[%c0_16, %c0_17, %c0_18] : memref<1x32x4xf32, #tpu.memory_space<vmem>>, vector<1x32x4xf32>
    %23 = vector.shape_cast %22 : vector<1x32x4xf32> to vector<32x4xf32>
    %24 = arith.truncf %23 : vector<32x4xf32> to vector<32x4xbf16>
    %cst_19 = arith.constant dense<0.000000e+00> : vector<256x4xf32>
    %25 = tpu.matmul %5, %24, %cst_19 {dimension_numbers = #tpu.dot_dimension_numbers<[1], [0], [0], [1], [0, 0, 1, 1], [], []>} : vector<256x32xbf16>, vector<32x4xbf16>, vector<256x4xf32> -> vector<256x4xf32>
    %c0_20 = arith.constant 0 : index
    %c0_21 = arith.constant 0 : index
    %c0_22 = arith.constant 0 : index
    %26 = vector.load %arg8[%c0_20, %c0_21, %c0_22] : memref<1x1x4xf32, #tpu.memory_space<vmem>>, vector<1x1x4xf32>
    %27 = vector.shape_cast %26 : vector<1x1x4xf32> to vector<1x4xf32>
    %28 = vector.broadcast %27 : vector<1x4xf32> to vector<256x4xf32>
    %29 = arith.addf %25, %28 : vector<256x4xf32>
    %30 = arith.truncf %13 : vector<256x4xf32> to vector<256x4xbf16>
    %31 = arith.truncf %21 : vector<256x4xf32> to vector<256x4xbf16>
    %cst_23 = arith.constant dense<0.000000e+00> : vector<256x256xf32>
    %32 = tpu.matmul %30, %31, %cst_23 {dimension_numbers = #tpu.dot_dimension_numbers<[1], [1], [0], [0], [0, 0, 1, 0], [], []>} : vector<256x4xbf16>, vector<256x4xbf16>, vector<256x256xf32> -> vector<256x256xf32>
    %cst_24 = arith.constant 5.000000e-01 : f32
    %33 = vector.broadcast %cst_24 : f32 to vector<256x256xf32>
    %34 = arith.mulf %32, %33 : vector<256x256xf32>
    %cst_25 = arith.constant dense<0xFF800000> : vector<256xf32>
    %35 = vector.multi_reduction <maximumf>, %34, %cst_25 [1] : vector<256x256xf32> to vector<256xf32>
    %36 = vector.shape_cast %35 : vector<256xf32> to vector<256x1xf32>
    %37 = vector.broadcast %36 : vector<256x1xf32> to vector<256x256xf32>
    %38 = arith.subf %34, %37 : vector<256x256xf32>
    %39 = math.exp %38 : vector<256x256xf32>
    %cst_26 = arith.constant dense<0.000000e+00> : vector<256xf32>
    %40 = vector.multi_reduction <add>, %39, %cst_26 [1] : vector<256x256xf32> to vector<256xf32>
    %41 = vector.shape_cast %40 : vector<256xf32> to vector<256x1xf32>
    %42 = vector.broadcast %41 : vector<256x1xf32> to vector<256x256xf32>
    %43 = arith.divf %39, %42 : vector<256x256xf32>
    %44 = arith.truncf %43 : vector<256x256xf32> to vector<256x256xbf16>
    %45 = arith.truncf %29 : vector<256x4xf32> to vector<256x4xbf16>
    %cst_27 = arith.constant dense<0.000000e+00> : vector<256x4xf32>
    %46 = tpu.matmul %44, %45, %cst_27 {dimension_numbers = #tpu.dot_dimension_numbers<[1], [0], [0], [1], [0, 0, 1, 1], [], []>} : vector<256x256xbf16>, vector<256x4xbf16>, vector<256x4xf32> -> vector<256x4xf32>
    %c0_28 = arith.constant 0 : index
    %c0_29 = arith.constant 0 : index
    %47 = vector.load %arg12[%c0_28, %c0_29] : memref<256x32xf32, #tpu.memory_space<vmem>>, vector<256x32xf32>
    %48 = arith.truncf %46 : vector<256x4xf32> to vector<256x4xbf16>
    %c0_30 = arith.constant 0 : index
    %c0_31 = arith.constant 0 : index
    %c0_32 = arith.constant 0 : index
    %49 = vector.load %arg9[%c0_30, %c0_31, %c0_32] : memref<1x4x32xf32, #tpu.memory_space<vmem>>, vector<1x4x32xf32>
    %50 = vector.shape_cast %49 : vector<1x4x32xf32> to vector<4x32xf32>
    %51 = arith.truncf %50 : vector<4x32xf32> to vector<4x32xbf16>
    %cst_33 = arith.constant dense<0.000000e+00> : vector<256x32xf32>
    %52 = tpu.matmul %48, %51, %cst_33 {dimension_numbers = #tpu.dot_dimension_numbers<[1], [0], [0], [1], [0, 0, 1, 1], [], []>} : vector<256x4xbf16>, vector<4x32xbf16>, vector<256x32xf32> -> vector<256x32xf32>
    %53 = arith.addf %47, %52 : vector<256x32xf32>
    %c0_34 = arith.constant 0 : index
    %c0_35 = arith.constant 0 : index
    %54 = vector.load %arg12[%c0_34, %c0_35] : memref<256x32xf32, #tpu.memory_space<vmem>>, vector<256x32xf32>
    tpu.vector_store %arg12[%c0_34, %c0_35], %53 {strides = array<i32>} : memref<256x32xf32, #tpu.memory_space<vmem>>, vector<256x32xf32>,
    %c7_i32 = arith.constant 7 : i32
    %55 = arith.cmpi eq, %arg1, %c7_i32 : i32
    %56 = arith.extui %55 : i1 to i32
    %c0_i32_36 = arith.constant 0 : i32
    %57 = arith.cmpi ne, %56, %c0_i32_36 : i32
    scf.if %57 {
      %c0_37 = arith.constant 0 : index
      %c0_38 = arith.constant 0 : index
      %58 = vector.load %arg12[%c0_37, %c0_38] : memref<256x32xf32, #tpu.memory_space<vmem>>, vector<256x32xf32>
      %c0_39 = arith.constant 0 : index
      %c0_40 = arith.constant 0 : index
      %59 = vector.load %arg10[%c0_39, %c0_40] : memref<1x32xf32, #tpu.memory_space<vmem>>, vector<1x32xf32>
      %60 = vector.broadcast %59 : vector<1x32xf32> to vector<256x32xf32>
      %61 = arith.addf %58, %60 : vector<256x32xf32>
      %62 = arith.addf %61, %4 : vector<256x32xf32>
      %c0_41 = arith.constant 0 : index
      %c0_42 = arith.constant 0 : index
      %c0_43 = arith.constant 0 : index
      %63 = vector.load %arg11[%c0_41, %c0_42, %c0_43] : memref<1x256x32xf32, #tpu.memory_space<vmem>>, vector<1x256x32xf32>
      %64 = vector.shape_cast %63 : vector<1x256x32xf32> to vector<256x32xf32>
      %65 = vector.shape_cast %62 : vector<256x32xf32> to vector<1x256x32xf32>
      tpu.vector_store %arg11[%c0_41, %c0_42, %c0_43], %65 {strides = array<i32>} : memref<1x256x32xf32, #tpu.memory_space<vmem>>, vector<1x256x32xf32>,
    } else {
    }
    return
  }
  func.func @transform_0(%arg0: i32, %arg1: i32) -> (i32, i32, i32) {
    %c0_i32 = arith.constant 0 : i32
    %c0_i32_0 = arith.constant 0 : i32
    %c0_i32_1 = arith.constant 0 : i32
    return %arg0, %c0_i32, %c0_i32_0 : i32, i32, i32
  }
  func.func @transform_1(%arg0: i32, %arg1: i32) -> (i32, i32, i32) {
    %c0_i32 = arith.constant 0 : i32
    %c0_i32_0 = arith.constant 0 : i32
    %c0_i32_1 = arith.constant 0 : i32
    return %arg1, %c0_i32, %c0_i32_0 : i32, i32, i32
  }
  func.func @transform_2(%arg0: i32, %arg1: i32) -> (i32, i32, i32) {
    %c0_i32 = arith.constant 0 : i32
    %c0_i32_0 = arith.constant 0 : i32
    %c0_i32_1 = arith.constant 0 : i32
    return %arg1, %c0_i32, %c0_i32_0 : i32, i32, i32
  }
  func.func @transform_3(%arg0: i32, %arg1: i32) -> (i32, i32, i32) {
    %c0_i32 = arith.constant 0 : i32
    %c0_i32_0 = arith.constant 0 : i32
    %c0_i32_1 = arith.constant 0 : i32
    return %arg1, %c0_i32, %c0_i32_0 : i32, i32, i32
  }
  func.func @transform_4(%arg0: i32, %arg1: i32) -> (i32, i32, i32) {
    %c0_i32 = arith.constant 0 : i32
    %c0_i32_0 = arith.constant 0 : i32
    %c0_i32_1 = arith.constant 0 : i32
    return %arg1, %c0_i32, %c0_i32_0 : i32, i32, i32
  }
  func.func @transform_5(%arg0: i32, %arg1: i32) -> (i32, i32, i32) {
    %c0_i32 = arith.constant 0 : i32
    %c0_i32_0 = arith.constant 0 : i32
    %c0_i32_1 = arith.constant 0 : i32
    return %arg1, %c0_i32, %c0_i32_0 : i32, i32, i32
  }
  func.func @transform_6(%arg0: i32, %arg1: i32) -> (i32, i32, i32) {
    %c0_i32 = arith.constant 0 : i32
    %c0_i32_0 = arith.constant 0 : i32
    %c0_i32_1 = arith.constant 0 : i32
    return %arg1, %c0_i32, %c0_i32_0 : i32, i32, i32
  }
  func.func @transform_7(%arg0: i32, %arg1: i32) -> (i32, i32, i32) {
    %c0_i32 = arith.constant 0 : i32
    %c0_i32_0 = arith.constant 0 : i32
    %c0_i32_1 = arith.constant 0 : i32
    return %arg1, %c0_i32, %c0_i32_0 : i32, i32, i32
  }
  func.func @transform_8(%arg0: i32, %arg1: i32) -> (i32, i32) {
    %c0_i32 = arith.constant 0 : i32
    %c0_i32_0 = arith.constant 0 : i32
    %c0_i32_1 = arith.constant 0 : i32
    return %c0_i32, %c0_i32_0 : i32, i32
  }
  func.func @transform_9(%arg0: i32, %arg1: i32) -> (i32, i32, i32) {
    %c0_i32 = arith.constant 0 : i32
    %c0_i32_0 = arith.constant 0 : i32
    %c0_i32_1 = arith.constant 0 : i32
    return %arg0, %c0_i32, %c0_i32_0 : i32, i32, i32
  }
}

</mosaic_0001>

<bundles_post_ra>
// kernel: tpu_custom_call.1
= control target key start
LH: loop header
LB: loop body
LE: loop exit
PB: predicated region body
PF: predicated region fallthrough
CT: control target
= control target key end

     0   :  { %s3618_s30 = smov 0   ;;  %s3620_s10 = smov 0   ;;  %s5110_s0 = inlined_call_operand.vmem [shape: f32[2,256,32], index: 0, kind: input, shape index: {}]   ;;  %s5111_s1 = inlined_call_operand.vmem [shape: f32[8,32,4], index: 1, kind: input, shape index: {}]   ;;  %s5112_s2 = inlined_call_operand.vmem [shape: f32[8,32,4], index: 2, kind: input, shape index: {}]   ;;  %s5113_s3 = inlined_call_operand.vmem [shape: f32[8,32,4], index: 3, kind: input, shape index: {}]   ;;  %s5114_s4 = inlined_call_operand.vmem [shape: f32[8,1,4], index: 4, kind: input, shape index: {}]   ;;  %s5115_s5 = inlined_call_operand.vmem [shape: f32[8,1,4], index: 5, kind: input, shape index: {}]   ;;  %s5116_s6 = inlined_call_operand.vmem [shape: f32[8,1,4], index: 6, kind: input, shape index: {}]   ;;  %s5117_s7 = inlined_call_operand.vmem [shape: f32[8,4,32], index: 7, kind: input, shape index: {}]   ;;  %s5118_s8 = inlined_call_operand.vmem [shape: f32[1,32], index: 8, kind: input, shape index: {}]   ;;  %s5119_s9 = inlined_call_operand.vmem [shape: f32[2,256,32], index: 9, kind: output, shape index: {}]  }
   0x1   :  { %5195 = sst [smem:[#allocation67_spill]] %s5110_s0  ;;  %s3622_s11 = smov 0  }
   0x2   :  { %5196 = sst [smem:[#allocation68_spill]] %s5111_s1  ;;  %s3624_s12 = smov 0  }
   0x3   :  { %5197 = sst [smem:[#allocation69_spill]] %s5112_s2  ;;  %s3626_s13 = smov 0  }
   0x4 LB: > { %5198 = sst [smem:[#allocation3_spill]] %s3557_s11  ;;  %s28_s14 = sadd.s32 1, %s3557_s11  ;;  %s3565_s13 = sphi %s3626_s13, %s19_s13   ;;  %s3561_s12 = sphi %s3624_s12, %s5372_s12   ;;  %s3557_s11 = sphi %s3622_s11, %s5371_s11   ;;  %s3553_s10 = sphi %s3620_s10, %s5370_s10   ;;  %s3549_s30 = sphi %s3618_s30, %s5369_s30  }
   0x5   : > { %5199 = sst [smem:[#allocation4_spill]] %s3561_s12  ;;  %s31_s15 = sadd.s32 1, %s3561_s12 }
   0x6   : > { %p29_p0 = scmp.ge.s32.totalorder %s28_s14, 8  ;;  %p2807_p1 = scmp.ge.s32.totalorder %s3565_s13, 1 }
   0x7   : > { %p362_p2 = scmp.lt.s32.totalorder %s3565_s13, 17 }
   0x8   : > { %s5374_s14 = smov (%p29_p0, %s28_s14), 0  ;;  %s5376_s15 = smov (!%p29_p0, %s31_s15), %s3561_s12 }
   0x9   : > { %5200 = sst [smem:[#allocation5_spill]] %s5374_s14  ;;  %p363_p3 = pnand %p2807_p1, %p362_p2 }
   0xa   : > { %p33_p4 = scmp.ge.s32.totalorder %s5376_s15, 2 }
   0xb   : > { %366 = sbr.rel (%p363_p3) target bundleno = 1542 (0x606), region = 56 }
   0xc   : > { %s5378_s15 = smov (%p33_p4, %s5376_s15), 0 }
   0xd   : > { %5201 = sst [smem:[#allocation6_spill]] %s5378_s15 }
  0x12   : > { %p426_p5 = scmp.lt.s32.totalorder %s3553_s10, 1  ;;  %p431_p6 = scmp.lt.s32.totalorder %s3549_s30, 7 }
  0x13   : > { %s5202_s0 = sld [smem:[#allocation67_spill]]  ;;  %s5203_s1 = sld [smem:[#allocation68_spill]] }
  0x14   : > { %s5380_s10 = smov (!%p426_p5, %s3553_s10), 1  ;;  %s5204_s2 = sld [smem:[#allocation69_spill]] }
  0x15   : > { %s3652_s16 = scalar_select %p431_p6, %s3549_s30, 7 }
  0x16   : > { %s2907_s17 = sshll.u32 %s5380_s10, 8  ;;  %p2819_p7 = scmp.ne.s32.totalorder %s3549_s30, 0 }
  0x17   : > { %s2908_s21 = sshll.u32 %s3652_s16, 5  ;;  %s448_s19 = scalar_lea.vmem %s5114_s4, %s3652_s16  ;;  %vm469_vm0 = vcmask (!%p2819_p7), 261120   ;;  %v3567_v0 = vmov (!%p2819_p7), 0.0  }
  0x18   : > { %s3673_s10 = scalar_lea.vmem %s5113_s3, %s2908_s21  ;;  %s451_s22 = scalar_lea.vmem %s5115_s5, %s3652_s16  ;;  %470 = vst.msk [vmem:[#allocation2] sm:$0xff] (!%p2819_p7), %vm469_vm0, %v3567_v0  ;;  %471 = vst.msk [vmem:[#allocation2 + $0x8] sm:$0xff] (!%p2819_p7), %vm469_vm0, %v3567_v0 }
  0x19   : > { %s3657_s20 = scalar_lea.vmem %s5202_s0, %s2907_s17  ;;  %s3663_s24 = scalar_lea.vmem %s5203_s1, %s2908_s21  ;;  %472 = vst.msk [vmem:[#allocation2 + $0x10] sm:$0xff] (!%p2819_p7), %vm469_vm0, %v3567_v0  ;;  %473 = vst.msk [vmem:[#allocation2 + $0x18] sm:$0xff] (!%p2819_p7), %vm469_vm0, %v3567_v0 }
  0x1a   : > { %s3668_s27 = scalar_lea.vmem %s5204_s2, %s2908_s21  ;;  %s454_s12 = scalar_lea.vmem %s5116_s6, %s3652_s16  ;;  %474 = vst.msk [vmem:[#allocation2 + $0x20] sm:$0xff] (!%p2819_p7), %vm469_vm0, %v3567_v0  ;;  %475 = vst.msk [vmem:[#allocation2 + $0x28] sm:$0xff] (!%p2819_p7), %vm469_vm0, %v3567_v0 }
  0x1b   : > { %s2816_s25 = sshll.u32 %s3652_s16, 2  ;;  %s3691_s11 = scalar_lea.vmem %s5119_s9, %s2907_s17  ;;  %476 = vst.msk [vmem:[#allocation2 + $0x30] sm:$0xff] (!%p2819_p7), %vm469_vm0, %v3567_v0  ;;  %477 = vst.msk [vmem:[#allocation2 + $0x38] sm:$0xff] (!%p2819_p7), %vm469_vm0, %v3567_v0 }
  0x1c   : > { %s3696_s29 = scalar_lea.vmem %s5117_s7, %s2816_s25  ;;  %468 = sbr.rel (%p2819_p7) target bundleno = 40 (0x28), region = 60  ;;  %478 = vst.msk [vmem:[#allocation2 + $0x40] sm:$0xff] (!%p2819_p7), %vm469_vm0, %v3567_v0  ;;  %479 = vst.msk [vmem:[#allocation2 + $0x48] sm:$0xff] (!%p2819_p7), %vm469_vm0, %v3567_v0 }
  0x1d   : > { %480 = vst.msk [vmem:[#allocation2 + $0x50] sm:$0xff] (!%p2819_p7), %vm469_vm0, %v3567_v0  ;;  %481 = vst.msk [vmem:[#allocation2 + $0x58] sm:$0xff] (!%p2819_p7), %vm469_vm0, %v3567_v0 }
  0x1e   : > { %482 = vst.msk [vmem:[#allocation2 + $0x60] sm:$0xff] (!%p2819_p7), %vm469_vm0, %v3567_v0  ;;  %483 = vst.msk [vmem:[#allocation2 + $0x68] sm:$0xff] (!%p2819_p7), %vm469_vm0, %v3567_v0 }
  0x1f   : > { %484 = vst.msk [vmem:[#allocation2 + $0x70] sm:$0xff] (!%p2819_p7), %vm469_vm0, %v3567_v0  ;;  %485 = vst.msk [vmem:[#allocation2 + $0x78] sm:$0xff] (!%p2819_p7), %vm469_vm0, %v3567_v0 }
  0x20   : > { %486 = vst.msk [vmem:[#allocation2 + $0x80] sm:$0xff] (!%p2819_p7), %vm469_vm0, %v3567_v0  ;;  %487 = vst.msk [vmem:[#allocation2 + $0x88] sm:$0xff] (!%p2819_p7), %vm469_vm0, %v3567_v0 }
  0x21   : > { %488 = vst.msk [vmem:[#allocation2 + $0x90] sm:$0xff] (!%p2819_p7), %vm469_vm0, %v3567_v0  ;;  %489 = vst.msk [vmem:[#allocation2 + $0x98] sm:$0xff] (!%p2819_p7), %vm469_vm0, %v3567_v0 }
  0x22   : > { %490 = vst.msk [vmem:[#allocation2 + $0xa0] sm:$0xff] (!%p2819_p7), %vm469_vm0, %v3567_v0  ;;  %491 = vst.msk [vmem:[#allocation2 + $0xa8] sm:$0xff] (!%p2819_p7), %vm469_vm0, %v3567_v0 }
  0x23   : > { %492 = vst.msk [vmem:[#allocation2 + $0xb0] sm:$0xff] %vm469_vm0, %v3567_v0  ;;  %493 = vst.msk [vmem:[#allocation2 + $0xb8] sm:$0xff] %vm469_vm0, %v3567_v0 }
  0x24   : > { %494 = vst.msk [vmem:[#allocation2 + $0xc0] sm:$0xff] %vm469_vm0, %v3567_v0  ;;  %495 = vst.msk [vmem:[#allocation2 + $0xc8] sm:$0xff] %vm469_vm0, %v3567_v0 }
  0x25   : > { %496 = vst.msk [vmem:[#allocation2 + $0xd0] sm:$0xff] %vm469_vm0, %v3567_v0  ;;  %497 = vst.msk [vmem:[#allocation2 + $0xd8] sm:$0xff] %vm469_vm0, %v3567_v0 }
  0x26   : > { %498 = vst.msk [vmem:[#allocation2 + $0xe0] sm:$0xff] %vm469_vm0, %v3567_v0  ;;  %499 = vst.msk [vmem:[#allocation2 + $0xe8] sm:$0xff] %vm469_vm0, %v3567_v0 }
  0x27   : > { %500 = vst.msk [vmem:[#allocation2 + $0xf0] sm:$0xff] %vm469_vm0, %v3567_v0  ;;  %501 = vst.msk [vmem:[#allocation2 + $0xf8] sm:$0xff] %vm469_vm0, %v3567_v0 }
  0x28 PF: > { %v773_v1 = vld [vmem:[%s3668_s27] sm:$0xff]  ;;  %v774_v2 = vld [vmem:[%s3668_s27 + $0x8] sm:$0xff]  ;;  %v775_v3 = vld [vmem:[%s3668_s27 + $0x10] sm:$0xff]  ;;  %vm563_vm1 = vcmask 261120   ;;  %vm1153_vm2 = vcmask 31744   ;;  %vm2294_vm3 = vcmask 1041408  }
  0x29   : > { %v777_v4 = vpack.c.bf16 %v774_v2, %v773_v1  ;;  %v776_v5 = vld [vmem:[%s3668_s27 + $0x18] sm:$0xff]  ;;  %v3736_v6 = vld [vmem:[%s3657_s20] sm:$0xff]  ;;  %v3739_v7 = vld [vmem:[%s3657_s20 + $0x8] sm:$0xff]  ;;  %p2903_p8 = scmp.ne.s32.totalorder %s3549_s30, 7 }
  0x2a   : > { %5205 = vst [vmem:[#allocation7_spill] sm:$0xff] %v3736_v6  ;;  %5206 = vst [vmem:[#allocation8_spill] sm:$0xff] %v3739_v7  ;;  %v778_v8 = vpack.c.bf16 %v776_v5, %v775_v3  ;;  %v3743_v9 = vpack.c.bf16 %v3739_v7, %v3736_v6  ;;  %v3748_v10 = vld [vmem:[%s3657_s20 + $0x10] sm:$0xff]  ;;  %v3751_v11 = vld [vmem:[%s3657_s20 + $0x18] sm:$0xff] }
  0x2b   : > { %3179 = vmatprep.subr.bf16.mxu1 %v777_v4  ;;  %5207 = vst [vmem:[#allocation9_spill] sm:$0xff] %v3748_v10  ;;  %5208 = vst [vmem:[#allocation10_spill] sm:$0xff] %v3751_v11  ;;  %v3754_v12 = vld [vmem:[%s3657_s20 + $0x20] sm:$0xff]  ;;  %v3757_v13 = vld [vmem:[%s3657_s20 + $0x28] sm:$0xff]  ;;  %v3763_v14 = vpack.c.bf16 %v3751_v11, %v3748_v10 }
  0x2c   : > { %3180 = vmatpush3.bf16.msra.mxu1 %v777_v4  ;;  %3183 = vmatprep.mubr.msk.bf16.mxu1 %vm563_vm1, %v3743_v9  ;;  %5209 = vst [vmem:[#allocation11_spill] sm:$0xff] %v3754_v12  ;;  %5210 = vst [vmem:[#allocation12_spill] sm:$0xff] %v3757_v13  ;;  %v3767_v15 = vpack.c.bf16 %v3757_v13, %v3754_v12  ;;  %v3772_v16 = vld [vmem:[%s3657_s20 + $0x30] sm:$0xff]  ;;  %v3775_v17 = vld [vmem:[%s3657_s20 + $0x38] sm:$0xff] }
  0x2d   : > { %3181 = vmatprep.subr.bf16.mxu1 %v778_v8  ;;  %3147 = vmatprep.mubr.msk.bf16.mxu0 %vm563_vm1, %v3743_v9  ;;  %5211 = vst [vmem:[#allocation13_spill] sm:$0xff] %v3772_v16  ;;  %5212 = vst [vmem:[#allocation14_spill] sm:$0xff] %v3775_v17  ;;  %v550_v18 = vld [vmem:[%s3663_s24] sm:$0xff]  ;;  %v551_v19 = vld [vmem:[%s3663_s24 + $0x8] sm:$0xff]  ;;  %v3791_v26 = vpack.c.bf16 %v3775_v17, %v3772_v16 }
  0x2e   : > { %v552_v20 = vld [vmem:[%s3663_s24 + $0x10] sm:$0xff]  ;;  %v3783_v21 = vld [vmem:[%s3657_s20 + $0x40] sm:$0xff]  ;;  %v3786_v22 = vld [vmem:[%s3657_s20 + $0x48] sm:$0xff]  ;;  %v554_v23 = vpack.c.bf16 %v551_v19, %v550_v18 }
  0x2f   : > { %5213 = vst [vmem:[#allocation15_spill] sm:$0xff] %v3783_v21  ;;  %5214 = vst [vmem:[#allocation16_spill] sm:$0xff] %v3786_v22  ;;  %v553_v24 = vld [vmem:[%s3663_s24 + $0x18] sm:$0xff]  ;;  %v3795_v27 = vpack.c.bf16 %v3786_v22, %v3783_v21  ;;  %v3802_v28 = vld [vmem:[%s3657_s20 + $0x50] sm:$0xff] }
  0x30   : > { %3182 = vmatpush3.bf16.msra.mxu1 %v778_v8  ;;  %v555_v25 = vpack.c.bf16 %v553_v24, %v552_v20  ;;  %3143 = vmatprep.subr.bf16.mxu0 %v554_v23  ;;  %5215 = vst [vmem:[#allocation17_spill] sm:$0xff] %v3802_v28  ;;  %v3805_v29 = vld [vmem:[%s3657_s20 + $0x58] sm:$0xff]  ;;  %v3808_v30 = vld [vmem:[%s3657_s20 + $0x60] sm:$0xff]  ;;  %v3811_v31 = vld [vmem:[%s3657_s20 + $0x68] sm:$0xff] }
  0x31   : > { %3144 = vmatpush3.bf16.msra.mxu0 %v554_v23  ;;  %5216 = vst [vmem:[#allocation18_spill] sm:$0xff] %v3805_v29  ;;  %5217 = vst [vmem:[#allocation19_spill] sm:$0xff] %v3808_v30  ;;  %v3815_v32 = vpack.c.bf16 %v3805_v29, %v3802_v28  ;;  %v3821_v33 = vpack.c.bf16 %v3811_v31, %v3808_v30  ;;  %v3830_v34 = vld [vmem:[%s3657_s20 + $0x70] sm:$0xff]  ;;  %v3833_v35 = vld [vmem:[%s3657_s20 + $0x78] sm:$0xff] }
  0x32   : > { %3145 = vmatprep.subr.bf16.mxu0 %v555_v25  ;;  %5218 = vst [vmem:[#allocation20_spill] sm:$0xff] %v3811_v31  ;;  %5219 = vst [vmem:[#allocation21_spill] sm:$0xff] %v3830_v34  ;;  %v3836_v36 = vld [vmem:[%s3657_s20 + $0x80] sm:$0xff]  ;;  %v3839_v37 = vld [vmem:[%s3657_s20 + $0x88] sm:$0xff]  ;;  %v3843_v38 = vpack.c.bf16 %v3833_v35, %v3830_v34 }
  0x33   : > { %3184 = vmatmul.mubr.msk.bf16.vlgmr.msra.gmra.mrb[0].mxu1 %vm563_vm1, %v3763_v14  ;;  %5220 = vst [vmem:[#allocation22_spill] sm:$0xff] %v3833_v35  ;;  %5221 = vst [vmem:[#allocation23_spill] sm:$0xff] %v3836_v36  ;;  %v3849_v39 = vpack.c.bf16 %v3839_v37, %v3836_v36  ;;  %v3858_v40 = vld [vmem:[%s3657_s20 + $0x90] sm:$0xff]  ;;  %v3861_v41 = vld [vmem:[%s3657_s20 + $0x98] sm:$0xff] }
  0x34   : > { %3187 = vmatprep.mubr.msk.bf16.mxu1 %vm563_vm1, %v3767_v15  ;;  %5222 = vst [vmem:[#allocation24_spill] sm:$0xff] %v3839_v37  ;;  %5223 = vst [vmem:[#allocation25_spill] sm:$0xff] %v3858_v40  ;;  %v3864_v42 = vld [vmem:[%s3657_s20 + $0xa0] sm:$0xff]  ;;  %v3867_v43 = vld [vmem:[%s3657_s20 + $0xa8] sm:$0xff]  ;;  %v3871_v44 = vpack.c.bf16 %v3861_v41, %v3858_v40 }
  0x35   : > { %3146 = vmatpush3.bf16.msra.mxu0 %v555_v25  ;;  %5224 = vst [vmem:[#allocation26_spill] sm:$0xff] %v3861_v41  ;;  %5225 = vst [vmem:[#allocation27_spill] sm:$0xff] %v3864_v42  ;;  %v3877_v45 = vpack.c.bf16 %v3867_v43, %v3864_v42  ;;  %v3886_v46 = vld [vmem:[%s3657_s20 + $0xb0] sm:$0xff]  ;;  %v3889_v47 = vld [vmem:[%s3657_s20 + $0xb8] sm:$0xff] }
  0x36   : > { %5226 = vst [vmem:[#allocation28_spill] sm:$0xff] %v3867_v43  ;;  %5227 = vst [vmem:[#allocation29_spill] sm:$0xff] %v3886_v46  ;;  %v3892_v48 = vld [vmem:[%s3657_s20 + $0xc0] sm:$0xff]  ;;  %v3895_v49 = vld [vmem:[%s3657_s20 + $0xc8] sm:$0xff]  ;;  %v3899_v50 = vpack.c.bf16 %v3889_v47, %v3886_v46 }
  0x37   : > { %5228 = vst [vmem:[#allocation30_spill] sm:$0xff] %v3889_v47  ;;  %5229 = vst [vmem:[#allocation31_spill] sm:$0xff] %v3892_v48  ;;  %v3905_v51 = vpack.c.bf16 %v3895_v49, %v3892_v48  ;;  %v3914_v52 = vld [vmem:[%s3657_s20 + $0xd0] sm:$0xff]  ;;  %v3917_v53 = vld [vmem:[%s3657_s20 + $0xd8] sm:$0xff] }
  0x38   : > { %3148 = vmatmul.mubr.msk.bf16.vlgmr.msra.gmra.mrb[0].mxu0 %vm563_vm1, %v3763_v14  ;;  %5230 = vst [vmem:[#allocation32_spill] sm:$0xff] %v3895_v49  ;;  %5231 = vst [vmem:[#allocation33_spill] sm:$0xff] %v3914_v52  ;;  %v3920_v54 = vld [vmem:[%s3657_s20 + $0xe0] sm:$0xff]  ;;  %v3923_v55 = vld [vmem:[%s3657_s20 + $0xe8] sm:$0xff]  ;;  %v3927_v56 = vpack.c.bf16 %v3917_v53, %v3914_v52 }
  0x39   : > { %3151 = vmatprep.mubr.msk.bf16.mxu0 %vm563_vm1, %v3767_v15  ;;  %5232 = vst [vmem:[#allocation34_spill] sm:$0xff] %v3917_v53  ;;  %5233 = vst [vmem:[#allocation35_spill] sm:$0xff] %v3920_v54  ;;  %v3933_v57 = vpack.c.bf16 %v3923_v55, %v3920_v54  ;;  %v3942_v58 = vld [vmem:[%s3657_s20 + $0xf0] sm:$0xff]  ;;  %v3945_v59 = vld [vmem:[%s3657_s20 + $0xf8] sm:$0xff] }
  0x3a   : > { %5234 = vst [vmem:[#allocation36_spill] sm:$0xff] %v3923_v55  ;;  %5235 = vst [vmem:[#allocation37_spill] sm:$0xff] %v3942_v58  ;;  %v3949_v60 = vpack.c.bf16 %v3945_v59, %v3942_v58  ;;  %v3970_v62 = vld [vmem:[%s451_s22] ss:$0 sm:$0xff] }
  0x3b   : > { %3188 = vmatmul.mubr.msk.bf16.gmra.mrb[4].mxu1 %vm563_vm1, %v3791_v26  ;;  %5236 = vst [vmem:[#allocation38_spill] sm:$0xff] %v3945_v59  ;;  %v3993_v23 = vld [vmem:[%s448_s19] ss:$0 sm:$0xff] }
  0x3c   : > { %3191 = vmatprep.mubr.msk.bf16.mxu1 %vm563_vm1, %v3795_v27 }
  0x40   : > { %3152 = vmatmul.mubr.msk.bf16.gmra.mrb[4].mxu0 %vm563_vm1, %v3791_v26 }
  0x41   : > { %3155 = vmatprep.mubr.msk.bf16.mxu0 %vm563_vm1, %v3795_v27 }
  0x43   : > { %3192 = vmatmul.mubr.msk.bf16.gmra.mrb[8].mxu1 %vm563_vm1, %v3815_v32 }
  0x44   : > { %3195 = vmatprep.mubr.msk.bf16.mxu1 %vm563_vm1, %v3821_v33 }
  0x48   : > { %3156 = vmatmul.mubr.msk.bf16.gmra.mrb[8].mxu0 %vm563_vm1, %v3815_v32 }
  0x49   : > { %3159 = vmatprep.mubr.msk.bf16.mxu0 %vm563_vm1, %v3821_v33 }
  0x4b   : > { %3196 = vmatmul.mubr.msk.bf16.gmra.mrb[12].mxu1 %vm563_vm1, %v3843_v38 }
  0x4c   : > { %3199 = vmatprep.mubr.msk.bf16.mxu1 %vm563_vm1, %v3849_v39 }
  0x50   : > { %3160 = vmatmul.mubr.msk.bf16.gmra.mrb[12].mxu0 %vm563_vm1, %v3843_v38 }
  0x51   : > { %3163 = vmatprep.mubr.msk.bf16.mxu0 %vm563_vm1, %v3849_v39 }
  0x53   : > { %3200 = vmatmul.mubr.msk.bf16.gmra.mrb[16].mxu1 %vm563_vm1, %v3871_v44 }
  0x54   : > { %3203 = vmatprep.mubr.msk.bf16.mxu1 %vm563_vm1, %v3877_v45 }
  0x58   : > { %3164 = vmatmul.mubr.msk.bf16.gmra.mrb[16].mxu0 %vm563_vm1, %v3871_v44 }
  0x59   : > { %3167 = vmatprep.mubr.msk.bf16.mxu0 %vm563_vm1, %v3877_v45 }
  0x5b   : > { %3204 = vmatmul.mubr.msk.bf16.gmra.mrb[20].mxu1 %vm563_vm1, %v3899_v50 }
  0x5c   : > { %3207 = vmatprep.mubr.msk.bf16.mxu1 %vm563_vm1, %v3905_v51 }
  0x60   : > { %3168 = vmatmul.mubr.msk.bf16.gmra.mrb[20].mxu0 %vm563_vm1, %v3899_v50 }
  0x61   : > { %3171 = vmatprep.mubr.msk.bf16.mxu0 %vm563_vm1, %v3905_v51 }
  0x63   : > { %3208 = vmatmul.mubr.msk.bf16.gmra.mrb[24].mxu1 %vm563_vm1, %v3927_v56 }
  0x64   : > { %3211 = vmatprep.mubr.msk.bf16.mxu1 %vm563_vm1, %v3933_v57 }
  0x68   : > { %3172 = vmatmul.mubr.msk.bf16.gmra.mrb[24].mxu0 %vm563_vm1, %v3927_v56 }
  0x69   : > { %3175 = vmatprep.mubr.msk.bf16.mxu0 %vm563_vm1, %v3933_v57 }
  0x6b   : > { %3212 = vmatmul.mubr.msk.bf16.gmra.mrb[28].mxu1 %vm563_vm1, %v3949_v60 }
  0x70   : > { %3176 = vmatmul.mubr.msk.bf16.gmra.mrb[28].mxu0 %vm563_vm1, %v3949_v60 }
  0x71   : > { %3219 = vmatprep.mubr.msk.bf16.mxu0 %vm563_vm1, %v3743_v9 }
 0x106   : > { %v3185_v61 = vpop.f32.mrb[0].mxu1 }
 0x107   : > { %v820_v63 = vpop.f32.mrb[1].mxu1  ;;  %v3973_v1 = vadd.f32 %v3185_v61, %v3970_v62 }
 0x108   : > { %v3186_v0 = vpop.f32.mrb[2].mxu1  ;;  %v3979_v4 = vadd.f32 %v3970_v62, %v820_v63 }
 0x109   : > { %v3976_v2 = vadd.f32 %v3186_v0, %v3970_v62  ;;  %v823_v3 = vpop.f32.mrb[3].mxu1 }
 0x10a   : > { %v3982_v5 = vadd.f32 %v3970_v62, %v823_v3 }
 0x10b   : > { %v3149_v3 = vpop.f32.mrb[0].mxu0 }
 0x10c   : > { %v655_v9 = vadd.f32 %v3149_v3, %v3993_v23  ;;  %v646_v59 = vpop.f32.mrb[1].mxu0 }
 0x10d   : > { %v3150_v58 = vpop.f32.mrb[2].mxu0 }
 0x10e   : > { %v3189_v18 = vpop.f32.mrb[4].mxu1  ;;  %v658_v55 = vadd.f32 %v3150_v58, %v3993_v23 }
 0x10f   : > { %v836_v19 = vpop.f32.mrb[5].mxu1  ;;  %v3996_v24 = vadd.f32 %v3189_v18, %v3970_v62 }
 0x110   : > { %v3190_v20 = vpop.f32.mrb[6].mxu1  ;;  %v4002_v63 = vadd.f32 %v3970_v62, %v836_v19  ;;  %v649_v19 = vpop.f32.mrb[3].mxu0  ;;  %v4015_v52 = vpack.c.bf16 %v658_v55, %v655_v9 }
 0x111   : > { %v3999_v25 = vadd.f32 %v3190_v20, %v3970_v62  ;;  %v839_v61 = vpop.f32.mrb[7].mxu1  ;;  %v647_v20 = vadd.f32 %v3993_v23, %v646_v59 }
 0x112   : > { %v4005_v0 = vadd.f32 %v3970_v62, %v839_v61  ;;  %v650_v61 = vadd.f32 %v3993_v23, %v649_v19 }
 0x113   : > { %v3153_v55 = vpop.f32.mrb[4].mxu0 }
 0x114   : > { %v4017_v8 = vpack.c.bf16 %v650_v61, %v647_v20  ;;  %v662_v20 = vpop.f32.mrb[5].mxu0 }
 0x115   : > { %v663_v19 = vadd.f32 %v3993_v23, %v662_v20 }
 0x116   : > { %v3193_v54 = vpop.f32.mrb[8].mxu1  ;;  %2982 = vmatprep.mubr.msk.bf16.mxu1 %vm1153_vm2, %v4017_v8 }
 0x117   : > { %v852_v53 = vpop.f32.mrb[9].mxu1  ;;  %v4020_v3 = vadd.f32 %v3193_v54, %v3970_v62  ;;  %v671_v54 = vadd.f32 %v3153_v55, %v3993_v23 }
 0x118   : > { %v3194_v49 = vpop.f32.mrb[10].mxu1  ;;  %v4026_v58 = vadd.f32 %v3970_v62, %v852_v53  ;;  %v3154_v53 = vpop.f32.mrb[6].mxu0 }
 0x119   : > { %v4023_v18 = vadd.f32 %v3194_v49, %v3970_v62  ;;  %v855_v59 = vpop.f32.mrb[11].mxu1  ;;  %v674_v61 = vadd.f32 %v3154_v53, %v3993_v23 }
 0x11a   : > { %v4029_v48 = vadd.f32 %v3970_v62, %v855_v59  ;;  %v665_v59 = vpop.f32.mrb[7].mxu0 }
 0x11b   : > { %v666_v46 = vadd.f32 %v3993_v23, %v665_v59  ;;  %v4041_v42 = vpack.c.bf16 %v674_v61, %v671_v54  ;;  %v3157_v59 = vpop.f32.mrb[8].mxu0 }
 0x11d   : > { %v4043_v9 = vpack.c.bf16 %v666_v46, %v663_v19  ;;  %v687_v46 = vadd.f32 %v3157_v59, %v3993_v23  ;;  %v678_v19 = vpop.f32.mrb[9].mxu0 }
 0x11e   : > { %v3197_v47 = vpop.f32.mrb[12].mxu1  ;;  %v3158_v61 = vpop.f32.mrb[10].mxu0 }
 0x11f   : > { %v868_v43 = vpop.f32.mrb[13].mxu1  ;;  %v4046_v55 = vadd.f32 %v3197_v47, %v3970_v62  ;;  %v690_v37 = vadd.f32 %v3158_v61, %v3993_v23 }
 0x120   : > { %v3198_v41 = vpop.f32.mrb[14].mxu1  ;;  %v4052_v40 = vadd.f32 %v3970_v62, %v868_v43  ;;  %v681_v43 = vpop.f32.mrb[11].mxu0 }
 0x121   : > { %v4049_v49 = vadd.f32 %v3198_v41, %v3970_v62  ;;  %v871_v20 = vpop.f32.mrb[15].mxu1  ;;  %v679_v41 = vadd.f32 %v3993_v23, %v678_v19  ;;  %v4065_v34 = vpack.c.bf16 %v690_v37, %v687_v46 }
 0x122   : > { %v4055_v53 = vadd.f32 %v3970_v62, %v871_v20  ;;  %v682_v20 = vadd.f32 %v3993_v23, %v681_v43 }
 0x123   : > { %v3161_v61 = vpop.f32.mrb[12].mxu0 }
 0x124   : > { %v4067_v54 = vpack.c.bf16 %v682_v20, %v679_v41  ;;  %v703_v22 = vadd.f32 %v3161_v61, %v3993_v23  ;;  %v694_v43 = vpop.f32.mrb[13].mxu0 }
 0x125   : > { %v695_v37 = vadd.f32 %v3993_v23, %v694_v43  ;;  %v3162_v46 = vpop.f32.mrb[14].mxu0 }
 0x126   : > { %v3201_v36 = vpop.f32.mrb[16].mxu1  ;;  %v706_v41 = vadd.f32 %v3162_v46, %v3993_v23  ;;  %v697_v20 = vpop.f32.mrb[15].mxu0 }
 0x127   : > { %v884_v35 = vpop.f32.mrb[17].mxu1  ;;  %v893_v59 = vadd.f32 %v3201_v36, %v3970_v62 }
 0x128   : > { %v3202_v31 = vpop.f32.mrb[18].mxu1  ;;  %v885_v19 = vadd.f32 %v3970_v62, %v884_v35 }
 0x129   : > { %v896_v30 = vadd.f32 %v3202_v31, %v3970_v62  ;;  %v887_v47 = vpop.f32.mrb[19].mxu1  ;;  %v5237_v31 = vpack.c.bf16 %v3982_v5, %v3979_v4 }
 0x12a   : > { %v888_v29 = vadd.f32 %v3970_v62, %v887_v47 }
 0x12b   : > { %v1146_v28 = vpack.c.bf16 %v896_v30, %v893_v59  ;;  %v1203_v35 = vsel %vm1153_vm2, %v5237_v31, 0  ;;  %v698_v30 = vadd.f32 %v3993_v23, %v697_v20  ;;  %v4083_v59 = vpack.c.bf16 %v706_v41, %v703_v22  ;;  %v3165_v46 = vpop.f32.mrb[16].mxu0 }
 0x12c   : > { %v1145_v21 = vpack.c.bf16 %v888_v29, %v885_v19  ;;  %v719_v31 = vadd.f32 %v3165_v46, %v3993_v23 }
 0x12e   : > { %3285 = vmatprep.subr.msk.bf16.mxu1 %vm1153_vm2, %v1145_v21  ;;  %v3205_v36 = vpop.f32.mrb[20].mxu1  ;;  %v4087_v21 = vpack.c.bf16 %v698_v30, %v695_v37  ;;  %v5238_v37 = vpack.c.bf16 %v3976_v2, %v3973_v1 }
 0x12f   : > { %2967 = vmatpush3.bf16.xpose.msra.mxu1 %v1203_v35  ;;  %v909_v47 = vadd.f32 %v3205_v36, %v3970_v62  ;;  %v900_v29 = vpop.f32.mrb[21].mxu1  ;;  %v710_v35 = vpop.f32.mrb[17].mxu0 }
 0x130   : > { %3286 = vmatprep.subr.msk.bf16.mxu1 %vm1153_vm2, %v1146_v28  ;;  %v901_v19 = vadd.f32 %v3970_v62, %v900_v29  ;;  %v3206_v61 = vpop.f32.mrb[22].mxu1  ;;  %v711_v22 = vadd.f32 %v3993_v23, %v710_v35  ;;  %v3166_v41 = vpop.f32.mrb[18].mxu0  ;;  %v1206_v30 = vsel %vm1153_vm2, %v5238_v37, 0 }
 0x131   : > { %v912_v4 = vadd.f32 %v3206_v61, %v3970_v62  ;;  %v903_v5 = vpop.f32.mrb[23].mxu1  ;;  %v722_v28 = vadd.f32 %v3166_v41, %v3993_v23  ;;  %v713_v29 = vpop.f32.mrb[19].mxu0 }
 0x132   : > { %v904_v43 = vadd.f32 %v3970_v62, %v903_v5  ;;  %v714_v5 = vadd.f32 %v3993_v23, %v713_v29 }
 0x133   : > { %v1148_v20 = vpack.c.bf16 %v912_v4, %v909_v47  ;;  %v4100_v46 = vpack.c.bf16 %v722_v28, %v719_v31  ;;  %v3169_v37 = vpop.f32.mrb[20].mxu0 }
 0x134   : > { %v1147_v36 = vpack.c.bf16 %v904_v43, %v901_v19  ;;  %v4104_v35 = vpack.c.bf16 %v714_v5, %v711_v22  ;;  %v5239_v22 = vpack.c.bf16 %v4005_v0, %v4002_v63 }
 0x136   : > { %v3209_v61 = vpop.f32.mrb[24].mxu1  ;;  %v1209_v5 = vsel %vm1153_vm2, %v5239_v22, 0 }
 0x137   : > { %2969 = vmatpush3.bf16.xpose.msra.mxu1 %v1206_v30  ;;  %v925_v47 = vadd.f32 %v3209_v61, %v3970_v62  ;;  %v916_v4 = vpop.f32.mrb[25].mxu1  ;;  %v735_v30 = vadd.f32 %v3169_v37, %v3993_v23  ;;  %v726_v61 = vpop.f32.mrb[21].mxu0 }
 0x138   : > { %3287 = vmatprep.subr.msk.bf16.mxu1 %vm1153_vm2, %v1147_v36  ;;  %v917_v19 = vadd.f32 %v3970_v62, %v916_v4  ;;  %v3210_v43 = vpop.f32.mrb[26].mxu1  ;;  %v727_v31 = vadd.f32 %v3993_v23, %v726_v61  ;;  %v3170_v28 = vpop.f32.mrb[22].mxu0 }
 0x139   : > { %v928_v1 = vadd.f32 %v3210_v43, %v3970_v62  ;;  %v919_v2 = vpop.f32.mrb[27].mxu1  ;;  %v738_v36 = vadd.f32 %v3170_v28, %v3993_v23  ;;  %v729_v4 = vpop.f32.mrb[23].mxu0 }
 0x13a   : > { %v920_v41 = vadd.f32 %v3970_v62, %v919_v2  ;;  %v730_v2 = vadd.f32 %v3993_v23, %v729_v4  ;;  %v5240_v4 = vpack.c.bf16 %v3999_v25, %v3996_v24  ;;  %v5241_v24 = vpack.c.bf16 %v4029_v48, %v4026_v58 }
 0x13b   : > { %v1150_v29 = vpack.c.bf16 %v928_v1, %v925_v47  ;;  %v4117_v37 = vpack.c.bf16 %v738_v36, %v735_v30  ;;  %v3173_v30 = vpop.f32.mrb[24].mxu0 }
 0x13c   : > { %v1149_v17 = vpack.c.bf16 %v920_v41, %v917_v19  ;;  %v1131_v61 = vpack.c.bf16 %v730_v2, %v727_v31  ;;  %v742_v36 = vpop.f32.mrb[25].mxu0  ;;  %v1215_v25 = vsel %vm1153_vm2, %v5241_v24, 0 }
 0x13d   : > { %v743_v31 = vadd.f32 %v3993_v23, %v742_v36  ;;  %v5243_v36 = vpack.c.bf16 %v4055_v53, %v4052_v40 }
 0x13e   : > { %v3213_v43 = vpop.f32.mrb[28].mxu1 }
 0x13f   : > { %2971 = vmatpush3.bf16.xpose.msra.mxu1 %v1209_v5  ;;  %v941_v47 = vadd.f32 %v3213_v43, %v3970_v62  ;;  %v932_v1 = vpop.f32.mrb[29].mxu1  ;;  %v1212_v5 = vsel %vm1153_vm2, %v5240_v4, 0  ;;  %v3174_v43 = vpop.f32.mrb[26].mxu0 }
 0x140   : > { %3288 = vmatprep.subr.msk.bf16.mxu1 %vm1153_vm2, %v1148_v20  ;;  %v933_v19 = vadd.f32 %v3970_v62, %v932_v1  ;;  %v3214_v41 = vpop.f32.mrb[30].mxu1  ;;  %v751_v20 = vadd.f32 %v3173_v30, %v3993_v23  ;;  %v754_v2 = vadd.f32 %v3174_v43, %v3993_v23 }
 0x141   : > { %v944_v28 = vadd.f32 %v3214_v41, %v3970_v62  ;;  %v935_v63 = vpop.f32.mrb[31].mxu1 }
 0x142   : > { %v936_v0 = vadd.f32 %v3970_v62, %v935_v63  ;;  %v745_v62 = vpop.f32.mrb[27].mxu0  ;;  %v1134_v1 = vpack.c.bf16 %v754_v2, %v751_v20  ;;  %v5242_v63 = vpack.c.bf16 %v4023_v18, %v4020_v3  ;;  %v1221_v18 = vsel %vm1153_vm2, %v5243_v36, 0 }
 0x143   : > { %v1152_v22 = vpack.c.bf16 %v944_v28, %v941_v47  ;;  %v746_v47 = vadd.f32 %v3993_v23, %v745_v62  ;;  %v3177_v41 = vpop.f32.mrb[28].mxu0  ;;  %v5244_v3 = vpack.c.bf16 %v4049_v49, %v4046_v55 }
 0x144   : > { %v1151_v16 = vpack.c.bf16 %v936_v0, %v933_v19  ;;  %v758_v28 = vpop.f32.mrb[29].mxu0  ;;  %v1218_v0 = vsel %vm1153_vm2, %v5242_v63, 0 }
 0x145   : > { %v1133_v19 = vpack.c.bf16 %v746_v47, %v743_v31  ;;  %v759_v4 = vadd.f32 %v3993_v23, %v758_v28  ;;  %v1224_v31 = vsel %vm1153_vm2, %v5244_v3, 0 }
 0x147   : > { %2973 = vmatpush3.bf16.xpose.msra.mxu1 %v1212_v5  ;;  %v3178_v5 = vpop.f32.mrb[30].mxu0 }
 0x148   : > { %3289 = vmatprep.subr.msk.bf16.mxu1 %vm1153_vm2, %v1149_v17  ;;  %v767_v17 = vadd.f32 %v3177_v41, %v3993_v23  ;;  %v770_v48 = vadd.f32 %v3178_v5, %v3993_v23  ;;  %v761_v58 = vpop.f32.mrb[31].mxu0 }
 0x149   : > { %v762_v30 = vadd.f32 %v3993_v23, %v761_v58 }
 0x14a   : > { %v1136_v20 = vpack.c.bf16 %v770_v48, %v767_v17 }
 0x14f   : > { %2975 = vmatpush3.bf16.xpose.msra.mxu1 %v1215_v25 }
 0x150   : > { %3290 = vmatprep.subr.msk.bf16.mxu1 %vm1153_vm2, %v1150_v29  ;;  %v1135_v29 = vpack.c.bf16 %v762_v30, %v759_v4 }
 0x157   : > { %2977 = vmatpush3.bf16.xpose.msra.mxu1 %v1218_v0 }
 0x158   : > { %3291 = vmatprep.subr.msk.bf16.mxu1 %vm1153_vm2, %v1151_v16  ;;  %v947_v16 = vld [vmem:[%s3673_s10] sm:$0xff] }
 0x15f   : > { %2979 = vmatpush3.bf16.xpose.msra.mxu1 %v1221_v18 }
 0x160   : > { %3292 = vmatprep.subr.msk.bf16.mxu1 %vm1153_vm2, %v1152_v22 }
 0x167   : > { %2981 = vmatpush3.bf16.xpose.msra.mxu1 %v1224_v31 }
 0x16e   : > { %2983 = vmatmul.mubr.msk.bf16.vlgmr.msra.gmra.mrb[32].mxu1 %vm1153_vm2, %v4017_v8 }
 0x16f   : > { %2984 = vmatprep.mubr.msk.bf16.mxu1 %vm1153_vm2, %v4015_v52 }
 0x176   : > { %2985 = vmatmul.mubr.msk.bf16.gmra.mrb[36].mxu1 %vm1153_vm2, %v4015_v52  ;;  %v950_v52 = vld [vmem:[%s3673_s10 + $0x18] sm:$0xff] }
 0x177   : > { %2986 = vmatprep.mubr.msk.bf16.mxu1 %vm1153_vm2, %v4043_v9 }
 0x17e   : > { %2987 = vmatmul.mubr.msk.bf16.gmra.mrb[40].mxu1 %vm1153_vm2, %v4043_v9 }
 0x17f   : > { %2988 = vmatprep.mubr.msk.bf16.mxu1 %vm1153_vm2, %v4041_v42 }
 0x186   : > { %2989 = vmatmul.mubr.msk.bf16.gmra.mrb[44].mxu1 %vm1153_vm2, %v4041_v42  ;;  %v949_v42 = vld [vmem:[%s3673_s10 + $0x10] sm:$0xff] }
 0x187   : > { %2990 = vmatprep.mubr.msk.bf16.mxu1 %vm1153_vm2, %v4067_v54  ;;  %v952_v8 = vpack.c.bf16 %v950_v52, %v949_v42 }
 0x18e   : > { %2991 = vmatmul.mubr.msk.bf16.gmra.mrb[48].mxu1 %vm1153_vm2, %v4067_v54 }
 0x18f   : > { %2992 = vmatprep.mubr.msk.bf16.mxu1 %vm1153_vm2, %v4065_v34 }
 0x196   : > { %2993 = vmatmul.mubr.msk.bf16.gmra.mrb[52].mxu1 %vm1153_vm2, %v4065_v34  ;;  %v948_v34 = vld [vmem:[%s3673_s10 + $0x8] sm:$0xff] }
 0x197   : > { %2994 = vmatprep.mubr.msk.bf16.mxu1 %vm1153_vm2, %v4087_v21  ;;  %v951_v40 = vpack.c.bf16 %v948_v34, %v947_v16 }
 0x199   : > { %3215 = vmatprep.subr.bf16.mxu0 %v951_v40 }
 0x19a   : > { %3216 = vmatpush3.bf16.msra.mxu0 %v951_v40 }
 0x19b   : > { %3217 = vmatprep.subr.bf16.mxu0 %v952_v8 }
 0x19e   : > { %2995 = vmatmul.mubr.msk.bf16.gmra.mrb[56].mxu1 %vm1153_vm2, %v4087_v21  ;;  %3218 = vmatpush3.bf16.msra.mxu0 %v952_v8 }
 0x19f   : > { %2996 = vmatprep.mubr.msk.bf16.mxu1 %vm1153_vm2, %v4083_v59 }
 0x1a1   : > { %3220 = vmatmul.mubr.msk.bf16.vlgmr.msra.gmra.mrb[32].mxu0 %vm563_vm1, %v3763_v14 }
 0x1a2   : > { %3223 = vmatprep.mubr.msk.bf16.mxu0 %vm563_vm1, %v3767_v15 }
 0x1a6   : > { %2997 = vmatmul.mubr.msk.bf16.gmra.mrb[60].mxu1 %vm1153_vm2, %v4083_v59 }
 0x1a7   : > { %2998 = vmatprep.mubr.msk.bf16.mxu1 %vm1153_vm2, %v4104_v35 }
 0x1a9   : > { %3224 = vmatmul.mubr.msk.bf16.gmra.mrb[36].mxu0 %vm563_vm1, %v3791_v26 }
 0x1aa   : > { %3227 = vmatprep.mubr.msk.bf16.mxu0 %vm563_vm1, %v3795_v27 }
 0x1ae   : > { %2999 = vmatmul.mubr.msk.bf16.gmra.mrb[64].mxu1 %vm1153_vm2, %v4104_v35 }
 0x1af   : > { %3000 = vmatprep.mubr.msk.bf16.mxu1 %vm1153_vm2, %v4100_v46 }
 0x1b1   : > { %3228 = vmatmul.mubr.msk.bf16.gmra.mrb[40].mxu0 %vm563_vm1, %v3815_v32 }
 0x1b2   : > { %3231 = vmatprep.mubr.msk.bf16.mxu0 %vm563_vm1, %v3821_v33 }
 0x1b6   : > { %3001 = vmatmul.mubr.msk.bf16.gmra.mrb[68].mxu1 %vm1153_vm2, %v4100_v46 }
 0x1b7   : > { %3002 = vmatprep.mubr.msk.bf16.mxu1 %vm1153_vm2, %v1131_v61 }
 0x1b9   : > { %3232 = vmatmul.mubr.msk.bf16.gmra.mrb[44].mxu0 %vm563_vm1, %v3843_v38 }
 0x1ba   : > { %3235 = vmatprep.mubr.msk.bf16.mxu0 %vm563_vm1, %v3849_v39 }
 0x1be   : > { %3003 = vmatmul.mubr.msk.bf16.gmra.mrb[72].mxu1 %vm1153_vm2, %v1131_v61 }
 0x1bf   : > { %3004 = vmatprep.mubr.msk.bf16.mxu1 %vm1153_vm2, %v4117_v37 }
 0x1c1   : > { %3236 = vmatmul.mubr.msk.bf16.gmra.mrb[48].mxu0 %vm563_vm1, %v3871_v44 }
 0x1c2   : > { %3239 = vmatprep.mubr.msk.bf16.mxu0 %vm563_vm1, %v3877_v45 }
 0x1c6   : > { %3005 = vmatmul.mubr.msk.bf16.gmra.mrb[76].mxu1 %vm1153_vm2, %v4117_v37 }
 0x1c7   : > { %3006 = vmatprep.mubr.msk.bf16.mxu1 %vm1153_vm2, %v1133_v19 }
 0x1c9   : > { %3240 = vmatmul.mubr.msk.bf16.gmra.mrb[52].mxu0 %vm563_vm1, %v3899_v50 }
 0x1ca   : > { %3243 = vmatprep.mubr.msk.bf16.mxu0 %vm563_vm1, %v3905_v51 }
 0x1ce   : > { %3007 = vmatmul.mubr.msk.bf16.gmra.mrb[80].mxu1 %vm1153_vm2, %v1133_v19 }
 0x1cf   : > { %3008 = vmatprep.mubr.msk.bf16.mxu1 %vm1153_vm2, %v1134_v1 }
 0x1d1   : > { %3244 = vmatmul.mubr.msk.bf16.gmra.mrb[56].mxu0 %vm563_vm1, %v3927_v56 }
 0x1d2   : > { %3247 = vmatprep.mubr.msk.bf16.mxu0 %vm563_vm1, %v3933_v57 }
 0x1d6   : > { %3009 = vmatmul.mubr.msk.bf16.gmra.mrb[84].mxu1 %vm1153_vm2, %v1134_v1 }
 0x1d7   : > { %3010 = vmatprep.mubr.msk.bf16.mxu1 %vm1153_vm2, %v1135_v29 }
 0x1d9   : > { %3248 = vmatmul.mubr.msk.bf16.gmra.mrb[60].mxu0 %vm563_vm1, %v3949_v60 }
 0x1de   : > { %3011 = vmatmul.mubr.msk.bf16.gmra.mrb[88].mxu1 %vm1153_vm2, %v1135_v29 }
 0x1df   : > { %3012 = vmatprep.mubr.msk.bf16.mxu1 %vm1153_vm2, %v1136_v20 }
 0x1e6   : > { %3013 = vmatmul.mubr.msk.bf16.gmra.mrb[92].mxu1 %vm1153_vm2, %v1136_v20 }
 0x241   : > { %v1284_v14 = vpop.f32.mrb[32].mxu1 }
 0x242   : > { %v4241_v15 = vmul.f32 0.5, %v1284_v14  ;;  %v1286_v26 = vpop.f32.mrb[33].mxu1 }
 0x243   : > { %v4243_v27 = vmul.f32 0.5, %v1286_v26  ;;  %v1288_v32 = vpop.f32.mrb[34].mxu1 }
 0x244   : > { %v1290_v33 = vpop.f32.mrb[35].mxu1  ;;  %v4245_v38 = vmul.f32 0.5, %v1288_v32 }
 0x245   : > { %v4247_v39 = vmul.f32 0.5, %v1290_v33  ;;  %v1507_v44 = vmax.f32 %v4241_v15, %v4243_v27 }
 0x247   : > { %1508 = vmax.xlane.f32.xlu0 %v1507_v44  ;;  %v1510_v50 = vmax.f32 %v4245_v38, %v4247_v39 }
 0x249   : > { %v1294_v45 = vpop.f32.mrb[36].mxu1 }
 0x24a   : > { %v4253_v51 = vmul.f32 0.5, %v1294_v45  ;;  %v1296_v56 = vpop.f32.mrb[37].mxu1 }
 0x24b   : > { %v4255_v57 = vmul.f32 0.5, %v1296_v56  ;;  %1511 = vmax.xlane.f32.xlu0 %v1510_v50  ;;  %v1298_v60 = vpop.f32.mrb[38].mxu1 }
 0x24c   : > { %v1300_v23 = vpop.f32.mrb[39].mxu1  ;;  %v4257_v9 = vmul.f32 0.5, %v1298_v60 }
 0x24d   : > { %v4259_v49 = vmul.f32 0.5, %v1300_v23  ;;  %v1513_v55 = vmax.f32 %v4253_v51, %v4255_v57 }
 0x24f   : > { %1514 = vmax.xlane.f32.xlu1 %v1513_v55  ;;  %v1516_v54 = vmax.f32 %v4257_v9, %v4259_v49 }
 0x251   : > { %v1304_v53 = vpop.f32.mrb[40].mxu1 }
 0x252   : > { %v4265_v59 = vmul.f32 0.5, %v1304_v53  ;;  %v1306_v21 = vpop.f32.mrb[41].mxu1 }
 0x253   : > { %v4267_v46 = vmul.f32 0.5, %v1306_v21  ;;  %1517 = vmax.xlane.f32.xlu1 %v1516_v54  ;;  %v1308_v35 = vpop.f32.mrb[42].mxu1 }
 0x254   : > { %v4269_v37 = vmul.f32 0.5, %v1308_v35  ;;  %v1310_v61 = vpop.f32.mrb[43].mxu1 }
 0x255   : > { %v4271_v22 = vmul.f32 0.5, %v1310_v61  ;;  %v1519_v43 = vmax.f32 %v4265_v59, %v4267_v46 }
 0x257   : > { %1520 = vmax.xlane.f32.xlu0 %v1519_v43  ;;  %v1522_v2 = vmax.f32 %v4269_v37, %v4271_v22 }
 0x259   : > { %1523 = vmax.xlane.f32.xlu1 %v1522_v2  ;;  %v1314_v62 = vpop.f32.mrb[44].mxu1 }
 0x25a   : > { %v4277_v47 = vmul.f32 0.5, %v1314_v62  ;;  %v1316_v1 = vpop.f32.mrb[45].mxu1 }
 0x25b   : > { %v4279_v19 = vmul.f32 0.5, %v1316_v1  ;;  %v1318_v24 = vpop.f32.mrb[46].mxu1 }
 0x25c   : > { %v4281_v25 = vmul.f32 0.5, %v1318_v24  ;;  %v1320_v41 = vpop.f32.mrb[47].mxu1 }
 0x25d   : > { %v4283_v28 = vmul.f32 0.5, %v1320_v41  ;;  %v1525_v17 = vmax.f32 %v4277_v47, %v4279_v19 }
 0x25f   : > { %1526 = vmax.xlane.f32.xlu0 %v1525_v17  ;;  %v1528_v63 = vmax.f32 %v4281_v25, %v4283_v28 }
 0x261   : > { %1529 = vmax.xlane.f32.xlu1 %v1528_v63  ;;  %v1324_v0 = vpop.f32.mrb[48].mxu1 }
 0x262   : > { %v4289_v4 = vmul.f32 0.5, %v1324_v0  ;;  %v1326_v5 = vpop.f32.mrb[49].mxu1 }
 0x263   : > { %v4291_v48 = vmul.f32 0.5, %v1326_v5  ;;  %v1328_v58 = vpop.f32.mrb[50].mxu1 }
 0x264   : > { %v4293_v30 = vmul.f32 0.5, %v1328_v58  ;;  %v1330_v20 = vpop.f32.mrb[51].mxu1 }
 0x265   : > { %v4295_v29 = vmul.f32 0.5, %v1330_v20  ;;  %v1531_v36 = vmax.f32 %v4289_v4, %v4291_v48 }
 0x267   : > { %1532 = vmax.xlane.f32.xlu0 %v1531_v36  ;;  %v1534_v18 = vmax.f32 %v4293_v30, %v4295_v29 }
 0x269   : > { %1535 = vmax.xlane.f32.xlu1 %v1534_v18  ;;  %v1334_v3 = vpop.f32.mrb[52].mxu1 }
 0x26a   : > { %v4301_v31 = vmul.f32 0.5, %v1334_v3  ;;  %v1336_v16 = vpop.f32.mrb[53].mxu1 }
 0x26b   : > { %v4303_v34 = vmul.f32 0.5, %v1336_v16  ;;  %v1338_v40 = vpop.f32.mrb[54].mxu1 }
 0x26c   : > { %v4305_v42 = vmul.f32 0.5, %v1338_v40  ;;  %v1340_v52 = vpop.f32.mrb[55].mxu1 }
 0x26d   : > { %v4307_v8 = vmul.f32 0.5, %v1340_v52  ;;  %v1537_v14 = vmax.f32 %v4301_v31, %v4303_v34 }
 0x26e   : > { %5245 = vst [vmem:[#allocation39_spill] sm:$0xff] %v4305_v42 }
 0x26f   : > { %5246 = vst [vmem:[#allocation40_spill] sm:$0xff] %v4307_v8  ;;  %1538 = vmax.xlane.f32.xlu0 %v1537_v14  ;;  %v1540_v26 = vmax.f32 %v4305_v42, %v4307_v8 }
 0x271   : > { %1541 = vmax.xlane.f32.xlu1 %v1540_v26  ;;  %v1344_v32 = vpop.f32.mrb[56].mxu1 }
 0x272   : > { %v4313_v33 = vmul.f32 0.5, %v1344_v32  ;;  %v1346_v44 = vpop.f32.mrb[57].mxu1 }
 0x273   : > { %v4315_v45 = vmul.f32 0.5, %v1346_v44  ;;  %v1348_v50 = vpop.f32.mrb[58].mxu1 }
 0x274   : > { %5247 = vst [vmem:[#allocation41_spill] sm:$0xff] %v4313_v33  ;;  %v4317_v56 = vmul.f32 0.5, %v1348_v50  ;;  %v1350_v60 = vpop.f32.mrb[59].mxu1 }
 0x275   : > { %5248 = vst [vmem:[#allocation42_spill] sm:$0xff] %v4315_v45  ;;  %v4319_v23 = vmul.f32 0.5, %v1350_v60  ;;  %v1543_v55 = vmax.f32 %v4313_v33, %v4315_v45 }
 0x276   : > { %5249 = vst [vmem:[#allocation43_spill] sm:$0xff] %v4317_v56 }
 0x277   : > { %5250 = vst [vmem:[#allocation44_spill] sm:$0xff] %v4319_v23  ;;  %1544 = vmax.xlane.f32.xlu0 %v1543_v55  ;;  %v1546_v53 = vmax.f32 %v4317_v56, %v4319_v23 }
 0x279   : > { %1547 = vmax.xlane.f32.xlu1 %v1546_v53  ;;  %v1354_v54 = vpop.f32.mrb[60].mxu1 }
 0x27a   : > { %v4325_v21 = vmul.f32 0.5, %v1354_v54  ;;  %v1356_v35 = vpop.f32.mrb[61].mxu1 }
 0x27b   : > { %v4327_v61 = vmul.f32 0.5, %v1356_v35  ;;  %v1358_v43 = vpop.f32.mrb[62].mxu1 }
 0x27c   : > { %5251 = vst [vmem:[#allocation45_spill] sm:$0xff] %v4325_v21  ;;  %v4329_v2 = vmul.f32 0.5, %v1358_v43  ;;  %v1360_v62 = vpop.f32.mrb[63].mxu1 }
 0x27d   : > { %5252 = vst [vmem:[#allocation46_spill] sm:$0xff] %v4327_v61  ;;  %v4331_v1 = vmul.f32 0.5, %v1360_v62  ;;  %v1549_v24 = vmax.f32 %v4325_v21, %v4327_v61 }
 0x27e   : > { %5253 = vst [vmem:[#allocation47_spill] sm:$0xff] %v4329_v2 }
 0x27f   : > { %5254 = vst [vmem:[#allocation48_spill] sm:$0xff] %v4331_v1  ;;  %1550 = vmax.xlane.f32.xlu0 %v1549_v24  ;;  %v1552_v41 = vmax.f32 %v4329_v2, %v4331_v1 }
 0x281   : > { %1553 = vmax.xlane.f32.xlu1 %v1552_v41  ;;  %v1364_v17 = vpop.f32.mrb[64].mxu1 }
 0x282   : > { %v4337_v63 = vmul.f32 0.5, %v1364_v17  ;;  %v1366_v0 = vpop.f32.mrb[65].mxu1 }
 0x283   : > { %v4339_v5 = vmul.f32 0.5, %v1366_v0  ;;  %v1368_v58 = vpop.f32.mrb[66].mxu1 }
 0x284   : > { %5255 = vst [vmem:[#allocation49_spill] sm:$0xff] %v4337_v63  ;;  %v4341_v20 = vmul.f32 0.5, %v1368_v58  ;;  %v1370_v36 = vpop.f32.mrb[67].mxu1 }
 0x285   : > { %5256 = vst [vmem:[#allocation50_spill] sm:$0xff] %v4339_v5  ;;  %v4343_v18 = vmul.f32 0.5, %v1370_v36  ;;  %v1555_v3 = vmax.f32 %v4337_v63, %v4339_v5 }
 0x286   : > { %5257 = vst [vmem:[#allocation51_spill] sm:$0xff] %v4341_v20 }
 0x287   : > { %5258 = vst [vmem:[#allocation52_spill] sm:$0xff] %v4343_v18  ;;  %1556 = vmax.xlane.f32.xlu0 %v1555_v3  ;;  %v1558_v16 = vmax.f32 %v4341_v20, %v4343_v18 }
 0x289   : > { %1559 = vmax.xlane.f32.xlu1 %v1558_v16  ;;  %v1374_v40 = vpop.f32.mrb[68].mxu1 }
 0x28a   : > { %v4349_v52 = vmul.f32 0.5, %v1374_v40  ;;  %v1376_v14 = vpop.f32.mrb[69].mxu1 }
 0x28b   : > { %v4351_v26 = vmul.f32 0.5, %v1376_v14  ;;  %v1378_v32 = vpop.f32.mrb[70].mxu1 }
 0x28c   : > { %5259 = vst [vmem:[#allocation53_spill] sm:$0xff] %v4349_v52  ;;  %v4353_v44 = vmul.f32 0.5, %v1378_v32  ;;  %v1380_v50 = vpop.f32.mrb[71].mxu1 }
 0x28d   : > { %5260 = vst [vmem:[#allocation54_spill] sm:$0xff] %v4351_v26  ;;  %v4355_v60 = vmul.f32 0.5, %v1380_v50  ;;  %v1561_v55 = vmax.f32 %v4349_v52, %v4351_v26 }
 0x28e   : > { %5261 = vst [vmem:[#allocation55_spill] sm:$0xff] %v4353_v44 }
 0x28f   : > { %5262 = vst [vmem:[#allocation56_spill] sm:$0xff] %v4355_v60  ;;  %1562 = vmax.xlane.f32.xlu0 %v1561_v55  ;;  %v1564_v53 = vmax.f32 %v4353_v44, %v4355_v60 }
 0x291   : > { %1565 = vmax.xlane.f32.xlu1 %v1564_v53  ;;  %v1384_v54 = vpop.f32.mrb[72].mxu1 }
 0x292   : > { %v4361_v35 = vmul.f32 0.5, %v1384_v54  ;;  %v1386_v43 = vpop.f32.mrb[73].mxu1 }
 0x293   : > { %v4363_v62 = vmul.f32 0.5, %v1386_v43  ;;  %v1388_v24 = vpop.f32.mrb[74].mxu1 }
 0x294   : > { %5263 = vst [vmem:[#allocation57_spill] sm:$0xff] %v4361_v35  ;;  %v4365_v41 = vmul.f32 0.5, %v1388_v24  ;;  %v1390_v17 = vpop.f32.mrb[75].mxu1 }
 0x295   : > { %5264 = vst [vmem:[#allocation58_spill] sm:$0xff] %v4363_v62  ;;  %v4367_v0 = vmul.f32 0.5, %v1390_v17  ;;  %v1567_v58 = vmax.f32 %v4361_v35, %v4363_v62 }
 0x296   : > { %5265 = vst [vmem:[#allocation59_spill] sm:$0xff] %v4365_v41 }
 0x297   : > { %5266 = vst [vmem:[#allocation60_spill] sm:$0xff] %v4367_v0  ;;  %1568 = vmax.xlane.f32.xlu0 %v1567_v58  ;;  %v1570_v36 = vmax.f32 %v4365_v41, %v4367_v0 }
 0x299   : > { %1571 = vmax.xlane.f32.xlu1 %v1570_v36  ;;  %v1394_v3 = vpop.f32.mrb[76].mxu1 }
 0x29a   : > { %v4373_v16 = vmul.f32 0.5, %v1394_v3  ;;  %v1396_v40 = vpop.f32.mrb[77].mxu1 }
 0x29b   : > { %v4375_v14 = vmul.f32 0.5, %v1396_v40  ;;  %v1398_v32 = vpop.f32.mrb[78].mxu1 }
 0x29c   : > { %5267 = vst [vmem:[#allocation61_spill] sm:$0xff] %v4373_v16  ;;  %v4377_v50 = vmul.f32 0.5, %v1398_v32  ;;  %v1400_v55 = vpop.f32.mrb[79].mxu1 }
 0x29d   : > { %5268 = vst [vmem:[#allocation62_spill] sm:$0xff] %v4375_v14  ;;  %v4379_v53 = vmul.f32 0.5, %v1400_v55  ;;  %v1573_v54 = vmax.f32 %v4373_v16, %v4375_v14 }
 0x29e   : > { %5269 = vst [vmem:[#allocation63_spill] sm:$0xff] %v4377_v50 }
 0x29f   : > { %5270 = vst [vmem:[#allocation64_spill] sm:$0xff] %v4379_v53  ;;  %1574 = vmax.xlane.f32.xlu0 %v1573_v54  ;;  %v1576_v43 = vmax.f32 %v4377_v50, %v4379_v53  ;;  %v3221_v53 = vpop.f32.mrb[32].mxu0  ;;  %v4422_v50 = vld [vmem:[%s454_s12] ss:$0 sm:$0xff] }
 0x2a0   : > { %v4425_v14 = vadd.f32 %v3221_v53, %v4422_v50  ;;  %v994_v16 = vpop.f32.mrb[33].mxu0 }
 0x2a1   : > { %1577 = vmax.xlane.f32.xlu1 %v1576_v43  ;;  %v4385_v24 = vpop.f32.mrb[80].mxu1  ;;  %v4428_v0 = vadd.f32 %v4422_v50, %v994_v16  ;;  %v3222_v41 = vpop.f32.mrb[34].mxu0 }
 0x2a2   : > { %v4387_v17 = vpop.f32.mrb[81].mxu1  ;;  %v4431_v62 = vadd.f32 %v3222_v41, %v4422_v50  ;;  %v997_v35 = vpop.f32.mrb[35].mxu0 }
 0x2a3   : > { %v4389_v58 = vpop.f32.mrb[82].mxu1  ;;  %v4434_v60 = vadd.f32 %v4422_v50, %v997_v35  ;;  %v3225_v26 = vpop.f32.mrb[36].mxu0 }
 0x2a4   : > { %v4391_v36 = vpop.f32.mrb[83].mxu1  ;;  %v4441_v52 = vadd.f32 %v3225_v26, %v4422_v50  ;;  %v1010_v16 = vpop.f32.mrb[37].mxu0 }
 0x2a5   : > { %v4444_v18 = vadd.f32 %v4422_v50, %v1010_v16  ;;  %v3226_v41 = vpop.f32.mrb[38].mxu0 }
 0x2a6   : > { %v4447_v20 = vadd.f32 %v3226_v41, %v4422_v50  ;;  %v1013_v35 = vpop.f32.mrb[39].mxu0 }
 0x2a7   : > { %v4450_v5 = vadd.f32 %v4422_v50, %v1013_v35  ;;  %v3229_v26 = vpop.f32.mrb[40].mxu0 }
 0x2a8   : > { %v4457_v63 = vadd.f32 %v3229_v26, %v4422_v50  ;;  %v1026_v16 = vpop.f32.mrb[41].mxu0 }
 0x2a9   : > { %v4393_v3 = vpop.f32.mrb[84].mxu1  ;;  %v4460_v1 = vadd.f32 %v4422_v50, %v1026_v16  ;;  %v3230_v41 = vpop.f32.mrb[42].mxu0 }
 0x2aa   : > { %v4395_v40 = vpop.f32.mrb[85].mxu1  ;;  %v4463_v2 = vadd.f32 %v3230_v41, %v4422_v50  ;;  %v1029_v35 = vpop.f32.mrb[43].mxu0 }
 0x2ab   : > { %v4397_v32 = vpop.f32.mrb[86].mxu1  ;;  %v4466_v61 = vadd.f32 %v4422_v50, %v1029_v35  ;;  %v3233_v23 = vpop.f32.mrb[44].mxu0 }
 0x2ac   : > { %v4399_v55 = vpop.f32.mrb[87].mxu1  ;;  %v4475_v41 = vadd.f32 %v3233_v23, %v4422_v50  ;;  %v1042_v33 = vpop.f32.mrb[45].mxu0 }
 0x2ad   : > { %v3234_v44 = vpop.f32.mrb[46].mxu0 }
 0x2ae   : > { %5272 = vst [vmem:[#allocation66_spill] sm:$0xff] %v4475_v41 }
 0x2b1   : > { %v4401_v54 = vpop.f32.mrb[88].mxu1 }
 0x2b2   : > { %v4403_v43 = vpop.f32.mrb[89].mxu1 }
 0x2b3   : > { %v4405_v13 = vpop.f32.mrb[90].mxu1 }
 0x2b4   : > { %v4407_v12 = vpop.f32.mrb[91].mxu1 }
 0x2b9   : > { %v4409_v11 = vpop.f32.mrb[92].mxu1 }
 0x2ba   : > { %v4411_v10 = vpop.f32.mrb[93].mxu1 }
 0x2bb   : > { %v4413_v7 = vpop.f32.mrb[94].mxu1 }
 0x2bc   : > { %v4415_v6 = vpop.f32.mrb[95].mxu1 }
 0x2bd   : > { %5271 = vst [vmem:[#allocation65_spill] sm:$0xff] %v4415_v6  ;;  %v4478_v6 = vadd.f32 %v4422_v50, %v1042_v33 }
 0x2d4   : > { %v1509_v53 = vpop.xlane.xlu0 %1508 }
 0x2d5   : > { %v1603_v21 = vsub.f32 %v4241_v15, %v1509_v53  ;;  %v1604_v16 = vsub.f32 %v4243_v27, %v1509_v53  ;;  %v4483_v15 = vadd.f32 %v3234_v44, %v4422_v50  ;;  %v1045_v27 = vpop.f32.mrb[47].mxu0 }
 0x2d6   : > { %v3237_v44 = vpop.f32.mrb[48].mxu0 }
 0x2d7   : > { %v1667_v56 = vmul.f32 1.442695, %v1603_v21  ;;  %v1669_v45 = vmul.f32 1.442695, %v1604_v16  ;;  %v4486_v21 = vadd.f32 %v4422_v50, %v1045_v27  ;;  %v1067_v27 = vadd.f32 %v3237_v44, %v4422_v50 }
 0x2d8   : > { %v1512_v35 = vpop.xlane.xlu0 %1511 }
 0x2d9   : > { %3335 = vpow2.f32 %v1667_v56  ;;  %v1605_v8 = vsub.f32 %v4245_v38, %v1512_v35  ;;  %v1606_v26 = vsub.f32 %v4247_v39, %v1512_v35 }
 0x2da   : > { %3337 = vpow2.f32 %v1669_v45 }
 0x2db   : > { %v1671_v23 = vmul.f32 1.442695, %v1605_v8  ;;  %v1673_v53 = vmul.f32 1.442695, %v1606_v26  ;;  %v1058_v8 = vpop.f32.mrb[49].mxu0 }
 0x2dc   : > { %v1515_v16 = vpop.xlane.xlu1 %1514  ;;  %v1059_v42 = vadd.f32 %v4422_v50, %v1058_v8  ;;  %v3238_v33 = vpop.f32.mrb[50].mxu0  ;;  %v4505_v8 = vmul.f32 0.5, %v4385_v24 }
 0x2dd   : > { %3339 = vpow2.f32 %v1671_v23  ;;  %v1607_v38 = vsub.f32 %v4253_v51, %v1515_v16  ;;  %v1608_v39 = vsub.f32 %v4255_v57, %v1515_v16  ;;  %v1070_v51 = vadd.f32 %v3238_v33, %v4422_v50  ;;  %v1061_v56 = vpop.f32.mrb[51].mxu0 }
 0x2de   : > { %3341 = vpow2.f32 %v1673_v53  ;;  %v1062_v57 = vadd.f32 %v4422_v50, %v1061_v56  ;;  %v3241_v24 = vpop.f32.mrb[52].mxu0 }
 0x2df   : > { %v1675_v45 = vmul.f32 1.442695, %v1607_v38  ;;  %v1677_v35 = vmul.f32 1.442695, %v1608_v39  ;;  %v2028_v39 = vpack.c.bf16 %v1070_v51, %v1067_v27  ;;  %v5273_v51 = vpack.c.bf16 %v4434_v60, %v4428_v0 }
 0x2e0   : > { %v1518_v26 = vpop.xlane.xlu1 %1517 }
 0x2e1   : > { %3343 = vpow2.f32 %v1675_v45  ;;  %v1609_v41 = vsub.f32 %v4257_v9, %v1518_v26  ;;  %v1610_v23 = vsub.f32 %v4259_v49, %v1518_v26  ;;  %v4508_v9 = vmul.f32 0.5, %v4387_v17 }
 0x2e2   : > { %3345 = vpow2.f32 %v1677_v35  ;;  %v2027_v45 = vpack.c.bf16 %v1062_v57, %v1059_v42  ;;  %v4515_v35 = vmul.f32 0.5, %v4389_v58  ;;  %v4527_v57 = vmul.f32 0.5, %v4391_v36 }
 0x2e3   : > { %v4500_v53 = vpop.eup %3335  ;;  %v1679_v16 = vmul.f32 1.442695, %v1609_v41  ;;  %v1681_v38 = vmul.f32 1.442695, %v1610_v23 }
 0x2e4   : > { %v4502_v44 = vpop.eup %3337  ;;  %v1521_v49 = vpop.xlane.xlu0 %1520  ;;  %3014 = vmatprep.subr.bf16.mxu0 %v2027_v45 }
 0x2e5   : > { %3347 = vpow2.f32 %v1679_v16  ;;  %v1611_v33 = vsub.f32 %v4265_v59, %v1521_v49  ;;  %v1612_v56 = vsub.f32 %v4267_v46, %v1521_v49  ;;  %v1795_v41 = vadd.f32 %v4502_v44, %v4500_v53  ;;  %v1074_v46 = vpop.f32.mrb[53].mxu0  ;;  %3015 = vmatpush3.bf16.msra.mxu0 %v5273_v51 }
 0x2e6   : > { %3349 = vpow2.f32 %v1681_v38  ;;  %v1524_v27 = vpop.xlane.xlu1 %1523  ;;  %v1579_v16 = vmax.f32 %v4505_v8, %v4508_v9  ;;  %v1083_v38 = vadd.f32 %v3241_v24, %v4422_v50  ;;  %v3242_v49 = vpop.f32.mrb[54].mxu0  ;;  %3016 = vmatprep.subr.bf16.mxu0 %v2028_v39  ;;  %v1582_v51 = vmax.f32 %v4515_v35, %v4527_v57 }
 0x2e7   : > { %v4517_v26 = vpop.eup %3339  ;;  %v1683_v17 = vmul.f32 1.442695, %v1611_v33  ;;  %v1685_v23 = vmul.f32 1.442695, %v1612_v56  ;;  %v1613_v42 = vsub.f32 %v4269_v37, %v1524_v27  ;;  %v1614_v59 = vsub.f32 %v4271_v22, %v1524_v27  ;;  %1796 = vadd.xlane.f32.xlu0 %v1795_v41  ;;  %v1077_v0 = vpop.f32.mrb[55].mxu0 }
 0x2e8   : > { %v4524_v58 = vpop.eup %3341  ;;  %v1075_v37 = vadd.f32 %v4422_v50, %v1074_v46  ;;  %v1086_v36 = vadd.f32 %v3242_v49, %v4422_v50  ;;  %v1078_v33 = vadd.f32 %v4422_v50, %v1077_v0  ;;  %v4540_v41 = vmul.f32 0.5, %v4393_v3 }
 0x2e9   : > { %3351 = vpow2.f32 %v1683_v17  ;;  %v1687_v22 = vmul.f32 1.442695, %v1613_v42  ;;  %v1689_v45 = vmul.f32 1.442695, %v1614_v59  ;;  %v1798_v60 = vadd.f32 %v4524_v58, %v4517_v26 }
 0x2ea   : > { %3353 = vpow2.f32 %v1685_v23  ;;  %v4545_v27 = vmul.f32 0.5, %v4395_v40  ;;  %v2030_v17 = vpack.c.bf16 %v1086_v36, %v1083_v38  ;;  %v2029_v23 = vpack.c.bf16 %v1078_v33, %v1075_v37  ;;  %v3245_v38 = vpop.f32.mrb[56].mxu0 }
 0x2eb   : > { %v4537_v56 = vpop.eup %3343  ;;  %3355 = vpow2.f32 %v1687_v22  ;;  %1799 = vadd.xlane.f32.xlu1 %v1798_v60  ;;  %1580 = vmax.xlane.f32.xlu0 %v1579_v16  ;;  %v5274_v42 = vpack.c.bf16 %v4431_v62, %v4425_v14  ;;  %v4557_v40 = vmul.f32 0.5, %v4397_v32  ;;  %v1090_v49 = vpop.f32.mrb[57].mxu0  ;;  %v1099_v60 = vadd.f32 %v3245_v38, %v4422_v50 }
 0x2ec   : > { %v4542_v39 = vpop.eup %3345  ;;  %3357 = vpow2.f32 %v1689_v45  ;;  %v1527_v24 = vpop.xlane.xlu0 %1526  ;;  %v4566_v45 = vmul.f32 0.5, %v4399_v55  ;;  %v1585_v32 = vmax.f32 %v4540_v41, %v4545_v27  ;;  %v1091_v0 = vadd.f32 %v4422_v50, %v1090_v49 }
 0x2ed   : > { %3017 = vmatpush3.bf16.msra.mxu0 %v5274_v42  ;;  %v1615_v59 = vsub.f32 %v4277_v47, %v1527_v24  ;;  %v1616_v3 = vsub.f32 %v4279_v19, %v1527_v24  ;;  %v1801_v46 = vadd.f32 %v4542_v39, %v4537_v56 }
 0x2ee   : > { %v1530_v16 = vpop.xlane.xlu1 %1529  ;;  %3018 = vmatprep.subr.bf16.mxu0 %v2029_v23 }
 0x2ef   : > { %v4559_v37 = vpop.eup %3347  ;;  %v1691_v62 = vmul.f32 1.442695, %v1615_v59  ;;  %v1693_v14 = vmul.f32 1.442695, %v1616_v3  ;;  %v1617_v47 = vsub.f32 %v4281_v25, %v1530_v16  ;;  %v1618_v19 = vsub.f32 %v4283_v28, %v1530_v16  ;;  %1802 = vadd.xlane.f32.xlu0 %v1801_v46  ;;  %1583 = vmax.xlane.f32.xlu1 %v1582_v51  ;;  %v3246_v28 = vpop.f32.mrb[58].mxu0 }
 0x2f0   : > { %v4563_v22 = vpop.eup %3349  ;;  %v5275_v25 = vpack.c.bf16 %v4450_v5, %v4444_v18  ;;  %v1093_v55 = vpop.f32.mrb[59].mxu0  ;;  %v1102_v23 = vadd.f32 %v3246_v28, %v4422_v50  ;;  %v4582_v3 = vmul.f32 0.5, %v4401_v54  ;;  %v4587_v18 = vmul.f32 0.5, %v4403_v43 }
 0x2f1   : > { %3359 = vpow2.f32 %v1691_v62  ;;  %v1695_v36 = vmul.f32 1.442695, %v1617_v47  ;;  %v1697_v33 = vmul.f32 1.442695, %v1618_v19  ;;  %v1804_v24 = vadd.f32 %v4563_v22, %v4559_v37  ;;  %v3249_v49 = vpop.f32.mrb[60].mxu0 }
 0x2f2   : > { %3019 = vmatpush3.bf16.msra.mxu0 %v5275_v25  ;;  %3361 = vpow2.f32 %v1693_v14  ;;  %v1094_v42 = vadd.f32 %v4422_v50, %v1093_v55  ;;  %v2032_v46 = vpack.c.bf16 %v1102_v23, %v1099_v60  ;;  %v5276_v16 = vpack.c.bf16 %v4447_v20, %v4441_v52 }
 0x2f3   : > { %3020 = vmatprep.subr.bf16.mxu0 %v2030_v17  ;;  %v4579_v59 = vpop.eup %3351  ;;  %3363 = vpow2.f32 %v1695_v36  ;;  %1805 = vadd.xlane.f32.xlu1 %v1804_v24  ;;  %v1588_v43 = vmax.f32 %v4557_v40, %v4566_v45  ;;  %v5277_v25 = vpack.c.bf16 %v4466_v61, %v4460_v1  ;;  %v4625_v61 = vmul.f32 0.5, %v4411_v10 }
 0x2f4   : > { %1586 = vmax.xlane.f32.xlu0 %v1585_v32  ;;  %v4584_v5 = vpop.eup %3353  ;;  %3365 = vpow2.f32 %v1697_v33  ;;  %v1533_v17 = vpop.xlane.xlu0 %1532  ;;  %v2031_v51 = vpack.c.bf16 %v1094_v42, %v1091_v0  ;;  %v1591_v0 = vmax.f32 %v4582_v3, %v4587_v18  ;;  %v4622_v33 = vmul.f32 0.5, %v4409_v11 }
 0x2f5   : > { %v4592_v38 = vpop.eup %3355  ;;  %v1619_v54 = vsub.f32 %v4289_v4, %v1533_v17  ;;  %v1620_v62 = vsub.f32 %v4291_v48, %v1533_v17  ;;  %v1807_v14 = vadd.f32 %v4584_v5, %v4579_v59  ;;  %v4605_v4 = vmul.f32 0.5, %v4405_v13 }
 0x2f6   : > { %3021 = vmatpush3.bf16.msra.mxu0 %v5276_v16  ;;  %v4600_v47 = vpop.eup %3357  ;;  %v1536_v19 = vpop.xlane.xlu1 %1535  ;;  %v4608_v48 = vmul.f32 0.5, %v4407_v12  ;;  %v5278_v55 = vpack.c.bf16 %v4463_v2, %v4457_v63  ;;  %v4641_v16 = vmul.f32 0.5, %v4413_v7  ;;  %v1115_v63 = vadd.f32 %v3249_v49, %v4422_v50 }
 0x2f7   : > { %3022 = vmatprep.subr.bf16.mxu0 %v2031_v51  ;;  %v1699_v32 = vmul.f32 1.442695, %v1619_v54  ;;  %v1701_v20 = vmul.f32 1.442695, %v1620_v62  ;;  %v1621_v52 = vsub.f32 %v4293_v30, %v1536_v19  ;;  %v1622_v60 = vsub.f32 %v4295_v29, %v1536_v19  ;;  %1589 = vmax.xlane.f32.xlu1 %v1588_v43  ;;  %v1106_v12 = vpop.f32.mrb[61].mxu0  ;;  %v5280_v19 = vld [vmem:[#allocation40_spill] sm:$0xff] }
 0x2f8   : > { %1808 = vadd.xlane.f32.xlu0 %v1807_v14  ;;  %v1810_v29 = vadd.f32 %v4600_v47, %v4592_v38  ;;  %v3250_v24 = vpop.f32.mrb[62].mxu0  ;;  %v1594_v10 = vmax.f32 %v4605_v4, %v4608_v48  ;;  %v1107_v54 = vadd.f32 %v4422_v50, %v1106_v12  ;;  %v5279_v14 = vld [vmem:[#allocation39_spill] sm:$0xff]  ;;  %v1597_v7 = vmax.f32 %v4622_v33, %v4625_v61 }
 0x2f9   : > { %3367 = vpow2.f32 %v1699_v32  ;;  %v1703_v28 = vmul.f32 1.442695, %v1621_v52  ;;  %v1705_v30 = vmul.f32 1.442695, %v1622_v60  ;;  %v1118_v49 = vadd.f32 %v3250_v24, %v4422_v50 }
 0x2fa   : > { %3023 = vmatpush3.bf16.msra.mxu0 %v5277_v25  ;;  %3369 = vpow2.f32 %v1701_v20  ;;  %v5281_v20 = vld [vmem:[#allocation65_spill] sm:$0xff] }
 0x2fb   : > { %3024 = vmatprep.subr.bf16.mxu0 %v2032_v46  ;;  %v4617_v13 = vpop.eup %3359  ;;  %3371 = vpow2.f32 %v1703_v28  ;;  %1811 = vadd.xlane.f32.xlu1 %v1810_v29  ;;  %v1109_v46 = vpop.f32.mrb[63].mxu0  ;;  %v4649_v52 = vmul.f32 0.5, %v5281_v20 }
 0x2fc   : > { %1592 = vmax.xlane.f32.xlu0 %v1591_v0  ;;  %v4619_v36 = vpop.eup %3361  ;;  %3373 = vpow2.f32 %v1705_v30  ;;  %v1539_v1 = vpop.xlane.xlu0 %1538  ;;  %v2034_v30 = vpack.c.bf16 %v1118_v49, %v1115_v63 }
 0x2fd   : > { %v4630_v23 = vpop.eup %3363  ;;  %v1623_v42 = vsub.f32 %v4301_v31, %v1539_v1  ;;  %v1624_v17 = vsub.f32 %v4303_v34, %v1539_v1  ;;  %v1813_v11 = vadd.f32 %v4619_v36, %v4617_v13  ;;  %v1110_v31 = vadd.f32 %v4422_v50, %v1109_v46 }
 0x2fe   : > { %3025 = vmatpush3.bf16.msra.mxu0 %v5278_v55  ;;  %v4638_v51 = vpop.eup %3365  ;;  %v1542_v2 = vpop.xlane.xlu1 %1541  ;;  %v5282_v50 = vpack.c.bf16 %v4486_v21, %v4478_v6  ;;  %v5283_v55 = vld [vmem:[#allocation41_spill] sm:$0xff]  ;;  %v1600_v46 = vmax.f32 %v4641_v16, %v4649_v52  ;;  %v5285_v6 = vld [vmem:[#allocation43_spill] sm:$0xff] }
 0x2ff   : > { %v1707_v34 = vmul.f32 1.442695, %v1623_v42  ;;  %v1709_v62 = vmul.f32 1.442695, %v1624_v17  ;;  %v1625_v43 = vsub.f32 %v5279_v14, %v1542_v2  ;;  %v1626_v32 = vsub.f32 %v5280_v19, %v1542_v2  ;;  %1595 = vmax.xlane.f32.xlu1 %v1594_v10  ;;  %v5284_v17 = vld [vmem:[#allocation42_spill] sm:$0xff] }
 0x300   : > { %1814 = vadd.xlane.f32.xlu0 %v1813_v11  ;;  %v2033_v60 = vpack.c.bf16 %v1110_v31, %v1107_v54  ;;  %v1816_v28 = vadd.f32 %v4638_v51, %v4630_v23  ;;  %v5287_v14 = vld [vmem:[#allocation66_spill] sm:$0xff] }
 0x301   : > { %3375 = vpow2.f32 %v1707_v34  ;;  %v1711_v0 = vmul.f32 1.442695, %v1625_v43  ;;  %v1713_v25 = vmul.f32 1.442695, %v1626_v32  ;;  %v5286_v34 = vld [vmem:[#allocation44_spill] sm:$0xff]  ;;  %v5288_v43 = vpack.c.bf16 %v4483_v15, %v5287_v14 }
 0x302   : > { %3377 = vpow2.f32 %v1709_v62  ;;  %3026 = vmatprep.subr.bf16.mxu0 %v2033_v60 }
 0x303   : > { %v4656_v29 = vpop.eup %3367  ;;  %3379 = vpow2.f32 %v1711_v0  ;;  %1817 = vadd.xlane.f32.xlu1 %v1816_v28  ;;  %3027 = vmatpush3.bf16.msra.mxu0 %v5282_v50  ;;  %v5290_v28 = vld [vmem:[#allocation46_spill] sm:$0xff] }
 0x304   : > { %1598 = vmax.xlane.f32.xlu0 %v1597_v7  ;;  %v4658_v12 = vpop.eup %3369  ;;  %3381 = vpow2.f32 %v1713_v25  ;;  %v1545_v1 = vpop.xlane.xlu0 %1544  ;;  %3028 = vmatprep.subr.bf16.mxu0 %v2034_v30  ;;  %v5289_v25 = vld [vmem:[#allocation45_spill] sm:$0xff] }
 0x305   : > { %v4663_v24 = vpop.eup %3371  ;;  %v1627_v42 = vsub.f32 %v5283_v55, %v1545_v1  ;;  %v1628_v11 = vsub.f32 %v5284_v17, %v1545_v1  ;;  %v1819_v10 = vadd.f32 %v4658_v12, %v4656_v29 }
 0x306   : > { %v4671_v2 = vpop.eup %3373  ;;  %v1548_v63 = vpop.xlane.xlu1 %1547 }
 0x307   : > { %v1715_v54 = vmul.f32 1.442695, %v1627_v42  ;;  %v1717_v31 = vmul.f32 1.442695, %v1628_v11  ;;  %v1629_v21 = vsub.f32 %v5285_v6, %v1548_v63  ;;  %v1630_v62 = vsub.f32 %v5286_v34, %v1548_v63  ;;  %1601 = vmax.xlane.f32.xlu1 %v1600_v46  ;;  %3029 = vmatpush3.bf16.msra.mxu0 %v5288_v43  ;;  %v5291_v11 = vld [vmem:[#allocation47_spill] sm:$0xff]  ;;  %v5292_v46 = vld [vmem:[#allocation48_spill] sm:$0xff] }
 0x308   : > { %1820 = vadd.xlane.f32.xlu0 %v1819_v10  ;;  %v1822_v20 = vadd.f32 %v4671_v2, %v4663_v24  ;;  %v5293_v43 = vld [vmem:[#allocation49_spill] sm:$0xff] }
 0x309   : > { %3383 = vpow2.f32 %v1715_v54  ;;  %v1719_v19 = vmul.f32 1.442695, %v1629_v21  ;;  %v1721_v32 = vmul.f32 1.442695, %v1630_v62 }
 0x30a   : > { %3385 = vpow2.f32 %v1717_v31 }
 0x30b   : > { %v4680_v7 = vpop.eup %3375  ;;  %3387 = vpow2.f32 %v1719_v19  ;;  %1823 = vadd.xlane.f32.xlu1 %v1822_v20 }
 0x30c   : > { %v4682_v49 = vpop.eup %3377  ;;  %3389 = vpow2.f32 %v1721_v32  ;;  %v1551_v60 = vpop.xlane.xlu0 %1550  ;;  %v5294_v32 = vld [vmem:[#allocation50_spill] sm:$0xff] }
 0x30d   : > { %v4684_v0 = vpop.eup %3379  ;;  %v1631_v15 = vsub.f32 %v5289_v25, %v1551_v60  ;;  %v1632_v30 = vsub.f32 %v5290_v28, %v1551_v60  ;;  %v1825_v1 = vadd.f32 %v4682_v49, %v4680_v7 }
 0x30e   : > { %v4690_v50 = vpop.eup %3381  ;;  %v1554_v55 = vpop.xlane.xlu1 %1553 }
 0x30f   : > { %v1723_v42 = vmul.f32 1.442695, %v1631_v15  ;;  %v1725_v17 = vmul.f32 1.442695, %v1632_v30  ;;  %v1633_v10 = vsub.f32 %v5291_v11, %v1554_v55  ;;  %v1634_v63 = vsub.f32 %v5292_v46, %v1554_v55  ;;  %1826 = vadd.xlane.f32.xlu0 %v1825_v1  ;;  %v5295_v1 = vld [vmem:[#allocation51_spill] sm:$0xff] }
 0x310   : > { %v1828_v54 = vadd.f32 %v4690_v50, %v4684_v0 }
 0x311   : > { %3391 = vpow2.f32 %v1723_v42  ;;  %v1727_v31 = vmul.f32 1.442695, %v1633_v10  ;;  %v1729_v6 = vmul.f32 1.442695, %v1634_v63  ;;  %v5296_v42 = vld [vmem:[#allocation52_spill] sm:$0xff] }
 0x312   : > { %3393 = vpow2.f32 %v1725_v17  ;;  %1829 = vadd.xlane.f32.xlu1 %v1828_v54 }
 0x313   : > { %v4696_v21 = vpop.eup %3383  ;;  %3395 = vpow2.f32 %v1727_v31 }
 0x314   : > { %v4698_v34 = vpop.eup %3385  ;;  %3397 = vpow2.f32 %v1729_v6  ;;  %v1557_v62 = vpop.xlane.xlu0 %1556 }
 0x315   : > { %v4700_v14 = vpop.eup %3387  ;;  %v1635_v19 = vsub.f32 %v5293_v43, %v1557_v62  ;;  %v1636_v20 = vsub.f32 %v5294_v32, %v1557_v62  ;;  %v1831_v60 = vadd.f32 %v4698_v34, %v4696_v21  ;;  %v5299_v62 = vld [vmem:[#allocation53_spill] sm:$0xff] }
 0x316   : > { %v4706_v25 = vpop.eup %3389  ;;  %v1560_v15 = vpop.xlane.xlu1 %1559 }
 0x317   : > { %v1731_v28 = vmul.f32 1.442695, %v1635_v19  ;;  %v1733_v30 = vmul.f32 1.442695, %v1636_v20  ;;  %v1637_v55 = vsub.f32 %v5295_v1, %v1560_v15  ;;  %v1638_v17 = vsub.f32 %v5296_v42, %v1560_v15  ;;  %1832 = vadd.xlane.f32.xlu0 %v1831_v60  ;;  %v5300_v19 = vld [vmem:[#allocation54_spill] sm:$0xff]  ;;  %v5302_v1 = vld [vmem:[#allocation55_spill] sm:$0xff] }
 0x318   : > { %v1834_v11 = vadd.f32 %v4706_v25, %v4700_v14  ;;  %v5303_v42 = vld [vmem:[#allocation56_spill] sm:$0xff] }
 0x319   : > { %3399 = vpow2.f32 %v1731_v28  ;;  %v1735_v10 = vmul.f32 1.442695, %v1637_v55  ;;  %v1737_v46 = vmul.f32 1.442695, %v1638_v17 }
 0x31a   : > { %3401 = vpow2.f32 %v1733_v30  ;;  %1835 = vadd.xlane.f32.xlu1 %v1834_v11 }
 0x31b   : > { %v4712_v63 = vpop.eup %3391  ;;  %3403 = vpow2.f32 %v1735_v10 }
 0x31c   : > { %5297 = vst [vmem:[#allocation39_spill] sm:$0xff] %v4712_v63  ;;  %v4714_v54 = vpop.eup %3393  ;;  %3405 = vpow2.f32 %v1737_v46  ;;  %v1563_v31 = vpop.xlane.xlu0 %1562 }
 0x31d   : > { %v4716_v6 = vpop.eup %3395  ;;  %v1639_v43 = vsub.f32 %v5299_v62, %v1563_v31  ;;  %v1640_v32 = vsub.f32 %v5300_v19, %v1563_v31  ;;  %v1837_v20 = vadd.f32 %v4714_v54, %v4712_v63  ;;  %v5311_v63 = vld [vmem:[#allocation60_spill] sm:$0xff] }
 0x31e   : > { %5298 = vst [vmem:[#allocation40_spill] sm:$0xff] %v4716_v6  ;;  %v4722_v60 = vpop.eup %3397  ;;  %v1566_v15 = vpop.xlane.xlu1 %1565 }
 0x31f   : > { %5301 = vst [vmem:[#allocation65_spill] sm:$0xff] %v4722_v60  ;;  %v1739_v28 = vmul.f32 1.442695, %v1639_v43  ;;  %v1741_v30 = vmul.f32 1.442695, %v1640_v32  ;;  %v1641_v55 = vsub.f32 %v5302_v1, %v1566_v15  ;;  %v1642_v17 = vsub.f32 %v5303_v42, %v1566_v15  ;;  %1838 = vadd.xlane.f32.xlu0 %v1837_v20  ;;  %v5307_v32 = vld [vmem:[#allocation57_spill] sm:$0xff] }
 0x320   : > { %v1840_v11 = vadd.f32 %v4722_v60, %v4716_v6  ;;  %v5308_v20 = vld [vmem:[#allocation58_spill] sm:$0xff] }
 0x321   : > { %3407 = vpow2.f32 %v1739_v28  ;;  %v1743_v10 = vmul.f32 1.442695, %v1641_v55  ;;  %v1745_v46 = vmul.f32 1.442695, %v1642_v17 }
 0x322   : > { %3409 = vpow2.f32 %v1741_v30  ;;  %1841 = vadd.xlane.f32.xlu1 %v1840_v11  ;;  %v5310_v11 = vld [vmem:[#allocation59_spill] sm:$0xff] }
 0x323   : > { %v4728_v31 = vpop.eup %3399  ;;  %3411 = vpow2.f32 %v1743_v10 }
 0x324   : > { %5304 = vst [vmem:[#allocation41_spill] sm:$0xff] %v4728_v31  ;;  %v4730_v62 = vpop.eup %3401  ;;  %3413 = vpow2.f32 %v1745_v46  ;;  %v1569_v43 = vpop.xlane.xlu0 %1568 }
 0x325   : > { %5305 = vst [vmem:[#allocation42_spill] sm:$0xff] %v4730_v62  ;;  %v4732_v19 = vpop.eup %3403  ;;  %v1643_v15 = vsub.f32 %v5307_v32, %v1569_v43  ;;  %v1644_v1 = vsub.f32 %v5308_v20, %v1569_v43  ;;  %v1843_v28 = vadd.f32 %v4730_v62, %v4728_v31  ;;  %v5314_v31 = vld [vmem:[#allocation63_spill] sm:$0xff] }
 0x326   : > { %5306 = vst [vmem:[#allocation43_spill] sm:$0xff] %v4732_v19  ;;  %v4738_v55 = vpop.eup %3405  ;;  %v1572_v30 = vpop.xlane.xlu1 %1571 }
 0x327   : > { %5309 = vst [vmem:[#allocation44_spill] sm:$0xff] %v4738_v55  ;;  %v1747_v42 = vmul.f32 1.442695, %v1643_v15  ;;  %v1749_v17 = vmul.f32 1.442695, %v1644_v1  ;;  %v1645_v10 = vsub.f32 %v5310_v11, %v1572_v30  ;;  %v1646_v6 = vsub.f32 %v5311_v63, %v1572_v30  ;;  %1844 = vadd.xlane.f32.xlu0 %v1843_v28  ;;  %v5312_v11 = vld [vmem:[#allocation61_spill] sm:$0xff] }
 0x328   : > { %v1846_v46 = vadd.f32 %v4738_v55, %v4732_v19  ;;  %v5313_v28 = vld [vmem:[#allocation62_spill] sm:$0xff]  ;;  %v5315_v19 = vld [vmem:[#allocation64_spill] sm:$0xff] }
 0x329   : > { %3415 = vpow2.f32 %v1747_v42  ;;  %v1751_v32 = vmul.f32 1.442695, %v1645_v10  ;;  %v1753_v60 = vmul.f32 1.442695, %v1646_v6 }
 0x32a   : > { %3417 = vpow2.f32 %v1749_v17  ;;  %1847 = vadd.xlane.f32.xlu1 %v1846_v46 }
 0x32b   : > { %v4744_v43 = vpop.eup %3407  ;;  %3419 = vpow2.f32 %v1751_v32 }
 0x32c   : > { %v4746_v20 = vpop.eup %3409  ;;  %3421 = vpow2.f32 %v1753_v60  ;;  %v1575_v15 = vpop.xlane.xlu0 %1574 }
 0x32d   : > { %v4748_v1 = vpop.eup %3411  ;;  %v1647_v63 = vsub.f32 %v5312_v11, %v1575_v15  ;;  %v1648_v30 = vsub.f32 %v5313_v28, %v1575_v15  ;;  %v1849_v42 = vadd.f32 %v4746_v20, %v4744_v43 }
 0x32e   : > { %v4754_v10 = vpop.eup %3413  ;;  %v1578_v6 = vpop.xlane.xlu1 %1577 }
 0x32f   : > { %v1755_v17 = vmul.f32 1.442695, %v1647_v63  ;;  %v1757_v46 = vmul.f32 1.442695, %v1648_v30  ;;  %v1649_v32 = vsub.f32 %v5314_v31, %v1578_v6  ;;  %v1650_v55 = vsub.f32 %v5315_v19, %v1578_v6  ;;  %1850 = vadd.xlane.f32.xlu0 %v1849_v42 }
 0x330   : > { %v1852_v60 = vadd.f32 %v4754_v10, %v4748_v1 }
 0x331   : > { %3423 = vpow2.f32 %v1755_v17  ;;  %v1759_v11 = vmul.f32 1.442695, %v1649_v32  ;;  %v1761_v62 = vmul.f32 1.442695, %v1650_v55 }
 0x332   : > { %3425 = vpow2.f32 %v1757_v46  ;;  %1853 = vadd.xlane.f32.xlu1 %v1852_v60 }
 0x333   : > { %v4760_v15 = vpop.eup %3415  ;;  %3427 = vpow2.f32 %v1759_v11 }
 0x334   : > { %5316 = vst [vmem:[#allocation66_spill] sm:$0xff] %v4760_v15  ;;  %v4762_v28 = vpop.eup %3417  ;;  %3429 = vpow2.f32 %v1761_v62 }
 0x335   : > { %v4764_v63 = vpop.eup %3419  ;;  %v1855_v31 = vadd.f32 %v4762_v28, %v4760_v15 }
 0x336   : > { %5317 = vst [vmem:[#allocation45_spill] sm:$0xff] %v4764_v63  ;;  %v4768_v19 = vpop.eup %3421 }
 0x337   : > { %5318 = vst [vmem:[#allocation46_spill] sm:$0xff] %v4768_v19  ;;  %1856 = vadd.xlane.f32.xlu0 %v1855_v31  ;;  %v1858_v30 = vadd.f32 %v4768_v19, %v4764_v63 }
 0x339   : > { %1859 = vadd.xlane.f32.xlu1 %v1858_v30 }
 0x33b   : > { %v4772_v55 = vpop.eup %3423 }
 0x33c   : > { %5319 = vst [vmem:[#allocation47_spill] sm:$0xff] %v4772_v55  ;;  %v4774_v42 = vpop.eup %3425 }
 0x33d   : > { %5320 = vst [vmem:[#allocation48_spill] sm:$0xff] %v4774_v42  ;;  %v4776_v6 = vpop.eup %3427  ;;  %v1861_v62 = vadd.f32 %v4774_v42, %v4772_v55 }
 0x33e   : > { %5321 = vst [vmem:[#allocation49_spill] sm:$0xff] %v4776_v6  ;;  %v4780_v17 = vpop.eup %3429 }
 0x33f   : > { %5322 = vst [vmem:[#allocation50_spill] sm:$0xff] %v4780_v17  ;;  %1862 = vadd.xlane.f32.xlu0 %v1861_v62  ;;  %v1864_v46 = vadd.f32 %v4780_v17, %v4776_v6 }
 0x341   : > { %1865 = vadd.xlane.f32.xlu1 %v1864_v46 }
 0x374   : > { %v1797_v32 = vpop.xlane.xlu0 %1796 }
 0x375   : > { %3431 = vrcp.f32 %v1797_v32 }
 0x378   : > { %v1800_v60 = vpop.xlane.xlu1 %1799  ;;  %v1581_v11 = vpop.xlane.xlu0 %1580 }
 0x379   : > { %3433 = vrcp.f32 %v1800_v60  ;;  %v1651_v31 = vsub.f32 %v4505_v8, %v1581_v11  ;;  %v1652_v30 = vsub.f32 %v4508_v9, %v1581_v11 }
 0x37b   : > { %v1763_v15 = vmul.f32 1.442695, %v1651_v31  ;;  %v1765_v63 = vmul.f32 1.442695, %v1652_v30 }
 0x37c   : > { %v1803_v19 = vpop.xlane.xlu0 %1802  ;;  %v1584_v55 = vpop.xlane.xlu1 %1583 }
 0x37d   : > { %3435 = vpow2.f32 %v1763_v15  ;;  %v1653_v62 = vsub.f32 %v4515_v35, %v1584_v55  ;;  %v1654_v42 = vsub.f32 %v4527_v57, %v1584_v55 }
 0x37e   : > { %3437 = vpow2.f32 %v1765_v63 }
 0x37f   : > { %3439 = vrcp.f32 %v1803_v19  ;;  %v1767_v46 = vmul.f32 1.442695, %v1653_v62  ;;  %v1769_v32 = vmul.f32 1.442695, %v1654_v42  ;;  %v3432_v60 = vpop.eup %3431 }
 0x380   : > { %v1806_v6 = vpop.xlane.xlu1 %1805  ;;  %v1892_v35 = vmul.f32 %v3432_v60, %v4500_v53  ;;  %v1893_v55 = vmul.f32 %v3432_v60, %v4502_v44 }
 0x381   : > { %v1587_v17 = vpop.xlane.xlu0 %1586  ;;  %3441 = vpow2.f32 %v1767_v46 }
 0x382   : > { %v1655_v8 = vsub.f32 %v4540_v41, %v1587_v17  ;;  %v1656_v9 = vsub.f32 %v4545_v27, %v1587_v17  ;;  %3443 = vpow2.f32 %v1769_v32 }
 0x383   : > { %v3434_v11 = vpop.eup %3433  ;;  %3445 = vrcp.f32 %v1806_v6 }
 0x384   : > { %v1771_v15 = vmul.f32 1.442695, %v1655_v8  ;;  %v1773_v31 = vmul.f32 1.442695, %v1656_v9  ;;  %v1895_v57 = vmul.f32 %v3434_v11, %v4517_v26  ;;  %v1590_v19 = vpop.xlane.xlu1 %1589  ;;  %v1896_v42 = vmul.f32 %v3434_v11, %v4524_v58 }
 0x385   : > { %v1809_v63 = vpop.xlane.xlu0 %1808  ;;  %v1657_v41 = vsub.f32 %v4557_v40, %v1590_v19  ;;  %v1658_v27 = vsub.f32 %v4566_v45, %v1590_v19 }
 0x386   : > { %3447 = vpow2.f32 %v1771_v15  ;;  %v1988_v17 = vpack.c.bf16 %v1896_v42, %v1893_v55  ;;  %v1987_v6 = vpack.c.bf16 %v1895_v57, %v1892_v35 }
 0x387   : > { %3449 = vpow2.f32 %v1773_v31  ;;  %v4796_v30 = vpop.eup %3435  ;;  %v1775_v53 = vmul.f32 1.442695, %v1657_v41  ;;  %v1777_v62 = vmul.f32 1.442695, %v1658_v27 }
 0x388   : > { %3451 = vrcp.f32 %v1809_v63  ;;  %v4798_v26 = vpop.eup %3437  ;;  %2067 = vmatprep.mubr.bf16.mxu0 %v1988_v17  ;;  %v1812_v46 = vpop.xlane.xlu1 %1811 }
 0x389   : > { %v1593_v44 = vpop.xlane.xlu0 %1592  ;;  %v3440_v32 = vpop.eup %3439  ;;  %3453 = vpow2.f32 %v1775_v53  ;;  %2068 = vmatmul.mubr.bf16.vlgmr.msra.gmra.mrb[64].mxu0 %v1987_v6  ;;  %v1867_v45 = vadd.f32 %v4798_v26, %v4796_v30 }
 0x38a   : > { %v1659_v58 = vsub.f32 %v4582_v3, %v1593_v44  ;;  %v1660_v40 = vsub.f32 %v4587_v18, %v1593_v44  ;;  %3455 = vpow2.f32 %v1777_v62  ;;  %v1899_v35 = vmul.f32 %v3440_v32, %v4542_v39 }
 0x38b   : > { %v4804_v60 = vpop.eup %3441  ;;  %3457 = vrcp.f32 %v1812_v46  ;;  %1868 = vadd.xlane.f32.xlu0 %v1867_v45  ;;  %v1898_v55 = vmul.f32 %v3440_v32, %v4537_v56 }
 0x38c   : > { %v1779_v8 = vmul.f32 1.442695, %v1659_v58  ;;  %v1781_v9 = vmul.f32 1.442695, %v1660_v40  ;;  %v4806_v11 = vpop.eup %3443  ;;  %v1596_v31 = vpop.xlane.xlu1 %1595 }
 0x38d   : > { %v1815_v15 = vpop.xlane.xlu0 %1814  ;;  %v3446_v3 = vpop.eup %3445  ;;  %v1661_v18 = vsub.f32 %v4605_v4, %v1596_v31  ;;  %v1662_v57 = vsub.f32 %v4608_v48, %v1596_v31  ;;  %v1870_v63 = vadd.f32 %v4806_v11, %v4804_v60 }
 0x38e   : > { %3459 = vpow2.f32 %v1779_v8  ;;  %v1902_v19 = vmul.f32 %v3446_v3, %v4563_v22  ;;  %v1901_v42 = vmul.f32 %v3446_v3, %v4559_v37 }
 0x38f   : > { %3461 = vpow2.f32 %v1781_v9  ;;  %v1783_v27 = vmul.f32 1.442695, %v1661_v18  ;;  %v1785_v39 = vmul.f32 1.442695, %v1662_v57  ;;  %1871 = vadd.xlane.f32.xlu1 %v1870_v63 }
 0x390   : > { %v4816_v41 = vpop.eup %3447  ;;  %3463 = vrcp.f32 %v1815_v15  ;;  %v1990_v4 = vpack.c.bf16 %v1902_v19, %v1899_v35  ;;  %v1818_v48 = vpop.xlane.xlu1 %1817  ;;  %v1989_v53 = vpack.c.bf16 %v1901_v42, %v1898_v55 }
 0x391   : > { %v4818_v17 = vpop.eup %3449  ;;  %v1599_v6 = vpop.xlane.xlu0 %1598  ;;  %3465 = vpow2.f32 %v1783_v27 }
 0x392   : > { %v3452_v62 = vpop.eup %3451  ;;  %v1663_v22 = vsub.f32 %v4622_v33, %v1599_v6  ;;  %v1664_v56 = vsub.f32 %v4625_v61, %v1599_v6  ;;  %v1873_v37 = vadd.f32 %v4818_v17, %v4816_v41  ;;  %3467 = vpow2.f32 %v1785_v39  ;;  %2075 = vmatprep.mubr.bf16.mxu0 %v1990_v4 }
 0x393   : > { %v4824_v46 = vpop.eup %3453  ;;  %3469 = vrcp.f32 %v1818_v48  ;;  %2076 = vmatmul.mubr.bf16.gmra.mrb[68].mxu0 %v1989_v53  ;;  %v1905_v45 = vmul.f32 %v3452_v62, %v4584_v5  ;;  %v1904_v35 = vmul.f32 %v3452_v62, %v4579_v59 }
 0x394   : > { %v1787_v44 = vmul.f32 1.442695, %v1663_v22  ;;  %v1789_v32 = vmul.f32 1.442695, %v1664_v56  ;;  %1874 = vadd.xlane.f32.xlu0 %v1873_v37  ;;  %v4826_v58 = vpop.eup %3455  ;;  %v1602_v40 = vpop.xlane.xlu1 %1601 }
 0x395   : > { %v3458_v33 = vpop.eup %3457  ;;  %v1821_v61 = vpop.xlane.xlu0 %1820  ;;  %v1665_v8 = vsub.f32 %v4641_v16, %v1602_v40  ;;  %v1666_v9 = vsub.f32 %v4649_v52, %v1602_v40  ;;  %v1876_v15 = vadd.f32 %v4826_v58, %v4824_v46 }
 0x396   : > { %3471 = vpow2.f32 %v1787_v44  ;;  %v1908_v31 = vmul.f32 %v3458_v33, %v4600_v47  ;;  %v1907_v3 = vmul.f32 %v3458_v33, %v4592_v38 }
 0x397   : > { %3473 = vpow2.f32 %v1789_v32  ;;  %v1791_v5 = vmul.f32 1.442695, %v1665_v8  ;;  %v1793_v57 = vmul.f32 1.442695, %v1666_v9  ;;  %1877 = vadd.xlane.f32.xlu1 %v1876_v15 }
 0x398   : > { %v4836_v18 = vpop.eup %3459  ;;  %3475 = vrcp.f32 %v1821_v61  ;;  %v1992_v16 = vpack.c.bf16 %v1908_v31, %v1905_v45  ;;  %v1824_v52 = vpop.xlane.xlu1 %1823  ;;  %v1991_v19 = vpack.c.bf16 %v1907_v3, %v1904_v35 }
 0x399   : > { %v4838_v63 = vpop.eup %3461  ;;  %3477 = vpow2.f32 %v1791_v5 }
 0x39a   : > { %v1879_v55 = vadd.f32 %v4838_v63, %v4836_v18  ;;  %v3464_v47 = vpop.eup %3463  ;;  %3479 = vpow2.f32 %v1793_v57  ;;  %2083 = vmatprep.mubr.bf16.mxu0 %v1992_v16 }
 0x39b   : > { %v4842_v59 = vpop.eup %3465  ;;  %3481 = vrcp.f32 %v1824_v52  ;;  %2084 = vmatmul.mubr.bf16.gmra.mrb[72].mxu0 %v1991_v19  ;;  %v1911_v4 = vmul.f32 %v3464_v47, %v4619_v36  ;;  %v1910_v6 = vmul.f32 %v3464_v47, %v4617_v13 }
 0x39c   : > { %1880 = vadd.xlane.f32.xlu0 %v1879_v55  ;;  %v4844_v38 = vpop.eup %3467  ;;  %v1827_v42 = vpop.xlane.xlu0 %1826 }
 0x39d   : > { %v3470_v27 = vpop.eup %3469  ;;  %v1882_v39 = vadd.f32 %v4844_v38, %v4842_v59  ;;  %3483 = vrcp.f32 %v1827_v42 }
 0x39e   : > { %v1914_v48 = vmul.f32 %v3470_v27, %v4638_v51  ;;  %v1913_v53 = vmul.f32 %v3470_v27, %v4630_v23 }
 0x39f   : > { %1883 = vadd.xlane.f32.xlu1 %v1882_v39  ;;  %v1830_v22 = vpop.xlane.xlu1 %1829 }
 0x3a0   : > { %v4852_v62 = vpop.eup %3471  ;;  %3485 = vrcp.f32 %v1830_v22  ;;  %v1994_v37 = vpack.c.bf16 %v1914_v48, %v1911_v4  ;;  %v1993_v44 = vpack.c.bf16 %v1913_v53, %v1910_v6  ;;  %v5323_v22 = vld [vmem:[#allocation65_spill] sm:$0xff] }
 0x3a1   : > { %v4854_v56 = vpop.eup %3473 }
 0x3a2   : > { %v1885_v32 = vadd.f32 %v4854_v56, %v4852_v62  ;;  %v3476_v36 = vpop.eup %3475  ;;  %2091 = vmatprep.mubr.bf16.mxu0 %v1994_v37 }
 0x3a3   : > { %v4858_v40 = vpop.eup %3477  ;;  %2092 = vmatmul.mubr.bf16.gmra.mrb[76].mxu0 %v1993_v44  ;;  %v1917_v33 = vmul.f32 %v3476_v36, %v4658_v12  ;;  %v1916_v8 = vmul.f32 %v3476_v36, %v4656_v29  ;;  %v5324_v44 = vld [vmem:[#allocation40_spill] sm:$0xff]  ;;  %v5325_v36 = vld [vmem:[#allocation39_spill] sm:$0xff] }
 0x3a4   : > { %1886 = vadd.xlane.f32.xlu0 %v1885_v32  ;;  %v4860_v13 = vpop.eup %3479  ;;  %v1833_v23 = vpop.xlane.xlu0 %1832 }
 0x3a5   : > { %v3482_v51 = vpop.eup %3481  ;;  %v1888_v45 = vadd.f32 %v4860_v13, %v4858_v40  ;;  %3487 = vrcp.f32 %v1833_v23 }
 0x3a6   : > { %v1920_v61 = vmul.f32 %v3482_v51, %v4671_v2  ;;  %v1919_v9 = vmul.f32 %v3482_v51, %v4663_v24 }
 0x3a7   : > { %1889 = vadd.xlane.f32.xlu1 %v1888_v45  ;;  %v1836_v15 = vpop.xlane.xlu1 %1835  ;;  %v3484_v31 = vpop.eup %3483 }
 0x3a8   : > { %3489 = vrcp.f32 %v1836_v15  ;;  %v1996_v35 = vpack.c.bf16 %v1920_v61, %v1917_v33  ;;  %v1995_v3 = vpack.c.bf16 %v1919_v9, %v1916_v8  ;;  %v1923_v57 = vmul.f32 %v3484_v31, %v4682_v49  ;;  %v5326_v33 = vld [vmem:[#allocation42_spill] sm:$0xff]  ;;  %v5327_v8 = vld [vmem:[#allocation44_spill] sm:$0xff] }
 0x3a9   : > { %v1922_v24 = vmul.f32 %v3484_v31, %v4680_v7  ;;  %v5328_v31 = vld [vmem:[#allocation43_spill] sm:$0xff] }
 0x3aa   : > { %v3486_v5 = vpop.eup %3485  ;;  %2099 = vmatprep.mubr.bf16.mxu0 %v1996_v35 }
 0x3ab   : > { %2100 = vmatmul.mubr.bf16.gmra.mrb[80].mxu0 %v1995_v3  ;;  %v1926_v12 = vmul.f32 %v3486_v5, %v4690_v50  ;;  %v1925_v2 = vmul.f32 %v3486_v5, %v4684_v0  ;;  %v5329_v5 = vld [vmem:[#allocation41_spill] sm:$0xff] }
 0x3ac   : > { %v1839_v16 = vpop.xlane.xlu0 %1838 }
 0x3ad   : > { %v1998_v52 = vpack.c.bf16 %v1926_v12, %v1923_v57  ;;  %3491 = vrcp.f32 %v1839_v16  ;;  %v1997_v55 = vpack.c.bf16 %v1925_v2, %v1922_v24 }
 0x3af   : > { %2107 = vmatprep.mubr.bf16.mxu0 %v1998_v52  ;;  %v1842_v29 = vpop.xlane.xlu1 %1841  ;;  %v3488_v19 = vpop.eup %3487 }
 0x3b0   : > { %3493 = vrcp.f32 %v1842_v29  ;;  %v1929_v42 = vmul.f32 %v3488_v19, %v4698_v34  ;;  %v1928_v4 = vmul.f32 %v3488_v19, %v4696_v21 }
 0x3b2   : > { %v3490_v47 = vpop.eup %3489 }
 0x3b3   : > { %2108 = vmatmul.mubr.bf16.gmra.mrb[84].mxu0 %v1997_v55  ;;  %v1932_v49 = vmul.f32 %v3490_v47, %v4706_v25  ;;  %v1931_v39 = vmul.f32 %v3490_v47, %v4700_v14 }
 0x3b4   : > { %v1845_v27 = vpop.xlane.xlu0 %1844 }
 0x3b5   : > { %v2000_v50 = vpack.c.bf16 %v1932_v49, %v1929_v42  ;;  %3495 = vrcp.f32 %v1845_v27  ;;  %v1999_v7 = vpack.c.bf16 %v1931_v39, %v1928_v4 }
 0x3b7   : > { %2115 = vmatprep.mubr.bf16.mxu0 %v2000_v50  ;;  %v1848_v0 = vpop.xlane.xlu1 %1847  ;;  %v3492_v48 = vpop.eup %3491 }
 0x3b8   : > { %3497 = vrcp.f32 %v1848_v0  ;;  %v1935_v53 = vmul.f32 %v3492_v48, %v4714_v54  ;;  %v1934_v23 = vmul.f32 %v3492_v48, %v5325_v36  ;;  %v5330_v0 = vld [vmem:[#allocation46_spill] sm:$0xff] }
 0x3ba   : > { %v3494_v6 = vpop.eup %3493 }
 0x3bb   : > { %2116 = vmatmul.mubr.bf16.gmra.mrb[88].mxu0 %v1999_v7  ;;  %v1938_v34 = vmul.f32 %v3494_v6, %v5323_v22  ;;  %v1937_v32 = vmul.f32 %v3494_v6, %v5324_v44 }
 0x3bc   : > { %v1851_v37 = vpop.xlane.xlu0 %1850 }
 0x3bd   : > { %v2002_v25 = vpack.c.bf16 %v1938_v34, %v1935_v53  ;;  %3499 = vrcp.f32 %v1851_v37  ;;  %v2001_v21 = vpack.c.bf16 %v1937_v32, %v1934_v23  ;;  %v5333_v34 = vld [vmem:[#allocation48_spill] sm:$0xff] }
 0x3bf   : > { %2123 = vmatprep.mubr.bf16.mxu0 %v2002_v25  ;;  %v1854_v14 = vpop.xlane.xlu1 %1853  ;;  %v3496_v51 = vpop.eup %3495 }
 0x3c0   : > { %3501 = vrcp.f32 %v1854_v14  ;;  %v1941_v61 = vmul.f32 %v3496_v51, %v5326_v33  ;;  %v1940_v57 = vmul.f32 %v3496_v51, %v5329_v5  ;;  %v5336_v14 = vld [vmem:[#allocation47_spill] sm:$0xff] }
 0x3c1   : > { %v2244_v51 = vld [vmem:[%s3696_s29] sm:$0xf] }
 0x3c2   : > { %v3498_v45 = vpop.eup %3497 }
 0x3c3   : > { %2124 = vmatmul.mubr.bf16.gmra.mrb[92].mxu0 %v2001_v21  ;;  %v1944_v54 = vmul.f32 %v3498_v45, %v5327_v8  ;;  %v1943_v35 = vmul.f32 %v3498_v45, %v5328_v31  ;;  %v2245_v21 = vpack.c.bf16 %v2244_v51, %v2244_v51 }
 0x3c4   : > { %v1857_v9 = vpop.xlane.xlu0 %1856 }
 0x3c5   : > { %3503 = vrcp.f32 %v1857_v9  ;;  %v2004_v15 = vpack.c.bf16 %v1944_v54, %v1941_v61  ;;  %v2003_v16 = vpack.c.bf16 %v1943_v35, %v1940_v57  ;;  %3293 = vmatprep.subr.msk.bf16.mxu1 %vm2294_vm3, %v2245_v21  ;;  %v2296_v45 = vsel %vm2294_vm3, %v2245_v21, 0 }
 0x3c6   : > { %v1860_v3 = vpop.xlane.xlu1 %1859  ;;  %3252 = vmatpush3.bf16.msra.mxu1 %v2296_v45 }
 0x3c7   : > { %2131 = vmatprep.mubr.bf16.mxu0 %v2004_v15  ;;  %3505 = vrcp.f32 %v1860_v3  ;;  %v3500_v12 = vpop.eup %3499 }
 0x3c8   : > { %v1947_v2 = vmul.f32 %v3500_v12, %v4746_v20  ;;  %v1946_v49 = vmul.f32 %v3500_v12, %v4744_v43  ;;  %v5334_v43 = vld [vmem:[#allocation50_spill] sm:$0xff] }
 0x3ca   : > { %v3502_v52 = vpop.eup %3501 }
 0x3cb   : > { %2132 = vmatmul.mubr.bf16.gmra.mrb[96].mxu0 %v2003_v16  ;;  %v1950_v29 = vmul.f32 %v3502_v52, %v4754_v10  ;;  %v1949_v55 = vmul.f32 %v3502_v52, %v4748_v1  ;;  %v5331_v10 = vld [vmem:[#allocation45_spill] sm:$0xff]  ;;  %v5332_v1 = vld [vmem:[#allocation66_spill] sm:$0xff] }
 0x3cc   : > { %v1863_v24 = vpop.xlane.xlu0 %1862 }
 0x3cd   : > { %3507 = vrcp.f32 %v1863_v24  ;;  %v2006_v19 = vpack.c.bf16 %v1950_v29, %v1947_v2  ;;  %v2005_v50 = vpack.c.bf16 %v1949_v55, %v1946_v49 }
 0x3ce   : > { %v1866_v47 = vpop.xlane.xlu1 %1865 }
 0x3cf   : > { %v3504_v42 = vpop.eup %3503  ;;  %2139 = vmatprep.mubr.bf16.mxu0 %v2006_v19  ;;  %3509 = vrcp.f32 %v1866_v47 }
 0x3d0   : > { %v1953_v39 = vmul.f32 %v3504_v42, %v4762_v28  ;;  %v1952_v6 = vmul.f32 %v3504_v42, %v5332_v1  ;;  %v5335_v28 = vld [vmem:[#allocation49_spill] sm:$0xff] }
 0x3d1   : > { %v3506_v27 = vpop.eup %3505 }
 0x3d2   : > { %v1956_v4 = vmul.f32 %v3506_v27, %v5330_v0  ;;  %v1955_v48 = vmul.f32 %v3506_v27, %v5331_v10 }
 0x3d3   : > { %2140 = vmatmul.mubr.bf16.gmra.mrb[100].mxu0 %v2005_v50 }
 0x3d4   : > { %v2008_v20 = vpack.c.bf16 %v1956_v4, %v1953_v39  ;;  %v2007_v22 = vpack.c.bf16 %v1955_v48, %v1952_v6 }
 0x3d6   : > { %2147 = vmatprep.mubr.bf16.mxu0 %v2008_v20 }
 0x3d7   : > { %v3508_v7 = vpop.eup %3507 }
 0x3d8   : > { %v1959_v37 = vmul.f32 %v3508_v7, %v5333_v34  ;;  %v1958_v36 = vmul.f32 %v3508_v7, %v5336_v14 }
 0x3d9   : > { %v3510_v53 = vpop.eup %3509 }
 0x3da   : > { %v1962_v25 = vmul.f32 %v3510_v53, %v5334_v43  ;;  %v1961_v32 = vmul.f32 %v3510_v53, %v5335_v28 }
 0x3db   : > { %2148 = vmatmul.mubr.bf16.gmra.mrb[104].mxu0 %v2007_v22 }
 0x3dc   : > { %v2010_v44 = vpack.c.bf16 %v1962_v25, %v1959_v37  ;;  %v2009_v23 = vpack.c.bf16 %v1961_v32, %v1958_v36 }
 0x3de   : > { %2155 = vmatprep.mubr.bf16.mxu0 %v2010_v44 }
 0x3e3   : > { %2156 = vmatmul.mubr.bf16.gmra.mrb[108].mxu0 %v2009_v23 }
 0x418   : > { %v1869_v33 = vpop.xlane.xlu0 %1868 }
 0x419   : > { %3511 = vrcp.f32 %v1869_v33 }
 0x41c   : > { %v1872_v61 = vpop.xlane.xlu1 %1871 }
 0x41d   : > { %3513 = vrcp.f32 %v1872_v61 }
 0x421   : > { %v1875_v8 = vpop.xlane.xlu0 %1874 }
 0x422   : > { %3515 = vrcp.f32 %v1875_v8 }
 0x423   : > { %v3512_v9 = vpop.eup %3511 }
 0x424   : > { %v1878_v54 = vpop.xlane.xlu1 %1877  ;;  %v1965_v35 = vmul.f32 %v3512_v9, %v4798_v26  ;;  %v1964_v5 = vmul.f32 %v3512_v9, %v4796_v30 }
 0x425   : > { %3517 = vrcp.f32 %v1878_v54 }
 0x427   : > { %v3514_v15 = vpop.eup %3513 }
 0x428   : > { %v1968_v3 = vmul.f32 %v3514_v15, %v4806_v11  ;;  %v1967_v57 = vmul.f32 %v3514_v15, %v4804_v60 }
 0x429   : > { %v1881_v31 = vpop.xlane.xlu0 %1880 }
 0x42a   : > { %v2012_v12 = vpack.c.bf16 %v1968_v3, %v1965_v35  ;;  %v2011_v16 = vpack.c.bf16 %v1967_v57, %v1964_v5  ;;  %3519 = vrcp.f32 %v1881_v31 }
 0x42c   : > { %2163 = vmatprep.mubr.bf16.mxu0 %v2012_v12  ;;  %v1884_v52 = vpop.xlane.xlu1 %1883  ;;  %v3516_v2 = vpop.eup %3515 }
 0x42d   : > { %3521 = vrcp.f32 %v1884_v52  ;;  %2164 = vmatmul.mubr.bf16.gmra.mrb[112].mxu0 %v2011_v16  ;;  %v1971_v19 = vmul.f32 %v3516_v2, %v4818_v17  ;;  %v1970_v11 = vmul.f32 %v3516_v2, %v4816_v41 }
 0x42f   : > { %v3518_v29 = vpop.eup %3517 }
 0x430   : > { %v1974_v26 = vmul.f32 %v3518_v29, %v4826_v58  ;;  %v1973_v30 = vmul.f32 %v3518_v29, %v4824_v46 }
 0x431   : > { %v1887_v24 = vpop.xlane.xlu0 %1886 }
 0x432   : > { %v2014_v55 = vpack.c.bf16 %v1974_v26, %v1971_v19  ;;  %v2013_v60 = vpack.c.bf16 %v1973_v30, %v1970_v11  ;;  %3523 = vrcp.f32 %v1887_v24 }
 0x434   : > { %2171 = vmatprep.mubr.bf16.mxu0 %v2014_v55  ;;  %v1890_v47 = vpop.xlane.xlu1 %1889  ;;  %v3520_v42 = vpop.eup %3519 }
 0x435   : > { %3525 = vrcp.f32 %v1890_v47  ;;  %2172 = vmatmul.mubr.bf16.gmra.mrb[116].mxu0 %v2013_v60  ;;  %v1977_v27 = vmul.f32 %v3520_v42, %v4838_v63  ;;  %v1976_v17 = vmul.f32 %v3520_v42, %v4836_v18 }
 0x437   : > { %v3522_v49 = vpop.eup %3521 }
 0x438   : > { %v1980_v50 = vmul.f32 %v3522_v49, %v4844_v38  ;;  %v1979_v58 = vmul.f32 %v3522_v49, %v4842_v59 }
 0x43a   : > { %v2016_v41 = vpack.c.bf16 %v1980_v50, %v1977_v27  ;;  %v2015_v39 = vpack.c.bf16 %v1979_v58, %v1976_v17 }
 0x43c   : > { %2179 = vmatprep.mubr.bf16.mxu0 %v2016_v41  ;;  %v3524_v46 = vpop.eup %3523 }
 0x43d   : > { %2180 = vmatmul.mubr.bf16.gmra.mrb[120].mxu0 %v2015_v39  ;;  %v1983_v4 = vmul.f32 %v3524_v46, %v4854_v56  ;;  %v1982_v10 = vmul.f32 %v3524_v46, %v4852_v62 }
 0x43f   : > { %v3526_v0 = vpop.eup %3525 }
 0x440   : > { %v1986_v20 = vmul.f32 %v3526_v0, %v4860_v13  ;;  %v1985_v63 = vmul.f32 %v3526_v0, %v4858_v40 }
 0x442   : > { %v2018_v48 = vpack.c.bf16 %v1986_v20, %v1983_v4  ;;  %v2017_v38 = vpack.c.bf16 %v1985_v63, %v1982_v10 }
 0x444   : > { %2187 = vmatprep.mubr.bf16.mxu0 %v2018_v48 }
 0x445   : > { %2188 = vmatmul.mubr.bf16.gmra.mrb[124].mxu0 %v2017_v38 }
 0x45c   : > { %v3030_v18 = vpop.f32.mrb[64].mxu0 }
 0x45d   : > { %v3031_v59 = vpop.f32.mrb[65].mxu0 }
 0x45e   : > { %v3032_v7 = vadd.f32 %v3031_v59, %v3030_v18  ;;  %v3033_v1 = vpop.f32.mrb[66].mxu0 }
 0x45f   : > { %v3034_v6 = vpop.f32.mrb[67].mxu0 }
 0x460   : > { %v3035_v53 = vadd.f32 %v3034_v6, %v3033_v1 }
 0x462   : > { %v2228_v22 = vpack.c.bf16 %v3035_v53, %v3032_v7 }
 0x464   : > { %3253 = vmatprep.mubr.msk.bf16.mxu1 %vm1153_vm2, %v2228_v22 }
 0x466   : > { %v3036_v56 = vpop.f32.mrb[68].mxu0 }
 0x467   : > { %v3037_v34 = vpop.f32.mrb[69].mxu0 }
 0x468   : > { %v3038_v13 = vadd.f32 %v3037_v34, %v3036_v56  ;;  %v3039_v37 = vpop.f32.mrb[70].mxu0 }
 0x469   : > { %v3040_v62 = vpop.f32.mrb[71].mxu0 }
 0x46a   : > { %v3041_v43 = vadd.f32 %v3040_v62, %v3039_v37 }
 0x46c   : > { %v2229_v40 = vpack.c.bf16 %v3041_v43, %v3038_v13 }
 0x46e   : > { %v3042_v25 = vpop.f32.mrb[72].mxu0  ;;  %3254 = vmatmul.mubr.msk.bf16.vlgmr.msra.gmra.mrb[96].mxu1 %vm1153_vm2, %v2229_v40 }
 0x46f   : > { %v3043_v44 = vpop.f32.mrb[73].mxu0 }
 0x470   : > { %v3044_v28 = vadd.f32 %v3043_v44, %v3042_v25  ;;  %v3045_v32 = vpop.f32.mrb[74].mxu0 }
 0x471   : > { %v3046_v14 = vpop.f32.mrb[75].mxu0 }
 0x472   : > { %v3047_v36 = vadd.f32 %v3046_v14, %v3045_v32 }
 0x474   : > { %v2230_v23 = vpack.c.bf16 %v3047_v36, %v3044_v28 }
 0x476   : > { %v3048_v51 = vpop.f32.mrb[76].mxu0  ;;  %3257 = vmatprep.mubr.msk.bf16.mxu1 %vm1153_vm2, %v2230_v23 }
 0x477   : > { %v3049_v21 = vpop.f32.mrb[77].mxu0 }
 0x478   : > { %v3050_v45 = vadd.f32 %v3049_v21, %v3048_v51  ;;  %v3051_v33 = vpop.f32.mrb[78].mxu0 }
 0x479   : > { %v3052_v61 = vpop.f32.mrb[79].mxu0 }
 0x47a   : > { %v3053_v8 = vadd.f32 %v3052_v61, %v3051_v33 }
 0x47c   : > { %v2231_v54 = vpack.c.bf16 %v3053_v8, %v3050_v45 }
 0x47e   : > { %v3054_v9 = vpop.f32.mrb[80].mxu0  ;;  %3258 = vmatmul.mubr.msk.bf16.gmra.mrb[100].mxu1 %vm1153_vm2, %v2231_v54 }
 0x47f   : > { %v3055_v15 = vpop.f32.mrb[81].mxu0 }
 0x480   : > { %v3056_v31 = vadd.f32 %v3055_v15, %v3054_v9  ;;  %v3057_v35 = vpop.f32.mrb[82].mxu0 }
 0x481   : > { %v3058_v3 = vpop.f32.mrb[83].mxu0 }
 0x482   : > { %v3059_v5 = vadd.f32 %v3058_v3, %v3057_v35 }
 0x484   : > { %v2232_v57 = vpack.c.bf16 %v3059_v5, %v3056_v31 }
 0x486   : > { %v3060_v12 = vpop.f32.mrb[84].mxu0  ;;  %3261 = vmatprep.mubr.msk.bf16.mxu1 %vm1153_vm2, %v2232_v57 }
 0x487   : > { %v3061_v16 = vpop.f32.mrb[85].mxu0 }
 0x488   : > { %v3062_v52 = vadd.f32 %v3061_v16, %v3060_v12  ;;  %v3063_v2 = vpop.f32.mrb[86].mxu0 }
 0x489   : > { %v3064_v29 = vpop.f32.mrb[87].mxu0 }
 0x48a   : > { %v3065_v24 = vadd.f32 %v3064_v29, %v3063_v2 }
 0x48c   : > { %v2233_v19 = vpack.c.bf16 %v3065_v24, %v3062_v52 }
 0x48e   : > { %v3066_v26 = vpop.f32.mrb[88].mxu0  ;;  %3262 = vmatmul.mubr.msk.bf16.gmra.mrb[104].mxu1 %vm1153_vm2, %v2233_v19 }
 0x48f   : > { %v3067_v11 = vpop.f32.mrb[89].mxu0 }
 0x490   : > { %v3068_v30 = vadd.f32 %v3067_v11, %v3066_v26  ;;  %v3069_v55 = vpop.f32.mrb[90].mxu0 }
 0x491   : > { %v3070_v60 = vpop.f32.mrb[91].mxu0 }
 0x492   : > { %v3071_v47 = vadd.f32 %v3070_v60, %v3069_v55 }
 0x494   : > { %v2234_v42 = vpack.c.bf16 %v3071_v47, %v3068_v30 }
 0x496   : > { %v3072_v49 = vpop.f32.mrb[92].mxu0  ;;  %3265 = vmatprep.mubr.msk.bf16.mxu1 %vm1153_vm2, %v2234_v42  ;;  %v2198_v42 = vld [vmem:[#allocation2 + $0x10] sm:$0xff] }
 0x497   : > { %v3073_v27 = vpop.f32.mrb[93].mxu0 }
 0x498   : > { %v3074_v50 = vadd.f32 %v3073_v27, %v3072_v49  ;;  %v3075_v17 = vpop.f32.mrb[94].mxu0  ;;  %v2196_v49 = vld [vmem:[#allocation2] sm:$0xff] }
 0x499   : > { %v3076_v58 = vpop.f32.mrb[95].mxu0 }
 0x49a   : > { %v3077_v41 = vadd.f32 %v3076_v58, %v3075_v17 }
 0x49c   : > { %v2235_v39 = vpack.c.bf16 %v3077_v41, %v3074_v50  ;;  %v2199_v50 = vld [vmem:[#allocation2 + $0x18] sm:$0xff]  ;;  %v2197_v41 = vld [vmem:[#allocation2 + $0x8] sm:$0xff] }
 0x49e   : > { %v3078_v46 = vpop.f32.mrb[96].mxu0  ;;  %3266 = vmatmul.mubr.msk.bf16.gmra.mrb[108].mxu1 %vm1153_vm2, %v2235_v39 }
 0x49f   : > { %v3079_v0 = vpop.f32.mrb[97].mxu0 }
 0x4a0   : > { %v3080_v4 = vadd.f32 %v3079_v0, %v3078_v46  ;;  %v3081_v20 = vpop.f32.mrb[98].mxu0 }
 0x4a1   : > { %v3082_v10 = vpop.f32.mrb[99].mxu0 }
 0x4a2   : > { %v3083_v63 = vadd.f32 %v3082_v10, %v3081_v20  ;;  %v2202_v10 = vld [vmem:[#allocation2 + $0x30] sm:$0xff] }
 0x4a4   : > { %v2236_v48 = vpack.c.bf16 %v3083_v63, %v3080_v4  ;;  %v2200_v63 = vld [vmem:[#allocation2 + $0x20] sm:$0xff] }
 0x4a6   : > { %v3084_v38 = vpop.f32.mrb[100].mxu0  ;;  %3269 = vmatprep.mubr.msk.bf16.mxu1 %vm1153_vm2, %v2236_v48 }
 0x4a7   : > { %v3085_v18 = vpop.f32.mrb[101].mxu0 }
 0x4a8   : > { %v3086_v59 = vadd.f32 %v3085_v18, %v3084_v38  ;;  %v3087_v7 = vpop.f32.mrb[102].mxu0  ;;  %v2203_v38 = vld [vmem:[#allocation2 + $0x38] sm:$0xff] }
 0x4a9   : > { %v3088_v1 = vpop.f32.mrb[103].mxu0 }
 0x4aa   : > { %v3089_v6 = vadd.f32 %v3088_v1, %v3087_v7  ;;  %v2201_v7 = vld [vmem:[#allocation2 + $0x28] sm:$0xff] }
 0x4ac   : > { %v2237_v53 = vpack.c.bf16 %v3089_v6, %v3086_v59 }
 0x4ae   : > { %v3090_v22 = vpop.f32.mrb[104].mxu0  ;;  %3270 = vmatmul.mubr.msk.bf16.gmra.mrb[112].mxu1 %vm1153_vm2, %v2237_v53 }
 0x4af   : > { %v3091_v56 = vpop.f32.mrb[105].mxu0 }
 0x4b0   : > { %v3092_v34 = vadd.f32 %v3091_v56, %v3090_v22  ;;  %v3093_v13 = vpop.f32.mrb[106].mxu0 }
 0x4b1   : > { %v3094_v37 = vpop.f32.mrb[107].mxu0 }
 0x4b2   : > { %v3095_v62 = vadd.f32 %v3094_v37, %v3093_v13  ;;  %v2204_v13 = vld [vmem:[#allocation2 + $0x40] sm:$0xff] }
 0x4b4   : > { %v2238_v43 = vpack.c.bf16 %v3095_v62, %v3092_v34  ;;  %v2206_v34 = vld [vmem:[#allocation2 + $0x50] sm:$0xff]  ;;  %v2207_v62 = vld [vmem:[#allocation2 + $0x58] sm:$0xff] }
 0x4b6   : > { %v3096_v40 = vpop.f32.mrb[108].mxu0  ;;  %3273 = vmatprep.mubr.msk.bf16.mxu1 %vm1153_vm2, %v2238_v43 }
 0x4b7   : > { %v3097_v25 = vpop.f32.mrb[109].mxu0 }
 0x4b8   : > { %v3098_v44 = vadd.f32 %v3097_v25, %v3096_v40  ;;  %v3099_v28 = vpop.f32.mrb[110].mxu0  ;;  %v2205_v25 = vld [vmem:[#allocation2 + $0x48] sm:$0xff] }
 0x4b9   : > { %v3100_v32 = vpop.f32.mrb[111].mxu0 }
 0x4ba   : > { %v3101_v14 = vadd.f32 %v3100_v32, %v3099_v28 }
 0x4bc   : > { %v2239_v36 = vpack.c.bf16 %v3101_v14, %v3098_v44 }
 0x4be   : > { %3274 = vmatmul.mubr.msk.bf16.gmra.mrb[116].mxu1 %vm1153_vm2, %v2239_v36 }
 0x500   : > { %v3102_v23 = vpop.f32.mrb[112].mxu0 }
 0x501   : > { %v3103_v51 = vpop.f32.mrb[113].mxu0 }
 0x502   : > { %v3104_v21 = vadd.f32 %v3103_v51, %v3102_v23  ;;  %v3105_v45 = vpop.f32.mrb[114].mxu0  ;;  %v2210_v23 = vld [vmem:[#allocation2 + $0x70] sm:$0xff]  ;;  %v2208_v51 = vld [vmem:[#allocation2 + $0x60] sm:$0xff] }
 0x503   : > { %v3106_v33 = vpop.f32.mrb[115].mxu0 }
 0x504   : > { %v3107_v61 = vadd.f32 %v3106_v33, %v3105_v45  ;;  %v2211_v45 = vld [vmem:[#allocation2 + $0x78] sm:$0xff] }
 0x506   : > { %v2240_v8 = vpack.c.bf16 %v3107_v61, %v3104_v21 }
 0x508   : > { %v3108_v54 = vpop.f32.mrb[116].mxu0  ;;  %3277 = vmatprep.mubr.msk.bf16.mxu1 %vm1153_vm2, %v2240_v8  ;;  %v2209_v8 = vld [vmem:[#allocation2 + $0x68] sm:$0xff] }
 0x509   : > { %v3109_v9 = vpop.f32.mrb[117].mxu0 }
 0x50a   : > { %v3110_v15 = vadd.f32 %v3109_v9, %v3108_v54  ;;  %v3111_v31 = vpop.f32.mrb[118].mxu0 }
 0x50b   : > { %v3112_v35 = vpop.f32.mrb[119].mxu0 }
 0x50c   : > { %v3113_v3 = vadd.f32 %v3112_v35, %v3111_v31 }
 0x50e   : > { %v2241_v5 = vpack.c.bf16 %v3113_v3, %v3110_v15  ;;  %v2214_v3 = vld [vmem:[#allocation2 + $0x90] sm:$0xff] }
 0x510   : > { %v3114_v57 = vpop.f32.mrb[120].mxu0  ;;  %3278 = vmatmul.mubr.msk.bf16.gmra.mrb[120].mxu1 %vm1153_vm2, %v2241_v5  ;;  %v2212_v5 = vld [vmem:[#allocation2 + $0x80] sm:$0xff] }
 0x511   : > { %v3115_v12 = vpop.f32.mrb[121].mxu0 }
 0x512   : > { %v3116_v16 = vadd.f32 %v3115_v12, %v3114_v57  ;;  %v3117_v52 = vpop.f32.mrb[122].mxu0  ;;  %v2215_v12 = vld [vmem:[#allocation2 + $0x98] sm:$0xff] }
 0x513   : > { %v3118_v2 = vpop.f32.mrb[123].mxu0 }
 0x514   : > { %v3119_v29 = vadd.f32 %v3118_v2, %v3117_v52  ;;  %v2213_v2 = vld [vmem:[#allocation2 + $0x88] sm:$0xff] }
 0x516   : > { %v2242_v24 = vpack.c.bf16 %v3119_v29, %v3116_v16 }
 0x518   : > { %v3120_v19 = vpop.f32.mrb[124].mxu0  ;;  %3281 = vmatprep.mubr.msk.bf16.mxu1 %vm1153_vm2, %v2242_v24 }
 0x519   : > { %v3121_v26 = vpop.f32.mrb[125].mxu0 }
 0x51a   : > { %v3122_v11 = vadd.f32 %v3121_v26, %v3120_v19  ;;  %v3123_v30 = vpop.f32.mrb[126].mxu0 }
 0x51b   : > { %v3124_v55 = vpop.f32.mrb[127].mxu0 }
 0x51c   : > { %v3125_v60 = vadd.f32 %v3124_v55, %v3123_v30  ;;  %v2218_v30 = vld [vmem:[#allocation2 + $0xb0] sm:$0xff]  ;;  %v2216_v55 = vld [vmem:[#allocation2 + $0xa0] sm:$0xff] }
 0x51e   : > { %v2243_v47 = vpack.c.bf16 %v3125_v60, %v3122_v11 }
 0x520   : > { %3282 = vmatmul.mubr.msk.bf16.gmra.mrb[124].mxu1 %vm1153_vm2, %v2243_v47  ;;  %v2219_v47 = vld [vmem:[#allocation2 + $0xb8] sm:$0xff] }
 0x541   : > { %v3255_v27 = vpop.f32.mrb[96].mxu1 }
 0x542   : > { %v2461_v17 = vadd.f32 %v3255_v27, %v2198_v42  ;;  %v2332_v58 = vpop.f32.mrb[97].mxu1  ;;  %v2217_v27 = vld [vmem:[#allocation2 + $0xa8] sm:$0xff] }
 0x543   : > { %v2459_v39 = vadd.f32 %v2332_v58, %v2196_v49  ;;  %v3256_v46 = vpop.f32.mrb[98].mxu1 }
 0x544   : > { %2493 = vst.msk [vmem:[#allocation2 + $0x10] sm:$0xff] %vm563_vm1, %v2461_v17  ;;  %v2462_v0 = vadd.f32 %v3256_v46, %v2199_v50  ;;  %v2335_v4 = vpop.f32.mrb[99].mxu1  ;;  %v2222_v46 = vld [vmem:[#allocation2 + $0xd0] sm:$0xff] }
 0x545   : > { %2491 = vst.msk [vmem:[#allocation2] sm:$0xff] %vm563_vm1, %v2459_v39  ;;  %v2460_v20 = vadd.f32 %v2335_v4, %v2197_v41 }
 0x546   : > { %2494 = vst.msk [vmem:[#allocation2 + $0x18] sm:$0xff] %vm563_vm1, %v2462_v0  ;;  %v2220_v0 = vld [vmem:[#allocation2 + $0xc0] sm:$0xff] }
 0x547   : > { %2492 = vst.msk [vmem:[#allocation2 + $0x8] sm:$0xff] %vm563_vm1, %v2460_v20  ;;  %v2223_v20 = vld [vmem:[#allocation2 + $0xd8] sm:$0xff] }
 0x551   : > { %v3259_v48 = vpop.f32.mrb[100].mxu1 }
 0x552   : > { %v2465_v18 = vadd.f32 %v3259_v48, %v2202_v10  ;;  %v2348_v59 = vpop.f32.mrb[101].mxu1  ;;  %v2221_v48 = vld [vmem:[#allocation2 + $0xc8] sm:$0xff] }
 0x553   : > { %v2463_v1 = vadd.f32 %v2348_v59, %v2200_v63  ;;  %v3260_v6 = vpop.f32.mrb[102].mxu1 }
 0x554   : > { %2497 = vst.msk [vmem:[#allocation2 + $0x30] sm:$0xff] %vm563_vm1, %v2465_v18  ;;  %v2466_v53 = vadd.f32 %v3260_v6, %v2203_v38  ;;  %v2351_v22 = vpop.f32.mrb[103].mxu1  ;;  %v2226_v6 = vld [vmem:[#allocation2 + $0xf0] sm:$0xff] }
 0x555   : > { %2495 = vst.msk [vmem:[#allocation2 + $0x20] sm:$0xff] %vm563_vm1, %v2463_v1  ;;  %v2464_v56 = vadd.f32 %v2351_v22, %v2201_v7 }
 0x556   : > { %2498 = vst.msk [vmem:[#allocation2 + $0x38] sm:$0xff] %vm563_vm1, %v2466_v53  ;;  %v2224_v53 = vld [vmem:[#allocation2 + $0xe0] sm:$0xff] }
 0x557   : > { %2496 = vst.msk [vmem:[#allocation2 + $0x28] sm:$0xff] %vm563_vm1, %v2464_v56  ;;  %v2227_v56 = vld [vmem:[#allocation2 + $0xf8] sm:$0xff] }
 0x561   : > { %v3263_v37 = vpop.f32.mrb[104].mxu1 }
 0x562   : > { %v2469_v43 = vadd.f32 %v3263_v37, %v2206_v34  ;;  %v2364_v40 = vpop.f32.mrb[105].mxu1  ;;  %v2225_v37 = vld [vmem:[#allocation2 + $0xe8] sm:$0xff] }
 0x563   : > { %v2467_v44 = vadd.f32 %v2364_v40, %v2204_v13  ;;  %v3264_v28 = vpop.f32.mrb[106].mxu1 }
 0x564   : > { %2501 = vst.msk [vmem:[#allocation2 + $0x50] sm:$0xff] %vm563_vm1, %v2469_v43  ;;  %v2470_v32 = vadd.f32 %v3264_v28, %v2207_v62  ;;  %v2367_v14 = vpop.f32.mrb[107].mxu1  ;;  %v2527_v28 = vld [vmem:[#allocation2] sm:$0xff] (!%p2903_p8) }
 0x565   : > { %2499 = vst.msk [vmem:[#allocation2 + $0x40] sm:$0xff] %vm563_vm1, %v2467_v44  ;;  %v2468_v36 = vadd.f32 %v2367_v14, %v2205_v25  ;;  %v2528_v14 = vld [vmem:[#allocation2 + $0x8] sm:$0xff] (!%p2903_p8) }
 0x566   : > { %2502 = vst.msk [vmem:[#allocation2 + $0x58] sm:$0xff] %vm563_vm1, %v2470_v32  ;;  %v4965_v32 = vld [vmem:[%s5118_s8] ss:$0 sm:$0xff] (!%p2903_p8) }
 0x567   : > { %2500 = vst.msk [vmem:[#allocation2 + $0x48] sm:$0xff] %vm563_vm1, %v2468_v36  ;;  %v2566_v36 = vadd.f32 (!%p2903_p8), %v4965_v32, %v2527_v28 }
 0x571   : > { %v3267_v21 = vpop.f32.mrb[108].mxu1 }
 0x572   : > { %v2473_v33 = vadd.f32 %v3267_v21, %v2210_v23  ;;  %v2380_v61 = vpop.f32.mrb[109].mxu1  ;;  %v2567_v23 = vadd.f32 (!%p2903_p8), %v4965_v32, %v2528_v14  ;;  %v2530_v21 = vld [vmem:[#allocation2 + $0x18] sm:$0xff] (!%p2903_p8) }
 0x573   : > { %v2471_v54 = vadd.f32 %v2380_v61, %v2208_v51  ;;  %v3268_v9 = vpop.f32.mrb[110].mxu1  ;;  %v2529_v51 = vld [vmem:[#allocation2 + $0x10] sm:$0xff] (!%p2903_p8)  ;;  %v2569_v61 = vadd.f32 (!%p2903_p8), %v4965_v32, %v2530_v21 }
 0x574   : > { %2505 = vst.msk [vmem:[#allocation2 + $0x70] sm:$0xff] %vm563_vm1, %v2473_v33  ;;  %v2474_v15 = vadd.f32 %v3268_v9, %v2211_v45  ;;  %v2383_v31 = vpop.f32.mrb[111].mxu1  ;;  %v2531_v45 = vld [vmem:[#allocation2 + $0x20] sm:$0xff] (!%p2903_p8)  ;;  %v2568_v33 = vadd.f32 (!%p2903_p8), %v4965_v32, %v2529_v51  ;;  %v2533_v9 = vld [vmem:[#allocation2 + $0x30] sm:$0xff] (!%p2903_p8) }
 0x575   : > { %2503 = vst.msk [vmem:[#allocation2 + $0x60] sm:$0xff] %vm563_vm1, %v2471_v54  ;;  %v2472_v35 = vadd.f32 %v2383_v31, %v2209_v8  ;;  %v2570_v8 = vadd.f32 (!%p2903_p8), %v4965_v32, %v2531_v45  ;;  %v2532_v54 = vld [vmem:[#allocation2 + $0x28] sm:$0xff] (!%p2903_p8)  ;;  %v5337_v31 = vld [vmem:[#allocation7_spill] sm:$0xff] (!%p2903_p8)  ;;  %v5351_v51 = vld [vmem:[#allocation21_spill] sm:$0xff] (!%p2903_p8) }
 0x576   : > { %2506 = vst.msk [vmem:[#allocation2 + $0x78] sm:$0xff] %vm563_vm1, %v2474_v15  ;;  %v2534_v15 = vld [vmem:[#allocation2 + $0x38] sm:$0xff] (!%p2903_p8) }
 0x577   : > { %2504 = vst.msk [vmem:[#allocation2 + $0x68] sm:$0xff] %vm563_vm1, %v2472_v35  ;;  %v2598_v35 = vadd.f32 (!%p2903_p8), %v2566_v36, %v5337_v31  ;;  %v5350_v36 = vld [vmem:[#allocation20_spill] sm:$0xff] (!%p2903_p8) }
 0x579   : > { %2630 = vst.msk [vmem:[%s3691_s11] sm:$0xff] (!%p2903_p8), %vm563_vm1, %v2598_v35 }
 0x581   : > { %v3271_v57 = vpop.f32.mrb[112].mxu1 }
 0x582   : > { %v2477_v16 = vadd.f32 %v3271_v57, %v2214_v3  ;;  %v2396_v52 = vpop.f32.mrb[113].mxu1  ;;  %v5338_v3 = vld [vmem:[#allocation8_spill] sm:$0xff] (!%p2903_p8)  ;;  %v2571_v57 = vadd.f32 (!%p2903_p8), %v4965_v32, %v2532_v54 }
 0x583   : > { %v2475_v29 = vadd.f32 %v2396_v52, %v2212_v5  ;;  %v3272_v24 = vpop.f32.mrb[114].mxu1  ;;  %v2599_v5 = vadd.f32 (!%p2903_p8), %v2567_v23, %v5338_v3  ;;  %v2536_v52 = vld [vmem:[#allocation2 + $0x48] sm:$0xff] (!%p2903_p8) }
 0x584   : > { %2509 = vst.msk [vmem:[#allocation2 + $0x90] sm:$0xff] %vm563_vm1, %v2477_v16  ;;  %v2478_v19 = vadd.f32 %v3272_v24, %v2215_v12  ;;  %v2399_v26 = vpop.f32.mrb[115].mxu1  ;;  %v2572_v12 = vadd.f32 (!%p2903_p8), %v4965_v32, %v2533_v9  ;;  %v2535_v16 = vld [vmem:[#allocation2 + $0x40] sm:$0xff] (!%p2903_p8) }
 0x585   : > { %2507 = vst.msk [vmem:[#allocation2 + $0x80] sm:$0xff] %vm563_vm1, %v2475_v29  ;;  %v2476_v11 = vadd.f32 %v2399_v26, %v2213_v2  ;;  %v2537_v2 = vld [vmem:[#allocation2 + $0x50] sm:$0xff] (!%p2903_p8)  ;;  %2631 = vst.msk [vmem:[%s3691_s11 + $0x8] sm:$0xff] (!%p2903_p8), %vm563_vm1, %v2599_v5  ;;  %v5353_v5 = vld [vmem:[#allocation23_spill] sm:$0xff] (!%p2903_p8) }
 0x586   : > { %2510 = vst.msk [vmem:[#allocation2 + $0x98] sm:$0xff] %vm563_vm1, %v2478_v19  ;;  %v5339_v29 = vld [vmem:[#allocation9_spill] sm:$0xff] (!%p2903_p8)  ;;  %v5340_v19 = vld [vmem:[#allocation10_spill] sm:$0xff] (!%p2903_p8) }
 0x587   : > { %2508 = vst.msk [vmem:[#allocation2 + $0x88] sm:$0xff] %vm563_vm1, %v2476_v11  ;;  %v2600_v24 = vadd.f32 (!%p2903_p8), %v2568_v33, %v5339_v29  ;;  %v2601_v26 = vadd.f32 (!%p2903_p8), %v2569_v61, %v5340_v19  ;;  %v5341_v11 = vld [vmem:[#allocation11_spill] sm:$0xff] (!%p2903_p8) }
 0x589   : > { %2632 = vst.msk [vmem:[%s3691_s11 + $0x10] sm:$0xff] (!%p2903_p8), %vm563_vm1, %v2600_v24  ;;  %2633 = vst.msk [vmem:[%s3691_s11 + $0x18] sm:$0xff] (!%p2903_p8), %vm563_vm1, %v2601_v26  ;;  %v5355_v26 = vld [vmem:[#allocation25_spill] sm:$0xff] (!%p2903_p8) }
 0x591   : > { %v3275_v60 = vpop.f32.mrb[116].mxu1 }
 0x592   : > { %v2481_v42 = vadd.f32 %v3275_v60, %v2218_v30  ;;  %v2412_v49 = vpop.f32.mrb[117].mxu1  ;;  %v2602_v30 = vadd.f32 (!%p2903_p8), %v2570_v8, %v5341_v11  ;;  %v2538_v60 = vld [vmem:[#allocation2 + $0x58] sm:$0xff] (!%p2903_p8) }
 0x593   : > { %v2479_v50 = vadd.f32 %v2412_v49, %v2216_v55  ;;  %v3276_v17 = vpop.f32.mrb[118].mxu1  ;;  %v2573_v55 = vadd.f32 (!%p2903_p8), %v4965_v32, %v2534_v15  ;;  %v5342_v49 = vld [vmem:[#allocation12_spill] sm:$0xff] (!%p2903_p8)  ;;  %v5352_v8 = vld [vmem:[#allocation22_spill] sm:$0xff] (!%p2903_p8) }
 0x594   : > { %2513 = vst.msk [vmem:[#allocation2 + $0xb0] sm:$0xff] %vm563_vm1, %v2481_v42  ;;  %v2482_v58 = vadd.f32 %v3276_v17, %v2219_v47  ;;  %v2415_v41 = vpop.f32.mrb[119].mxu1  ;;  %v2539_v47 = vld [vmem:[#allocation2 + $0x60] sm:$0xff] (!%p2903_p8)  ;;  %v2540_v42 = vld [vmem:[#allocation2 + $0x68] sm:$0xff] (!%p2903_p8)  ;;  %2634 = vst.msk [vmem:[%s3691_s11 + $0x20] sm:$0xff] (!%p2903_p8), %vm563_vm1, %v2602_v30 }
 0x595   : > { %2511 = vst.msk [vmem:[#allocation2 + $0xa0] sm:$0xff] %vm563_vm1, %v2479_v50  ;;  %v2480_v39 = vadd.f32 %v2415_v41, %v2217_v27  ;;  %v2603_v27 = vadd.f32 (!%p2903_p8), %v2571_v57, %v5342_v49  ;;  %v5343_v50 = vld [vmem:[#allocation13_spill] sm:$0xff] (!%p2903_p8)  ;;  %v2575_v41 = vadd.f32 (!%p2903_p8), %v4965_v32, %v2536_v52  ;;  %v5356_v30 = vld [vmem:[#allocation26_spill] sm:$0xff] (!%p2903_p8) }
 0x596   : > { %2514 = vst.msk [vmem:[#allocation2 + $0xb8] sm:$0xff] %vm563_vm1, %v2482_v58  ;;  %v2604_v17 = vadd.f32 (!%p2903_p8), %v2572_v12, %v5343_v50  ;;  %v2574_v58 = vadd.f32 (!%p2903_p8), %v4965_v32, %v2535_v16  ;;  %v5354_v12 = vld [vmem:[#allocation24_spill] sm:$0xff] (!%p2903_p8) }
 0x597   : > { %2512 = vst.msk [vmem:[#allocation2 + $0xa8] sm:$0xff] %vm563_vm1, %v2480_v39  ;;  %v2541_v39 = vld [vmem:[#allocation2 + $0x70] sm:$0xff] (!%p2903_p8)  ;;  %2635 = vst.msk [vmem:[%s3691_s11 + $0x28] sm:$0xff] (!%p2903_p8), %vm563_vm1, %v2603_v27  ;;  %v5358_v50 = vld [vmem:[#allocation28_spill] sm:$0xff] (!%p2903_p8) }
 0x598   : > { %2636 = vst.msk [vmem:[%s3691_s11 + $0x30] sm:$0xff] (!%p2903_p8), %vm563_vm1, %v2604_v17 }
 0x59b   : > { %v2549_v14 = vld [vmem:[#allocation2 + $0xb0] sm:$0xff] (!%p2903_p8) }
 0x59d   : > { %v2550_v61 = vld [vmem:[#allocation2 + $0xb8] sm:$0xff] (!%p2903_p8) }
 0x59e   : > { %v2548_v28 = vld [vmem:[#allocation2 + $0xa8] sm:$0xff] (!%p2903_p8) }
 0x59f   : > { %v2587_v52 = vadd.f32 (!%p2903_p8), %v4965_v32, %v2548_v28  ;;  %v5368_v28 = vld [vmem:[#allocation38_spill] sm:$0xff] (!%p2903_p8) }
 0x5a1   : > { %v2619_v17 = vadd.f32 (!%p2903_p8), %v2587_v52, %v5358_v50 }
 0x5a3   : > { %2651 = vst.msk [vmem:[%s3691_s11 + $0xa8] sm:$0xff] (!%p2903_p8), %vm563_vm1, %v2619_v17 }
 0x5e3   : > { %v3279_v4 = vpop.f32.mrb[120].mxu1 }
 0x5e4   : > { %v2485_v10 = vadd.f32 %v3279_v4, %v2222_v46  ;;  %v2428_v63 = vpop.f32.mrb[121].mxu1  ;;  %v2542_v46 = vld [vmem:[#allocation2 + $0x78] sm:$0xff] (!%p2903_p8) }
 0x5e5   : > { %v2483_v38 = vadd.f32 %v2428_v63, %v2220_v0  ;;  %v3280_v18 = vpop.f32.mrb[122].mxu1  ;;  %v5344_v0 = vld [vmem:[#allocation14_spill] sm:$0xff] (!%p2903_p8)  ;;  %v2578_v63 = vadd.f32 (!%p2903_p8), %v4965_v32, %v2539_v47 }
 0x5e6   : > { %2517 = vst.msk [vmem:[#allocation2 + $0xd0] sm:$0xff] %vm563_vm1, %v2485_v10  ;;  %v2486_v59 = vadd.f32 %v3280_v18, %v2223_v20  ;;  %v2431_v7 = vpop.f32.mrb[123].mxu1  ;;  %v2605_v4 = vadd.f32 (!%p2903_p8), %v2573_v55, %v5344_v0  ;;  %v2576_v20 = vadd.f32 (!%p2903_p8), %v4965_v32, %v2537_v2  ;;  %v2577_v10 = vadd.f32 (!%p2903_p8), %v4965_v32, %v2538_v60  ;;  %v5345_v18 = vld [vmem:[#allocation15_spill] sm:$0xff] (!%p2903_p8) }
 0x5e7   : > { %2515 = vst.msk [vmem:[#allocation2 + $0xc0] sm:$0xff] %vm563_vm1, %v2483_v38  ;;  %v2484_v1 = vadd.f32 %v2431_v7, %v2221_v48  ;;  %v2543_v48 = vld [vmem:[#allocation2 + $0x80] sm:$0xff] (!%p2903_p8)  ;;  %v2544_v38 = vld [vmem:[#allocation2 + $0x88] sm:$0xff] (!%p2903_p8)  ;;  %v2588_v2 = vadd.f32 (!%p2903_p8), %v4965_v32, %v2549_v14 }
 0x5e8   : > { %2518 = vst.msk [vmem:[#allocation2 + $0xd8] sm:$0xff] %vm563_vm1, %v2486_v59  ;;  %v2606_v59 = vadd.f32 (!%p2903_p8), %v2574_v58, %v5345_v18  ;;  %v5346_v7 = vld [vmem:[#allocation16_spill] sm:$0xff] (!%p2903_p8)  ;;  %2637 = vst.msk [vmem:[%s3691_s11 + $0x38] sm:$0xff] (!%p2903_p8), %vm563_vm1, %v2605_v4  ;;  %v2582_v45 = vadd.f32 (!%p2903_p8), %v4965_v32, %v2543_v48  ;;  %v2583_v33 = vadd.f32 (!%p2903_p8), %v4965_v32, %v2544_v38  ;;  %v5357_v60 = vld [vmem:[#allocation27_spill] sm:$0xff] (!%p2903_p8) }
 0x5e9   : > { %2516 = vst.msk [vmem:[#allocation2 + $0xc8] sm:$0xff] %vm563_vm1, %v2484_v1  ;;  %v2607_v1 = vadd.f32 (!%p2903_p8), %v2575_v41, %v5346_v7  ;;  %v5359_v58 = vld [vmem:[#allocation29_spill] sm:$0xff] (!%p2903_p8)  ;;  %v5360_v4 = vld [vmem:[#allocation30_spill] sm:$0xff] (!%p2903_p8)  ;;  %v5361_v38 = vld [vmem:[#allocation31_spill] sm:$0xff] (!%p2903_p8) }
 0x5ea   : > { %2638 = vst.msk [vmem:[%s3691_s11 + $0x40] sm:$0xff] (!%p2903_p8), %vm563_vm1, %v2606_v59  ;;  %v2614_v57 = vadd.f32 (!%p2903_p8), %v2582_v45, %v5353_v5  ;;  %v2615_v16 = vadd.f32 (!%p2903_p8), %v2583_v33, %v5354_v12  ;;  %v2620_v41 = vadd.f32 (!%p2903_p8), %v2588_v2, %v5359_v58  ;;  %v5362_v59 = vld [vmem:[#allocation32_spill] sm:$0xff] (!%p2903_p8) }
 0x5eb   : > { %2639 = vst.msk [vmem:[%s3691_s11 + $0x48] sm:$0xff] (!%p2903_p8), %vm563_vm1, %v2607_v1 }
 0x5ec   : > { %2646 = vst.msk [vmem:[%s3691_s11 + $0x80] sm:$0xff] (!%p2903_p8), %vm563_vm1, %v2614_v57  ;;  %2647 = vst.msk [vmem:[%s3691_s11 + $0x88] sm:$0xff] (!%p2903_p8), %vm563_vm1, %v2615_v16 }
 0x5ed   : > { %v2553_v29 = vld [vmem:[#allocation2 + $0xd0] sm:$0xff] (!%p2903_p8)  ;;  %2652 = vst.msk [vmem:[%s3691_s11 + $0xb0] sm:$0xff] (!%p2903_p8), %vm563_vm1, %v2620_v41 }
 0x5ee   : > { %v2551_v35 = vld [vmem:[#allocation2 + $0xc0] sm:$0xff] (!%p2903_p8) }
 0x5ef   : > { %v2554_v24 = vld [vmem:[#allocation2 + $0xd8] sm:$0xff] (!%p2903_p8) }
 0x5f0   : > { %v2552_v3 = vld [vmem:[#allocation2 + $0xc8] sm:$0xff] (!%p2903_p8) }
 0x5f3   : > { %v3283_v22 = vpop.f32.mrb[124].mxu1  ;;  %2526 = sbr.rel (%p2903_p8) target bundleno = 1542 (0x606), region = 64 }
 0x5f4   : > { %v2489_v34 = vadd.f32 %v3283_v22, %v2226_v6  ;;  %v2444_v13 = vpop.f32.mrb[125].mxu1  ;;  %v2579_v6 = vadd.f32 (!%p2903_p8), %v4965_v32, %v2540_v42  ;;  %v2545_v22 = vld [vmem:[#allocation2 + $0x90] sm:$0xff] (!%p2903_p8)  ;;  %v2589_v42 = vadd.f32 (!%p2903_p8), %v4965_v32, %v2550_v61 }
 0x5f5   : > { %v2487_v62 = vadd.f32 %v2444_v13, %v2224_v53  ;;  %v3284_v43 = vpop.f32.mrb[126].mxu1  ;;  %v2580_v53 = vadd.f32 (!%p2903_p8), %v4965_v32, %v2541_v39  ;;  %v5347_v13 = vld [vmem:[#allocation17_spill] sm:$0xff] (!%p2903_p8)  ;;  %v2584_v9 = vadd.f32 (!%p2903_p8), %v4965_v32, %v2545_v22  ;;  %v2590_v39 = vadd.f32 (!%p2903_p8), %v4965_v32, %v2551_v35 }
 0x5f6   : > { %2521 = vst.msk [vmem:[#allocation2 + $0xf0] sm:$0xff] %vm563_vm1, %v2489_v34  ;;  %v2490_v40 = vadd.f32 %v3284_v43, %v2227_v56  ;;  %v2447_v25 = vpop.f32.mrb[127].mxu1  ;;  %v2546_v56 = vld [vmem:[#allocation2 + $0x98] sm:$0xff] (!%p2903_p8)  ;;  %v2547_v34 = vld [vmem:[#allocation2 + $0xa0] sm:$0xff] (!%p2903_p8)  ;;  %v2611_v23 = vadd.f32 (!%p2903_p8), %v2579_v6, %v5350_v36 }
 0x5f7   : > { %2519 = vst.msk [vmem:[#allocation2 + $0xe0] sm:$0xff] %vm563_vm1, %v2487_v62  ;;  %v2488_v44 = vadd.f32 %v2447_v25, %v2225_v37  ;;  %v2608_v37 = vadd.f32 (!%p2903_p8), %v2576_v20, %v5347_v13  ;;  %v5348_v62 = vld [vmem:[#allocation18_spill] sm:$0xff] (!%p2903_p8)  ;;  %v2612_v21 = vadd.f32 (!%p2903_p8), %v2580_v53, %v5351_v51  ;;  %v2585_v15 = vadd.f32 (!%p2903_p8), %v4965_v32, %v2546_v56  ;;  %v5363_v53 = vld [vmem:[#allocation33_spill] sm:$0xff] (!%p2903_p8)  ;;  %v5365_v13 = vld [vmem:[#allocation35_spill] sm:$0xff] (!%p2903_p8) }
 0x5f8   : > { %2522 = vst.msk [vmem:[#allocation2 + $0xf8] sm:$0xff] %vm563_vm1, %v2490_v40  ;;  %v2609_v43 = vadd.f32 (!%p2903_p8), %v2577_v10, %v5348_v62  ;;  %v5349_v40 = vld [vmem:[#allocation19_spill] sm:$0xff] (!%p2903_p8)  ;;  %v2586_v31 = vadd.f32 (!%p2903_p8), %v4965_v32, %v2547_v34  ;;  %2643 = vst.msk [vmem:[%s3691_s11 + $0x68] sm:$0xff] (!%p2903_p8), %vm563_vm1, %v2611_v23  ;;  %v2616_v11 = vadd.f32 (!%p2903_p8), %v2584_v9, %v5355_v26  ;;  %v5364_v56 = vld [vmem:[#allocation34_spill] sm:$0xff] (!%p2903_p8) }
 0x5f9   : > { %2520 = vst.msk [vmem:[#allocation2 + $0xe8] sm:$0xff] %vm563_vm1, %v2488_v44  ;;  %v2610_v25 = vadd.f32 (!%p2903_p8), %v2578_v63, %v5349_v40  ;;  %v2581_v44 = vadd.f32 (!%p2903_p8), %v4965_v32, %v2542_v46  ;;  %2640 = vst.msk [vmem:[%s3691_s11 + $0x50] sm:$0xff] (!%p2903_p8), %vm563_vm1, %v2608_v37  ;;  %v2617_v55 = vadd.f32 (!%p2903_p8), %v2585_v15, %v5356_v30 }
 0x5fa   : > { %2641 = vst.msk [vmem:[%s3691_s11 + $0x58] sm:$0xff] %vm563_vm1, %v2609_v43  ;;  %2644 = vst.msk [vmem:[%s3691_s11 + $0x70] sm:$0xff] %vm563_vm1, %v2612_v21  ;;  %v2618_v47 = vadd.f32 %v2586_v31, %v5357_v60  ;;  %v2591_v46 = vadd.f32 %v4965_v32, %v2552_v3  ;;  %v2621_v20 = vadd.f32 %v2589_v42, %v5360_v4  ;;  %v5366_v43 = vld [vmem:[#allocation36_spill] sm:$0xff] }
 0x5fb   : > { %2642 = vst.msk [vmem:[%s3691_s11 + $0x60] sm:$0xff] %vm563_vm1, %v2610_v25  ;;  %v2613_v54 = vadd.f32 %v2581_v44, %v5352_v8  ;;  %2648 = vst.msk [vmem:[%s3691_s11 + $0x90] sm:$0xff] %vm563_vm1, %v2616_v11  ;;  %v2592_v10 = vadd.f32 %v4965_v32, %v2553_v29  ;;  %v2593_v63 = vadd.f32 %v4965_v32, %v2554_v24  ;;  %v5367_v25 = vld [vmem:[#allocation37_spill] sm:$0xff] }
 0x5fc   : > { %2649 = vst.msk [vmem:[%s3691_s11 + $0x98] sm:$0xff] %vm563_vm1, %v2617_v55  ;;  %2650 = vst.msk [vmem:[%s3691_s11 + $0xa0] sm:$0xff] %vm563_vm1, %v2618_v47  ;;  %v2622_v18 = vadd.f32 %v2590_v39, %v5361_v38  ;;  %v2623_v7 = vadd.f32 %v2591_v46, %v5362_v59 }
 0x5fd   : > { %2645 = vst.msk [vmem:[%s3691_s11 + $0x78] sm:$0xff] %vm563_vm1, %v2613_v54  ;;  %v2557_v27 = vld [vmem:[#allocation2 + $0xf0] sm:$0xff]  ;;  %2653 = vst.msk [vmem:[%s3691_s11 + $0xb8] sm:$0xff] %vm563_vm1, %v2621_v20  ;;  %v2624_v22 = vadd.f32 %v2592_v10, %v5363_v53  ;;  %v2625_v34 = vadd.f32 %v2593_v63, %v5364_v56 }
 0x5fe   : > { %v2555_v19 = vld [vmem:[#allocation2 + $0xe0] sm:$0xff]  ;;  %v2596_v6 = vadd.f32 %v4965_v32, %v2557_v27  ;;  %2654 = vst.msk [vmem:[%s3691_s11 + $0xc0] sm:$0xff] %vm563_vm1, %v2622_v18  ;;  %2655 = vst.msk [vmem:[%s3691_s11 + $0xc8] sm:$0xff] %vm563_vm1, %v2623_v7 }
 0x5ff   : > { %v2558_v0 = vld [vmem:[#allocation2 + $0xf8] sm:$0xff]  ;;  %v2594_v48 = vadd.f32 %v4965_v32, %v2555_v19  ;;  %2656 = vst.msk [vmem:[%s3691_s11 + $0xd0] sm:$0xff] %vm563_vm1, %v2624_v22  ;;  %2657 = vst.msk [vmem:[%s3691_s11 + $0xd8] sm:$0xff] %vm563_vm1, %v2625_v34 }
 0x600   : > { %v2556_v49 = vld [vmem:[#allocation2 + $0xe8] sm:$0xff]  ;;  %v2597_v62 = vadd.f32 %v4965_v32, %v2558_v0  ;;  %v2628_v44 = vadd.f32 %v2596_v6, %v5367_v25 }
 0x601   : > { %v2595_v1 = vadd.f32 %v4965_v32, %v2556_v49  ;;  %v2626_v37 = vadd.f32 %v2594_v48, %v5365_v13 }
 0x602   : > { %v2629_v14 = vadd.f32 %v2597_v62, %v5368_v28  ;;  %2660 = vst.msk [vmem:[%s3691_s11 + $0xf0] sm:$0xff] %vm563_vm1, %v2628_v44 }
 0x603   : > { %v2627_v40 = vadd.f32 %v2595_v1, %v5366_v43  ;;  %2658 = vst.msk [vmem:[%s3691_s11 + $0xe0] sm:$0xff] %vm563_vm1, %v2626_v37 }
 0x604   : > { %2661 = vst.msk [vmem:[%s3691_s11 + $0xf8] sm:$0xff] %vm563_vm1, %v2629_v14 }
 0x605   : > { %2659 = vst.msk [vmem:[%s3691_s11 + $0xe8] sm:$0xff] %vm563_vm1, %v2627_v40 }
 0x606 PF: > { %s19_s13 = sadd.s32 1, %s3565_s13   ;;  %s5369_s30 = sld [smem:[#allocation3_spill]] }
 0x607   : > { %p16_p9 = scmp.ge.s32.totalorder %s19_s13, 18   ;;  %s5370_s10 = sld [smem:[#allocation4_spill]] }
 0x608   : > { %s5371_s11 = sld [smem:[#allocation5_spill]]  ;;  %s5372_s12 = sld [smem:[#allocation6_spill]] }
 0x609   :  { %18 = sbr.rel (!%p16_p9) target bundleno = 4 (0x4), region = 115 }

</bundles_post_ra>
